<compile_context>
chip_gen: v5e
topology: v5e:2x2
jax: 0.10.0
libtpu: 0.0.40
codegen_flags: <defaults>
</compile_context>

<pallas_src>
import functools

import jax
import jax.numpy as jnp
from jax.experimental import pallas as pl
from jax.experimental.pallas import tpu as pltpu

_EPS = 1e-5
_SLOPE = 0.2
# Safe on every generation (v7x has 64 MiB physical VMEM).  Blocks here are
# tiny, so the 96-100 MiB limit v5e/v6e would allow buys nothing.
_VMEM_LIMIT = 48 * 1024 * 1024


def _round_up(x, m):
    return (x + m - 1) // m * m


# --------------------------------- kernels -----------------------------------
def _conv_taps(x_ref, w_ref, th, wop):
    """Accumulate the two row-taps of the wide-s2d conv as MXU GEMMs (f32 acc)."""
    row0 = pl.multiple_of(pl.program_id(1) * th, th)
    k = x_ref.shape[-1]
    n = w_ref.shape[-1]
    acc = jnp.zeros((th * wop, n), jnp.float32)
    for di in range(2):                                     # static unroll: 2 taps
        tap = x_ref[pl.ds(row0 + di, th), :, :]             # (th, wop, 8*Cin) bf16
        acc += jnp.dot(tap.reshape(th * wop, k), w_ref[di],
                       preferred_element_type=jnp.float32)
    return acc


def _conv_act_kernel(x_ref, w_ref, y_ref, *, th, wop, act):
    """Conv (no BN) with fused activation; bf16 store."""
    acc = _conv_taps(x_ref, w_ref, th, wop)
    if act == "lrelu":
        acc = jnp.where(acc >= 0, acc, _SLOPE * acc)
    y_ref[...] = acc.astype(y_ref.dtype)


def _conv_stats_kernel(x_ref, w_ref, y_ref, s_ref, *, th, wop):
    """Conv producing (a) the raw bf16 output and (b) per-tile per-channel
    sum / sum-of-squares partials (f32).  No resident accumulator, so both grid
    axes stay 'parallel' (v7x)."""
    acc = _conv_taps(x_ref, w_ref, th, wop)
    y_ref[...] = acc.astype(y_ref.dtype)
    s_ref[...] = jnp.concatenate(
        [jnp.sum(acc, axis=0, keepdims=True),
         jnp.sum(acc * acc, axis=0, keepdims=True)], axis=0)


def _bn_act_kernel(y_ref, mv_ref, o_ref):
    """(x - mean) * rsqrt(var + eps) + LeakyReLU(0.2); f32 math, bf16 store."""
    y = y_ref[...].astype(jnp.float32)
    z = (y - mv_ref[0:1, :]) * mv_ref[1:2, :]
    o_ref[...] = jnp.where(z >= 0, z, _SLOPE * z).astype(o_ref.dtype)


# --------------------------------- wrappers ----------------------------------
def _widen_input(x_nhwc, wop):
    """NHWC -> 'wide space-to-depth' (B, Ho+1, Wop, 8*C) bf16 for a 4x4/s2/p1
    conv: pixel (r, wo) packs padded-input rows [2r,2r+2) x cols [2wo,2wo+4),
    channel order (pi, kj, c).  Columns >= Wo are zero (contribute 0 to stats)."""
    B, H, W, C = x_nhwc.shape
    Ho, Wo = H // 2, W // 2
    xp = jnp.pad(x_nhwc, ((0, 0), (1, 1), (1, 1), (0, 0)))          # (B, H+2, W+2, C)
    xr = xp.reshape(B, Ho + 1, 2, W + 2, C)                         # rows -> (pair, pi)
    taps = [xr[:, :, :, kj:kj + 2 * Wo:2, :] for kj in range(4)]    # (B, Ho+1, 2, Wo, C)
    xw = jnp.stack(taps, axis=3)                                    # (B, Ho+1, 2, 4, Wo, C)
    xw = jnp.transpose(xw, (0, 1, 4, 2, 3, 5)).reshape(B, Ho + 1, Wo, 8 * C)
    if wop > Wo:
        xw = jnp.pad(xw, ((0, 0), (0, 0), (0, wop - Wo), (0, 0)))
    return xw.astype(jnp.bfloat16)


def _widen_weight(w, coutp):
    """PyTorch OIHW (Cout, Cin, 4, 4) -> (2, 8*Cin, Coutp) bf16 with channel
    order (pi, kj, c); output channels zero-padded to a multiple of 128 lanes."""
    cout, cin = w.shape[:2]
    wr = jnp.transpose(w, (2, 3, 1, 0))          # (ki, kj, c, co)
    wr = wr.reshape(2, 2, 4, cin, cout)          # (di, pi, kj, c, co)
    wr = wr.reshape(2, 8 * cin, cout)            # flatten (pi, kj, c)
    wr = jnp.pad(wr, ((0, 0), (0, 0), (0, coutp - cout)))
    return wr.astype(jnp.bfloat16)


def conv4x4_s2_layer(x_nhwc, w, *, use_bn, target_rows=4096):
    """Conv2d(k=4, s=2, p=1, bias=False) [+ training-mode BatchNorm2d]
    + LeakyReLU(0.2) on an NHWC activation via Pallas MXU kernels."""
    B, H, W, Cin = x_nhwc.shape
    Cout = w.shape[0]
    Ho, Wo = H // 2, W // 2
    Wop = _round_up(Wo, 8)                       # sublane-aligned row blocks
    Coutp = _round_up(Cout, 128)                 # lane-dense (unmasked) stores
    K = 8 * Cin

    xw = _widen_input(x_nhwc, Wop)               # (B, Ho+1, Wop, K) bf16
    ww = _widen_weight(w, Coutp)                 # (2, K, Coutp)     bf16

    # th output rows (th*Wop GEMM rows) per grid step; the whole image stays
    # resident in VMEM across the output-row axis (index map returns block b).
    th = max(1, min(Ho, target_rows // Wop))
    while Ho % th:
        th -= 1
    nh = Ho // th
    grid = (B, nh)

    x_spec = pl.BlockSpec((None, Ho + 1, Wop, K), lambda b, h: (b, 0, 0, 0))
    w_spec = pl.BlockSpec((2, K, Coutp), lambda b, h: (0, 0, 0))
    y_spec = pl.BlockSpec((None, th * Wop, Coutp), lambda b, h: (b, h, 0))
    cparams = pltpu.CompilerParams(
        dimension_semantics=("parallel", "parallel"),
        vmem_limit_bytes=_VMEM_LIMIT)

    if not use_bn:
        y = pl.pallas_call(
            functools.partial(_conv_act_kernel, th=th, wop=Wop, act="lrelu"),
            out_shape=jax.ShapeDtypeStruct((B, Ho * Wop, Coutp), jnp.bfloat16),
            grid=grid, in_specs=[x_spec, w_spec], out_specs=y_spec,
            compiler_params=cparams,
        )(xw, ww)
    else:
        # Pass 1: conv + per-tile partial sum / sumsq (both axes parallel).
        y, partials = pl.pallas_call(
            functools.partial(_conv_stats_kernel, th=th, wop=Wop),
            out_shape=(jax.ShapeDtypeStruct((B, Ho * Wop, Coutp), jnp.bfloat16),
                       jax.ShapeDtypeStruct((B, nh, 2, Coutp), jnp.float32)),
            grid=grid, in_specs=[x_spec, w_spec],
            out_specs=(y_spec,
                       pl.BlockSpec((None, None, 2, Coutp),
                                    lambda b, h: (b, h, 0, 0))),
            compiler_params=cparams,
        )(xw, ww)
        # Tiny cross-tile reduction + mean / rsqrt in the wrapper (f32).  Zero
        # rows from the Wo->Wop padding add 0 to both sums; divide by the true
        # count.  Padded output channels give mean=var=0 -> exactly 0 output.
        stats = jnp.sum(partials, axis=(0, 1))                      # (2, Coutp)
        count = float(B * Ho * Wo)
        mean = stats[0] / count
        # TODO(synk): E[x^2]-E[x]^2 can cancel for large-mean activations; use a
        # two-pass / Welford variant if reused outside DCGAN activation scales.
        var = jnp.maximum(stats[1] / count - mean * mean, 0.0)
        mv = jnp.stack([mean, jax.lax.rsqrt(var + _EPS)], axis=0)   # (2, Coutp) f32
        # Pass 2: normalize + LeakyReLU (f32 math, bf16 store), fully parallel.
        y = pl.pallas_call(
            _bn_act_kernel,
            out_shape=jax.ShapeDtypeStruct((B, Ho * Wop, Coutp), jnp.bfloat16),
            grid=grid,
            in_specs=[y_spec, pl.BlockSpec((2, Coutp), lambda b, h: (0, 0))],
            out_specs=y_spec,
            compiler_params=cparams,
        )(y, mv)

    return y.reshape(B, Ho, Wop, Coutp)[:, :, :Wo, :Cout]


def _final_conv_sigmoid(h_nhwc, w):
    """Conv2d(ndf*8, 1, 4, 1, 0) on a 4x4 map + Sigmoid == one (B,16C)x(16C,1)
    matvec; done with plain jnp.dot per the perf review (Cout=1, M=B is far too
    small to justify a Pallas launch and a 1->128 lane pad)."""
    B = h_nhwc.shape[0]
    cin = w.shape[1]
    wf = jnp.transpose(w, (2, 3, 1, 0)).reshape(16 * cin, 1).astype(jnp.bfloat16)
    logits = jnp.dot(h_nhwc.reshape(B, 16 * cin).astype(jnp.bfloat16), wf,
                     preferred_element_type=jnp.float32)
    return jax.nn.sigmoid(logits).reshape(B, 1, 1, 1)


def discriminator_forward(x_nchw, params):
    """Forward pass of Discriminator.main (bias-free convs, training-mode BN).
    Input/output are NCHW (PyTorch layout); activations are NHWC bf16 inside."""
    h = jnp.transpose(x_nchw, (0, 2, 3, 1))
    h = conv4x4_s2_layer(h, params["w1"], use_bn=False)
    h = conv4x4_s2_layer(h, params["w2"], use_bn=True)
    h = conv4x4_s2_layer(h, params["w3"], use_bn=True)
    h = conv4x4_s2_layer(h, params["w4"], use_bn=True)
    return _final_conv_sigmoid(h, params["w5"])          # (B,1,1,1) == NCHW


# ---------------- pure-JAX reference (correctness check only) ----------------
def _conv_ref(x, w, stride, pad):
    return jax.lax.conv_general_dilated(
        x.astype(jnp.bfloat16), w.astype(jnp.bfloat16),
        (stride, stride), ((pad, pad), (pad, pad)),
        dimension_numbers=("NCHW", "OIHW", "NCHW"),
        preferred_element_type=jnp.float32)


def discriminator_ref(x, params):
    """Reference mirroring the kernel's dtype policy (bf16 activations between
    layers, f32 conv accumulation and BatchNorm statistics)."""
    lrelu = lambda v: jnp.where(v >= 0, v, _SLOPE * v)

    def bn_block(h, w):
        a = _conv_ref(h, w, 2, 1)
        mean = jnp.mean(a, axis=(0, 2, 3), keepdims=True)
        var = jnp.mean(jnp.square(a - mean), axis=(0, 2, 3), keepdims=True)
        a = a.astype(jnp.bfloat16).astype(jnp.float32)    # kernel stores y in bf16
        return lrelu((a - mean) * jax.lax.rsqrt(var + _EPS)).astype(jnp.bfloat16)

    h = lrelu(_conv_ref(x, params["w1"], 2, 1)).astype(jnp.bfloat16)
    h = bn_block(h, params["w2"])
    h = bn_block(h, params["w3"])
    h = bn_block(h, params["w4"])
    return jax.nn.sigmoid(_conv_ref(h, params["w5"], 1, 0))


if __name__ == "__main__":
    # The DCGAN discriminator needs 64x64 input so the final Conv2d(ndf*8,1,4,1,0)
    # yields a 1x1 map; keep batch / channel widths small.
    B, nc, ndf, S = 2, 3, 8, 64
    key = jax.random.PRNGKey(0)
    kx, k1, k2, k3, k4, k5 = jax.random.split(key, 6)
    x = jax.random.normal(kx, (B, nc, S, S), jnp.float32)

    # DCGAN-style deterministic init: N(0, 0.02), bias-free OIHW conv weights.
    params = {
        "w1": 0.02 * jax.random.normal(k1, (ndf,     nc,      4, 4), jnp.float32),
        "w2": 0.02 * jax.random.normal(k2, (ndf * 2, ndf,     4, 4), jnp.float32),
        "w3": 0.02 * jax.random.normal(k3, (ndf * 4, ndf * 2, 4, 4), jnp.float32),
        "w4": 0.02 * jax.random.normal(k4, (ndf * 8, ndf * 4, 4, 4), jnp.float32),
        "w5": 0.02 * jax.random.normal(k5, (1,       ndf * 8, 4, 4), jnp.float32),
    }

    fwd = jax.jit(discriminator_forward)
    y = fwd(x, params)
    jax.block_until_ready(y)
    assert y.shape == (B, 1, 1, 1), y.shape

    y_ref = discriminator_ref(x, params)
    err = float(jnp.max(jnp.abs(y.astype(jnp.float32) - y_ref.astype(jnp.float32))))
    # bf16 inter-layer activations in both kernel and reference -> loose bound.
    assert err < 1e-2, err
    print("KERNEL_OK")
</pallas_src>

<mosaic_0001>
module attributes {stable_mosaic.version = 11 : i64} {
  func.func @_conv_act_kernel(%arg0: i32, %arg1: i32, %arg2: memref<1x33x32x24xbf16, #tpu.memory_space<vmem>>, %arg3: memref<2x24x128xbf16, #tpu.memory_space<vmem>>, %arg4: memref<1x1024x128xbf16, #tpu.memory_space<vmem>>) attributes {dimension_semantics = [#tpu.dimension_semantics<parallel>, #tpu.dimension_semantics<parallel>], iteration_bounds = array<i64: 2, 1>, scalar_prefetch = 0 : i64, scratch_operands = 0 : i64, tpu.core_type = #tpu.core_type<tc>, window_params = [{transform_indices = @transform_0, window_bounds = array<i64: 1, 33, 32, 24>}, {pipeline_mode = #tpu.pipeline_mode<synchronous>, transform_indices = @transform_1, window_bounds = array<i64: 2, 24, 128>}, {transform_indices = @transform_2, window_bounds = array<i64: 1, 1024, 128>}]} {
    %c32_i32 = arith.constant 32 : i32
    %0 = arith.muli %arg1, %c32_i32 : i32
    %1 = tpu.assume_multiple %0, 32 : i32
    %cst = arith.constant 0.000000e+00 : f32
    %2 = vector.broadcast %cst : f32 to vector<1024x128xf32>
    %c0_i32 = arith.constant 0 : i32
    %3 = arith.addi %1, %c0_i32 : i32
    %c0 = arith.constant 0 : index
    %4 = arith.index_cast %3 : i32 to index
    %c0_0 = arith.constant 0 : index
    %c0_1 = arith.constant 0 : index
    %5 = vector.load %arg2[%c0, %4, %c0_0, %c0_1] : memref<1x33x32x24xbf16, #tpu.memory_space<vmem>>, vector<1x32x32x24xbf16>
    %6 = vector.shape_cast %5 : vector<1x32x32x24xbf16> to vector<32x32x24xbf16>
    %7 = vector.shape_cast %6 : vector<32x32x24xbf16> to vector<1024x24xbf16>
    %c0_2 = arith.constant 0 : index
    %c0_3 = arith.constant 0 : index
    %c0_4 = arith.constant 0 : index
    %8 = vector.load %arg3[%c0_2, %c0_3, %c0_4] : memref<2x24x128xbf16, #tpu.memory_space<vmem>>, vector<1x24x128xbf16>
    %9 = vector.shape_cast %8 : vector<1x24x128xbf16> to vector<24x128xbf16>
    %cst_5 = arith.constant dense<0.000000e+00> : vector<1024x128xf32>
    %10 = tpu.matmul %7, %9, %cst_5 {dimension_numbers = #tpu.dot_dimension_numbers<[1], [0], [0], [1], [0, 0, 1, 1], [], []>} : vector<1024x24xbf16>, vector<24x128xbf16>, vector<1024x128xf32> -> vector<1024x128xf32>
    %11 = arith.addf %2, %10 : vector<1024x128xf32>
    %c1_i32 = arith.constant 1 : i32
    %12 = arith.addi %1, %c1_i32 : i32
    %c0_6 = arith.constant 0 : index
    %13 = arith.index_cast %12 : i32 to index
    %c0_7 = arith.constant 0 : index
    %c0_8 = arith.constant 0 : index
    %14 = vector.load %arg2[%c0_6, %13, %c0_7, %c0_8] : memref<1x33x32x24xbf16, #tpu.memory_space<vmem>>, vector<1x32x32x24xbf16>
    %15 = vector.shape_cast %14 : vector<1x32x32x24xbf16> to vector<32x32x24xbf16>
    %16 = vector.shape_cast %15 : vector<32x32x24xbf16> to vector<1024x24xbf16>
    %c1 = arith.constant 1 : index
    %c0_9 = arith.constant 0 : index
    %c0_10 = arith.constant 0 : index
    %17 = vector.load %arg3[%c1, %c0_9, %c0_10] : memref<2x24x128xbf16, #tpu.memory_space<vmem>>, vector<1x24x128xbf16>
    %18 = vector.shape_cast %17 : vector<1x24x128xbf16> to vector<24x128xbf16>
    %cst_11 = arith.constant dense<0.000000e+00> : vector<1024x128xf32>
    %19 = tpu.matmul %16, %18, %cst_11 {dimension_numbers = #tpu.dot_dimension_numbers<[1], [0], [0], [1], [0, 0, 1, 1], [], []>} : vector<1024x24xbf16>, vector<24x128xbf16>, vector<1024x128xf32> -> vector<1024x128xf32>
    %20 = arith.addf %11, %19 : vector<1024x128xf32>
    %cst_12 = arith.constant 0.000000e+00 : f32
    %21 = vector.broadcast %cst_12 : f32 to vector<1024x128xf32>
    %22 = arith.cmpf oge, %20, %21 : vector<1024x128xf32>
    %cst_13 = arith.constant 2.000000e-01 : f32
    %23 = vector.broadcast %cst_13 : f32 to vector<1024x128xf32>
    %24 = arith.mulf %23, %20 : vector<1024x128xf32>
    %25 = arith.select %22, %20, %24 : vector<1024x128xi1>, vector<1024x128xf32>
    %26 = arith.truncf %25 : vector<1024x128xf32> to vector<1024x128xbf16>
    %c0_14 = arith.constant 0 : index
    %c0_15 = arith.constant 0 : index
    %c0_16 = arith.constant 0 : index
    %27 = vector.load %arg4[%c0_14, %c0_15, %c0_16] : memref<1x1024x128xbf16, #tpu.memory_space<vmem>>, vector<1x1024x128xbf16>
    %28 = vector.shape_cast %27 : vector<1x1024x128xbf16> to vector<1024x128xbf16>
    %29 = vector.shape_cast %26 : vector<1024x128xbf16> to vector<1x1024x128xbf16>
    tpu.vector_store %arg4[%c0_14, %c0_15, %c0_16], %29 {strides = array<i32>} : memref<1x1024x128xbf16, #tpu.memory_space<vmem>>, vector<1x1024x128xbf16>,
    return
  }
  func.func @transform_0(%arg0: i32, %arg1: i32) -> (i32, i32, i32, i32) {
    %c0_i32 = arith.constant 0 : i32
    %c0_i32_0 = arith.constant 0 : i32
    %c0_i32_1 = arith.constant 0 : i32
    %c0_i32_2 = arith.constant 0 : i32
    return %arg0, %c0_i32, %c0_i32_0, %c0_i32_1 : i32, i32, i32, i32
  }
  func.func @transform_1(%arg0: i32, %arg1: i32) -> (i32, i32, i32) {
    %c0_i32 = arith.constant 0 : i32
    %c0_i32_0 = arith.constant 0 : i32
    %c0_i32_1 = arith.constant 0 : i32
    %c0_i32_2 = arith.constant 0 : i32
    return %c0_i32, %c0_i32_0, %c0_i32_1 : i32, i32, i32
  }
  func.func @transform_2(%arg0: i32, %arg1: i32) -> (i32, i32, i32) {
    %c0_i32 = arith.constant 0 : i32
    %c0_i32_0 = arith.constant 0 : i32
    return %arg0, %arg1, %c0_i32 : i32, i32, i32
  }
}

module attributes {stable_mosaic.version = 11 : i64} {
  func.func @_conv_stats_kernel(%arg0: i32, %arg1: i32, %arg2: memref<1x17x16x64xbf16, #tpu.memory_space<vmem>>, %arg3: memref<2x64x128xbf16, #tpu.memory_space<vmem>>, %arg4: memref<1x256x128xbf16, #tpu.memory_space<vmem>>, %arg5: memref<1x1x2x128xf32, #tpu.memory_space<vmem>>) attributes {dimension_semantics = [#tpu.dimension_semantics<parallel>, #tpu.dimension_semantics<parallel>], iteration_bounds = array<i64: 2, 1>, scalar_prefetch = 0 : i64, scratch_operands = 0 : i64, tpu.core_type = #tpu.core_type<tc>, window_params = [{transform_indices = @transform_0, window_bounds = array<i64: 1, 17, 16, 64>}, {pipeline_mode = #tpu.pipeline_mode<synchronous>, transform_indices = @transform_1, window_bounds = array<i64: 2, 64, 128>}, {transform_indices = @transform_2, window_bounds = array<i64: 1, 256, 128>}, {transform_indices = @transform_3, window_bounds = array<i64: 1, 1, 2, 128>}]} {
    %c16_i32 = arith.constant 16 : i32
    %0 = arith.muli %arg1, %c16_i32 : i32
    %1 = tpu.assume_multiple %0, 16 : i32
    %cst = arith.constant 0.000000e+00 : f32
    %2 = vector.broadcast %cst : f32 to vector<256x128xf32>
    %c0_i32 = arith.constant 0 : i32
    %3 = arith.addi %1, %c0_i32 : i32
    %c0 = arith.constant 0 : index
    %4 = arith.index_cast %3 : i32 to index
    %c0_0 = arith.constant 0 : index
    %c0_1 = arith.constant 0 : index
    %5 = vector.load %arg2[%c0, %4, %c0_0, %c0_1] : memref<1x17x16x64xbf16, #tpu.memory_space<vmem>>, vector<1x16x16x64xbf16>
    %6 = vector.shape_cast %5 : vector<1x16x16x64xbf16> to vector<16x16x64xbf16>
    %7 = vector.shape_cast %6 : vector<16x16x64xbf16> to vector<256x64xbf16>
    %c0_2 = arith.constant 0 : index
    %c0_3 = arith.constant 0 : index
    %c0_4 = arith.constant 0 : index
    %8 = vector.load %arg3[%c0_2, %c0_3, %c0_4] : memref<2x64x128xbf16, #tpu.memory_space<vmem>>, vector<1x64x128xbf16>
    %9 = vector.shape_cast %8 : vector<1x64x128xbf16> to vector<64x128xbf16>
    %cst_5 = arith.constant dense<0.000000e+00> : vector<256x128xf32>
    %10 = tpu.matmul %7, %9, %cst_5 {dimension_numbers = #tpu.dot_dimension_numbers<[1], [0], [0], [1], [0, 0, 1, 1], [], []>} : vector<256x64xbf16>, vector<64x128xbf16>, vector<256x128xf32> -> vector<256x128xf32>
    %11 = arith.addf %2, %10 : vector<256x128xf32>
    %c1_i32 = arith.constant 1 : i32
    %12 = arith.addi %1, %c1_i32 : i32
    %c0_6 = arith.constant 0 : index
    %13 = arith.index_cast %12 : i32 to index
    %c0_7 = arith.constant 0 : index
    %c0_8 = arith.constant 0 : index
    %14 = vector.load %arg2[%c0_6, %13, %c0_7, %c0_8] : memref<1x17x16x64xbf16, #tpu.memory_space<vmem>>, vector<1x16x16x64xbf16>
    %15 = vector.shape_cast %14 : vector<1x16x16x64xbf16> to vector<16x16x64xbf16>
    %16 = vector.shape_cast %15 : vector<16x16x64xbf16> to vector<256x64xbf16>
    %c1 = arith.constant 1 : index
    %c0_9 = arith.constant 0 : index
    %c0_10 = arith.constant 0 : index
    %17 = vector.load %arg3[%c1, %c0_9, %c0_10] : memref<2x64x128xbf16, #tpu.memory_space<vmem>>, vector<1x64x128xbf16>
    %18 = vector.shape_cast %17 : vector<1x64x128xbf16> to vector<64x128xbf16>
    %cst_11 = arith.constant dense<0.000000e+00> : vector<256x128xf32>
    %19 = tpu.matmul %16, %18, %cst_11 {dimension_numbers = #tpu.dot_dimension_numbers<[1], [0], [0], [1], [0, 0, 1, 1], [], []>} : vector<256x64xbf16>, vector<64x128xbf16>, vector<256x128xf32> -> vector<256x128xf32>
    %20 = arith.addf %11, %19 : vector<256x128xf32>
    %21 = arith.truncf %20 : vector<256x128xf32> to vector<256x128xbf16>
    %c0_12 = arith.constant 0 : index
    %c0_13 = arith.constant 0 : index
    %c0_14 = arith.constant 0 : index
    %22 = vector.load %arg4[%c0_12, %c0_13, %c0_14] : memref<1x256x128xbf16, #tpu.memory_space<vmem>>, vector<1x256x128xbf16>
    %23 = vector.shape_cast %22 : vector<1x256x128xbf16> to vector<256x128xbf16>
    %24 = vector.shape_cast %21 : vector<256x128xbf16> to vector<1x256x128xbf16>
    tpu.vector_store %arg4[%c0_12, %c0_13, %c0_14], %24 {strides = array<i32>} : memref<1x256x128xbf16, #tpu.memory_space<vmem>>, vector<1x256x128xbf16>,
    %cst_15 = arith.constant dense<0.000000e+00> : vector<128xf32>
    %25 = vector.multi_reduction <add>, %20, %cst_15 [0] : vector<256x128xf32> to vector<128xf32>
    %26 = vector.shape_cast %25 : vector<128xf32> to vector<1x128xf32>
    %27 = arith.mulf %20, %20 : vector<256x128xf32>
    %cst_16 = arith.constant dense<0.000000e+00> : vector<128xf32>
    %28 = vector.multi_reduction <add>, %27, %cst_16 [0] : vector<256x128xf32> to vector<128xf32>
    %29 = vector.shape_cast %28 : vector<128xf32> to vector<1x128xf32>
    %30 = tpu.concatenate %26, %29 in 0 : vector<1x128xf32>, vector<1x128xf32> -> vector<2x128xf32>
    %c0_17 = arith.constant 0 : index
    %c0_18 = arith.constant 0 : index
    %c0_19 = arith.constant 0 : index
    %c0_20 = arith.constant 0 : index
    %31 = vector.load %arg5[%c0_17, %c0_18, %c0_19, %c0_20] : memref<1x1x2x128xf32, #tpu.memory_space<vmem>>, vector<1x1x2x128xf32>
    %32 = vector.shape_cast %31 : vector<1x1x2x128xf32> to vector<2x128xf32>
    %33 = vector.shape_cast %30 : vector<2x128xf32> to vector<1x1x2x128xf32>
    tpu.vector_store %arg5[%c0_17, %c0_18, %c0_19, %c0_20], %33 {strides = array<i32>} : memref<1x1x2x128xf32, #tpu.memory_space<vmem>>, vector<1x1x2x128xf32>,
    return
  }
  func.func @transform_0(%arg0: i32, %arg1: i32) -> (i32, i32, i32, i32) {
    %c0_i32 = arith.constant 0 : i32
    %c0_i32_0 = arith.constant 0 : i32
    %c0_i32_1 = arith.constant 0 : i32
    %c0_i32_2 = arith.constant 0 : i32
    return %arg0, %c0_i32, %c0_i32_0, %c0_i32_1 : i32, i32, i32, i32
  }
  func.func @transform_1(%arg0: i32, %arg1: i32) -> (i32, i32, i32) {
    %c0_i32 = arith.constant 0 : i32
    %c0_i32_0 = arith.constant 0 : i32
    %c0_i32_1 = arith.constant 0 : i32
    %c0_i32_2 = arith.constant 0 : i32
    return %c0_i32, %c0_i32_0, %c0_i32_1 : i32, i32, i32
  }
  func.func @transform_2(%arg0: i32, %arg1: i32) -> (i32, i32, i32) {
    %c0_i32 = arith.constant 0 : i32
    %c0_i32_0 = arith.constant 0 : i32
    return %arg0, %arg1, %c0_i32 : i32, i32, i32
  }
  func.func @transform_3(%arg0: i32, %arg1: i32) -> (i32, i32, i32, i32) {
    %c0_i32 = arith.constant 0 : i32
    %c0_i32_0 = arith.constant 0 : i32
    %c0_i32_1 = arith.constant 0 : i32
    return %arg0, %arg1, %c0_i32, %c0_i32_0 : i32, i32, i32, i32
  }
}

module attributes {stable_mosaic.version = 11 : i64} {
  func.func @_bn_act_kernel(%arg0: i32, %arg1: i32, %arg2: memref<1x256x128xbf16, #tpu.memory_space<vmem>>, %arg3: memref<2x128xf32, #tpu.memory_space<vmem>>, %arg4: memref<1x256x128xbf16, #tpu.memory_space<vmem>>) attributes {dimension_semantics = [#tpu.dimension_semantics<parallel>, #tpu.dimension_semantics<parallel>], iteration_bounds = array<i64: 2, 1>, scalar_prefetch = 0 : i64, scratch_operands = 0 : i64, tpu.core_type = #tpu.core_type<tc>, window_params = [{transform_indices = @transform_0, window_bounds = array<i64: 1, 256, 128>}, {pipeline_mode = #tpu.pipeline_mode<synchronous>, transform_indices = @transform_1, window_bounds = array<i64: 2, 128>}, {transform_indices = @transform_2, window_bounds = array<i64: 1, 256, 128>}]} {
    %c0 = arith.constant 0 : index
    %c0_0 = arith.constant 0 : index
    %c0_1 = arith.constant 0 : index
    %0 = vector.load %arg2[%c0, %c0_0, %c0_1] : memref<1x256x128xbf16, #tpu.memory_space<vmem>>, vector<1x256x128xbf16>
    %1 = vector.shape_cast %0 : vector<1x256x128xbf16> to vector<256x128xbf16>
    %2 = arith.extf %1 : vector<256x128xbf16> to vector<256x128xf32>
    %c0_2 = arith.constant 0 : index
    %c0_3 = arith.constant 0 : index
    %3 = vector.load %arg3[%c0_2, %c0_3] : memref<2x128xf32, #tpu.memory_space<vmem>>, vector<1x128xf32>
    %4 = vector.broadcast %3 : vector<1x128xf32> to vector<256x128xf32>
    %5 = arith.subf %2, %4 : vector<256x128xf32>
    %c1 = arith.constant 1 : index
    %c0_4 = arith.constant 0 : index
    %6 = vector.load %arg3[%c1, %c0_4] : memref<2x128xf32, #tpu.memory_space<vmem>>, vector<1x128xf32>
    %7 = vector.broadcast %6 : vector<1x128xf32> to vector<256x128xf32>
    %8 = arith.mulf %5, %7 : vector<256x128xf32>
    %cst = arith.constant 0.000000e+00 : f32
    %9 = vector.broadcast %cst : f32 to vector<256x128xf32>
    %10 = arith.cmpf oge, %8, %9 : vector<256x128xf32>
    %cst_5 = arith.constant 2.000000e-01 : f32
    %11 = vector.broadcast %cst_5 : f32 to vector<256x128xf32>
    %12 = arith.mulf %11, %8 : vector<256x128xf32>
    %13 = arith.select %10, %8, %12 : vector<256x128xi1>, vector<256x128xf32>
    %14 = arith.truncf %13 : vector<256x128xf32> to vector<256x128xbf16>
    %c0_6 = arith.constant 0 : index
    %c0_7 = arith.constant 0 : index
    %c0_8 = arith.constant 0 : index
    %15 = vector.load %arg4[%c0_6, %c0_7, %c0_8] : memref<1x256x128xbf16, #tpu.memory_space<vmem>>, vector<1x256x128xbf16>
    %16 = vector.shape_cast %15 : vector<1x256x128xbf16> to vector<256x128xbf16>
    %17 = vector.shape_cast %14 : vector<256x128xbf16> to vector<1x256x128xbf16>
    tpu.vector_store %arg4[%c0_6, %c0_7, %c0_8], %17 {strides = array<i32>} : memref<1x256x128xbf16, #tpu.memory_space<vmem>>, vector<1x256x128xbf16>,
    return
  }
  func.func @transform_0(%arg0: i32, %arg1: i32) -> (i32, i32, i32) {
    %c0_i32 = arith.constant 0 : i32
    %c0_i32_0 = arith.constant 0 : i32
    return %arg0, %arg1, %c0_i32 : i32, i32, i32
  }
  func.func @transform_1(%arg0: i32, %arg1: i32) -> (i32, i32) {
    %c0_i32 = arith.constant 0 : i32
    %c0_i32_0 = arith.constant 0 : i32
    %c0_i32_1 = arith.constant 0 : i32
    return %c0_i32, %c0_i32_0 : i32, i32
  }
  func.func @transform_2(%arg0: i32, %arg1: i32) -> (i32, i32, i32) {
    %c0_i32 = arith.constant 0 : i32
    %c0_i32_0 = arith.constant 0 : i32
    return %arg0, %arg1, %c0_i32 : i32, i32, i32
  }
}

module attributes {stable_mosaic.version = 11 : i64} {
  func.func @_conv_stats_kernel(%arg0: i32, %arg1: i32, %arg2: memref<1x9x8x128xbf16, #tpu.memory_space<vmem>>, %arg3: memref<2x128x128xbf16, #tpu.memory_space<vmem>>, %arg4: memref<1x64x128xbf16, #tpu.memory_space<vmem>>, %arg5: memref<1x1x2x128xf32, #tpu.memory_space<vmem>>) attributes {dimension_semantics = [#tpu.dimension_semantics<parallel>, #tpu.dimension_semantics<parallel>], iteration_bounds = array<i64: 2, 1>, scalar_prefetch = 0 : i64, scratch_operands = 0 : i64, tpu.core_type = #tpu.core_type<tc>, window_params = [{transform_indices = @transform_0, window_bounds = array<i64: 1, 9, 8, 128>}, {pipeline_mode = #tpu.pipeline_mode<synchronous>, transform_indices = @transform_1, window_bounds = array<i64: 2, 128, 128>}, {transform_indices = @transform_2, window_bounds = array<i64: 1, 64, 128>}, {transform_indices = @transform_3, window_bounds = array<i64: 1, 1, 2, 128>}]} {
    %c8_i32 = arith.constant 8 : i32
    %0 = arith.muli %arg1, %c8_i32 : i32
    %1 = tpu.assume_multiple %0, 8 : i32
    %cst = arith.constant 0.000000e+00 : f32
    %2 = vector.broadcast %cst : f32 to vector<64x128xf32>
    %c0_i32 = arith.constant 0 : i32
    %3 = arith.addi %1, %c0_i32 : i32
    %c0 = arith.constant 0 : index
    %4 = arith.index_cast %3 : i32 to index
    %c0_0 = arith.constant 0 : index
    %c0_1 = arith.constant 0 : index
    %5 = vector.load %arg2[%c0, %4, %c0_0, %c0_1] : memref<1x9x8x128xbf16, #tpu.memory_space<vmem>>, vector<1x8x8x128xbf16>
    %6 = vector.shape_cast %5 : vector<1x8x8x128xbf16> to vector<8x8x128xbf16>
    %7 = vector.shape_cast %6 : vector<8x8x128xbf16> to vector<64x128xbf16>
    %c0_2 = arith.constant 0 : index
    %c0_3 = arith.constant 0 : index
    %c0_4 = arith.constant 0 : index
    %8 = vector.load %arg3[%c0_2, %c0_3, %c0_4] : memref<2x128x128xbf16, #tpu.memory_space<vmem>>, vector<1x128x128xbf16>
    %9 = vector.shape_cast %8 : vector<1x128x128xbf16> to vector<128x128xbf16>
    %cst_5 = arith.constant dense<0.000000e+00> : vector<64x128xf32>
    %10 = tpu.matmul %7, %9, %cst_5 {dimension_numbers = #tpu.dot_dimension_numbers<[1], [0], [0], [1], [0, 0, 1, 1], [], []>} : vector<64x128xbf16>, vector<128x128xbf16>, vector<64x128xf32> -> vector<64x128xf32>
    %11 = arith.addf %2, %10 : vector<64x128xf32>
    %c1_i32 = arith.constant 1 : i32
    %12 = arith.addi %1, %c1_i32 : i32
    %c0_6 = arith.constant 0 : index
    %13 = arith.index_cast %12 : i32 to index
    %c0_7 = arith.constant 0 : index
    %c0_8 = arith.constant 0 : index
    %14 = vector.load %arg2[%c0_6, %13, %c0_7, %c0_8] : memref<1x9x8x128xbf16, #tpu.memory_space<vmem>>, vector<1x8x8x128xbf16>
    %15 = vector.shape_cast %14 : vector<1x8x8x128xbf16> to vector<8x8x128xbf16>
    %16 = vector.shape_cast %15 : vector<8x8x128xbf16> to vector<64x128xbf16>
    %c1 = arith.constant 1 : index
    %c0_9 = arith.constant 0 : index
    %c0_10 = arith.constant 0 : index
    %17 = vector.load %arg3[%c1, %c0_9, %c0_10] : memref<2x128x128xbf16, #tpu.memory_space<vmem>>, vector<1x128x128xbf16>
    %18 = vector.shape_cast %17 : vector<1x128x128xbf16> to vector<128x128xbf16>
    %cst_11 = arith.constant dense<0.000000e+00> : vector<64x128xf32>
    %19 = tpu.matmul %16, %18, %cst_11 {dimension_numbers = #tpu.dot_dimension_numbers<[1], [0], [0], [1], [0, 0, 1, 1], [], []>} : vector<64x128xbf16>, vector<128x128xbf16>, vector<64x128xf32> -> vector<64x128xf32>
    %20 = arith.addf %11, %19 : vector<64x128xf32>
    %21 = arith.truncf %20 : vector<64x128xf32> to vector<64x128xbf16>
    %c0_12 = arith.constant 0 : index
    %c0_13 = arith.constant 0 : index
    %c0_14 = arith.constant 0 : index
    %22 = vector.load %arg4[%c0_12, %c0_13, %c0_14] : memref<1x64x128xbf16, #tpu.memory_space<vmem>>, vector<1x64x128xbf16>
    %23 = vector.shape_cast %22 : vector<1x64x128xbf16> to vector<64x128xbf16>
    %24 = vector.shape_cast %21 : vector<64x128xbf16> to vector<1x64x128xbf16>
    tpu.vector_store %arg4[%c0_12, %c0_13, %c0_14], %24 {strides = array<i32>} : memref<1x64x128xbf16, #tpu.memory_space<vmem>>, vector<1x64x128xbf16>,
    %cst_15 = arith.constant dense<0.000000e+00> : vector<128xf32>
    %25 = vector.multi_reduction <add>, %20, %cst_15 [0] : vector<64x128xf32> to vector<128xf32>
    %26 = vector.shape_cast %25 : vector<128xf32> to vector<1x128xf32>
    %27 = arith.mulf %20, %20 : vector<64x128xf32>
    %cst_16 = arith.constant dense<0.000000e+00> : vector<128xf32>
    %28 = vector.multi_reduction <add>, %27, %cst_16 [0] : vector<64x128xf32> to vector<128xf32>
    %29 = vector.shape_cast %28 : vector<128xf32> to vector<1x128xf32>
    %30 = tpu.concatenate %26, %29 in 0 : vector<1x128xf32>, vector<1x128xf32> -> vector<2x128xf32>
    %c0_17 = arith.constant 0 : index
    %c0_18 = arith.constant 0 : index
    %c0_19 = arith.constant 0 : index
    %c0_20 = arith.constant 0 : index
    %31 = vector.load %arg5[%c0_17, %c0_18, %c0_19, %c0_20] : memref<1x1x2x128xf32, #tpu.memory_space<vmem>>, vector<1x1x2x128xf32>
    %32 = vector.shape_cast %31 : vector<1x1x2x128xf32> to vector<2x128xf32>
    %33 = vector.shape_cast %30 : vector<2x128xf32> to vector<1x1x2x128xf32>
    tpu.vector_store %arg5[%c0_17, %c0_18, %c0_19, %c0_20], %33 {strides = array<i32>} : memref<1x1x2x128xf32, #tpu.memory_space<vmem>>, vector<1x1x2x128xf32>,
    return
  }
  func.func @transform_0(%arg0: i32, %arg1: i32) -> (i32, i32, i32, i32) {
    %c0_i32 = arith.constant 0 : i32
    %c0_i32_0 = arith.constant 0 : i32
    %c0_i32_1 = arith.constant 0 : i32
    %c0_i32_2 = arith.constant 0 : i32
    return %arg0, %c0_i32, %c0_i32_0, %c0_i32_1 : i32, i32, i32, i32
  }
  func.func @transform_1(%arg0: i32, %arg1: i32) -> (i32, i32, i32) {
    %c0_i32 = arith.constant 0 : i32
    %c0_i32_0 = arith.constant 0 : i32
    %c0_i32_1 = arith.constant 0 : i32
    %c0_i32_2 = arith.constant 0 : i32
    return %c0_i32, %c0_i32_0, %c0_i32_1 : i32, i32, i32
  }
  func.func @transform_2(%arg0: i32, %arg1: i32) -> (i32, i32, i32) {
    %c0_i32 = arith.constant 0 : i32
    %c0_i32_0 = arith.constant 0 : i32
    return %arg0, %arg1, %c0_i32 : i32, i32, i32
  }
  func.func @transform_3(%arg0: i32, %arg1: i32) -> (i32, i32, i32, i32) {
    %c0_i32 = arith.constant 0 : i32
    %c0_i32_0 = arith.constant 0 : i32
    %c0_i32_1 = arith.constant 0 : i32
    return %arg0, %arg1, %c0_i32, %c0_i32_0 : i32, i32, i32, i32
  }
}

module attributes {stable_mosaic.version = 11 : i64} {
  func.func @_bn_act_kernel(%arg0: i32, %arg1: i32, %arg2: memref<1x64x128xbf16, #tpu.memory_space<vmem>>, %arg3: memref<2x128xf32, #tpu.memory_space<vmem>>, %arg4: memref<1x64x128xbf16, #tpu.memory_space<vmem>>) attributes {dimension_semantics = [#tpu.dimension_semantics<parallel>, #tpu.dimension_semantics<parallel>], iteration_bounds = array<i64: 2, 1>, scalar_prefetch = 0 : i64, scratch_operands = 0 : i64, tpu.core_type = #tpu.core_type<tc>, window_params = [{transform_indices = @transform_0, window_bounds = array<i64: 1, 64, 128>}, {pipeline_mode = #tpu.pipeline_mode<synchronous>, transform_indices = @transform_1, window_bounds = array<i64: 2, 128>}, {transform_indices = @transform_2, window_bounds = array<i64: 1, 64, 128>}]} {
    %c0 = arith.constant 0 : index
    %c0_0 = arith.constant 0 : index
    %c0_1 = arith.constant 0 : index
    %0 = vector.load %arg2[%c0, %c0_0, %c0_1] : memref<1x64x128xbf16, #tpu.memory_space<vmem>>, vector<1x64x128xbf16>
    %1 = vector.shape_cast %0 : vector<1x64x128xbf16> to vector<64x128xbf16>
    %2 = arith.extf %1 : vector<64x128xbf16> to vector<64x128xf32>
    %c0_2 = arith.constant 0 : index
    %c0_3 = arith.constant 0 : index
    %3 = vector.load %arg3[%c0_2, %c0_3] : memref<2x128xf32, #tpu.memory_space<vmem>>, vector<1x128xf32>
    %4 = vector.broadcast %3 : vector<1x128xf32> to vector<64x128xf32>
    %5 = arith.subf %2, %4 : vector<64x128xf32>
    %c1 = arith.constant 1 : index
    %c0_4 = arith.constant 0 : index
    %6 = vector.load %arg3[%c1, %c0_4] : memref<2x128xf32, #tpu.memory_space<vmem>>, vector<1x128xf32>
    %7 = vector.broadcast %6 : vector<1x128xf32> to vector<64x128xf32>
    %8 = arith.mulf %5, %7 : vector<64x128xf32>
    %cst = arith.constant 0.000000e+00 : f32
    %9 = vector.broadcast %cst : f32 to vector<64x128xf32>
    %10 = arith.cmpf oge, %8, %9 : vector<64x128xf32>
    %cst_5 = arith.constant 2.000000e-01 : f32
    %11 = vector.broadcast %cst_5 : f32 to vector<64x128xf32>
    %12 = arith.mulf %11, %8 : vector<64x128xf32>
    %13 = arith.select %10, %8, %12 : vector<64x128xi1>, vector<64x128xf32>
    %14 = arith.truncf %13 : vector<64x128xf32> to vector<64x128xbf16>
    %c0_6 = arith.constant 0 : index
    %c0_7 = arith.constant 0 : index
    %c0_8 = arith.constant 0 : index
    %15 = vector.load %arg4[%c0_6, %c0_7, %c0_8] : memref<1x64x128xbf16, #tpu.memory_space<vmem>>, vector<1x64x128xbf16>
    %16 = vector.shape_cast %15 : vector<1x64x128xbf16> to vector<64x128xbf16>
    %17 = vector.shape_cast %14 : vector<64x128xbf16> to vector<1x64x128xbf16>
    tpu.vector_store %arg4[%c0_6, %c0_7, %c0_8], %17 {strides = array<i32>} : memref<1x64x128xbf16, #tpu.memory_space<vmem>>, vector<1x64x128xbf16>,
    return
  }
  func.func @transform_0(%arg0: i32, %arg1: i32) -> (i32, i32, i32) {
    %c0_i32 = arith.constant 0 : i32
    %c0_i32_0 = arith.constant 0 : i32
    return %arg0, %arg1, %c0_i32 : i32, i32, i32
  }
  func.func @transform_1(%arg0: i32, %arg1: i32) -> (i32, i32) {
    %c0_i32 = arith.constant 0 : i32
    %c0_i32_0 = arith.constant 0 : i32
    %c0_i32_1 = arith.constant 0 : i32
    return %c0_i32, %c0_i32_0 : i32, i32
  }
  func.func @transform_2(%arg0: i32, %arg1: i32) -> (i32, i32, i32) {
    %c0_i32 = arith.constant 0 : i32
    %c0_i32_0 = arith.constant 0 : i32
    return %arg0, %arg1, %c0_i32 : i32, i32, i32
  }
}

module attributes {stable_mosaic.version = 11 : i64} {
  func.func @_conv_stats_kernel(%arg0: i32, %arg1: i32, %arg2: memref<1x5x8x256xbf16, #tpu.memory_space<vmem>>, %arg3: memref<2x256x128xbf16, #tpu.memory_space<vmem>>, %arg4: memref<1x32x128xbf16, #tpu.memory_space<vmem>>, %arg5: memref<1x1x2x128xf32, #tpu.memory_space<vmem>>) attributes {dimension_semantics = [#tpu.dimension_semantics<parallel>, #tpu.dimension_semantics<parallel>], iteration_bounds = array<i64: 2, 1>, scalar_prefetch = 0 : i64, scratch_operands = 0 : i64, tpu.core_type = #tpu.core_type<tc>, window_params = [{transform_indices = @transform_0, window_bounds = array<i64: 1, 5, 8, 256>}, {pipeline_mode = #tpu.pipeline_mode<synchronous>, transform_indices = @transform_1, window_bounds = array<i64: 2, 256, 128>}, {transform_indices = @transform_2, window_bounds = array<i64: 1, 32, 128>}, {transform_indices = @transform_3, window_bounds = array<i64: 1, 1, 2, 128>}]} {
    %c4_i32 = arith.constant 4 : i32
    %0 = arith.muli %arg1, %c4_i32 : i32
    %1 = tpu.assume_multiple %0, 4 : i32
    %cst = arith.constant 0.000000e+00 : f32
    %2 = vector.broadcast %cst : f32 to vector<32x128xf32>
    %c0_i32 = arith.constant 0 : i32
    %3 = arith.addi %1, %c0_i32 : i32
    %c0 = arith.constant 0 : index
    %4 = arith.index_cast %3 : i32 to index
    %c0_0 = arith.constant 0 : index
    %c0_1 = arith.constant 0 : index
    %5 = vector.load %arg2[%c0, %4, %c0_0, %c0_1] : memref<1x5x8x256xbf16, #tpu.memory_space<vmem>>, vector<1x4x8x256xbf16>
    %6 = vector.shape_cast %5 : vector<1x4x8x256xbf16> to vector<4x8x256xbf16>
    %7 = vector.shape_cast %6 : vector<4x8x256xbf16> to vector<32x256xbf16>
    %c0_2 = arith.constant 0 : index
    %c0_3 = arith.constant 0 : index
    %c0_4 = arith.constant 0 : index
    %8 = vector.load %arg3[%c0_2, %c0_3, %c0_4] : memref<2x256x128xbf16, #tpu.memory_space<vmem>>, vector<1x256x128xbf16>
    %9 = vector.shape_cast %8 : vector<1x256x128xbf16> to vector<256x128xbf16>
    %cst_5 = arith.constant dense<0.000000e+00> : vector<32x128xf32>
    %10 = tpu.matmul %7, %9, %cst_5 {dimension_numbers = #tpu.dot_dimension_numbers<[1], [0], [0], [1], [0, 0, 1, 1], [], []>} : vector<32x256xbf16>, vector<256x128xbf16>, vector<32x128xf32> -> vector<32x128xf32>
    %11 = arith.addf %2, %10 : vector<32x128xf32>
    %c1_i32 = arith.constant 1 : i32
    %12 = arith.addi %1, %c1_i32 : i32
    %c0_6 = arith.constant 0 : index
    %13 = arith.index_cast %12 : i32 to index
    %c0_7 = arith.constant 0 : index
    %c0_8 = arith.constant 0 : index
    %14 = vector.load %arg2[%c0_6, %13, %c0_7, %c0_8] : memref<1x5x8x256xbf16, #tpu.memory_space<vmem>>, vector<1x4x8x256xbf16>
    %15 = vector.shape_cast %14 : vector<1x4x8x256xbf16> to vector<4x8x256xbf16>
    %16 = vector.shape_cast %15 : vector<4x8x256xbf16> to vector<32x256xbf16>
    %c1 = arith.constant 1 : index
    %c0_9 = arith.constant 0 : index
    %c0_10 = arith.constant 0 : index
    %17 = vector.load %arg3[%c1, %c0_9, %c0_10] : memref<2x256x128xbf16, #tpu.memory_space<vmem>>, vector<1x256x128xbf16>
    %18 = vector.shape_cast %17 : vector<1x256x128xbf16> to vector<256x128xbf16>
    %cst_11 = arith.constant dense<0.000000e+00> : vector<32x128xf32>
    %19 = tpu.matmul %16, %18, %cst_11 {dimension_numbers = #tpu.dot_dimension_numbers<[1], [0], [0], [1], [0, 0, 1, 1], [], []>} : vector<32x256xbf16>, vector<256x128xbf16>, vector<32x128xf32> -> vector<32x128xf32>
    %20 = arith.addf %11, %19 : vector<32x128xf32>
    %21 = arith.truncf %20 : vector<32x128xf32> to vector<32x128xbf16>
    %c0_12 = arith.constant 0 : index
    %c0_13 = arith.constant 0 : index
    %c0_14 = arith.constant 0 : index
    %22 = vector.load %arg4[%c0_12, %c0_13, %c0_14] : memref<1x32x128xbf16, #tpu.memory_space<vmem>>, vector<1x32x128xbf16>
    %23 = vector.shape_cast %22 : vector<1x32x128xbf16> to vector<32x128xbf16>
    %24 = vector.shape_cast %21 : vector<32x128xbf16> to vector<1x32x128xbf16>
    tpu.vector_store %arg4[%c0_12, %c0_13, %c0_14], %24 {strides = array<i32>} : memref<1x32x128xbf16, #tpu.memory_space<vmem>>, vector<1x32x128xbf16>,
    %cst_15 = arith.constant dense<0.000000e+00> : vector<128xf32>
    %25 = vector.multi_reduction <add>, %20, %cst_15 [0] : vector<32x128xf32> to vector<128xf32>
    %26 = vector.shape_cast %25 : vector<128xf32> to vector<1x128xf32>
    %27 = arith.mulf %20, %20 : vector<32x128xf32>
    %cst_16 = arith.constant dense<0.000000e+00> : vector<128xf32>
    %28 = vector.multi_reduction <add>, %27, %cst_16 [0] : vector<32x128xf32> to vector<128xf32>
    %29 = vector.shape_cast %28 : vector<128xf32> to vector<1x128xf32>
    %30 = tpu.concatenate %26, %29 in 0 : vector<1x128xf32>, vector<1x128xf32> -> vector<2x128xf32>
    %c0_17 = arith.constant 0 : index
    %c0_18 = arith.constant 0 : index
    %c0_19 = arith.constant 0 : index
    %c0_20 = arith.constant 0 : index
    %31 = vector.load %arg5[%c0_17, %c0_18, %c0_19, %c0_20] : memref<1x1x2x128xf32, #tpu.memory_space<vmem>>, vector<1x1x2x128xf32>
    %32 = vector.shape_cast %31 : vector<1x1x2x128xf32> to vector<2x128xf32>
    %33 = vector.shape_cast %30 : vector<2x128xf32> to vector<1x1x2x128xf32>
    tpu.vector_store %arg5[%c0_17, %c0_18, %c0_19, %c0_20], %33 {strides = array<i32>} : memref<1x1x2x128xf32, #tpu.memory_space<vmem>>, vector<1x1x2x128xf32>,
    return
  }
  func.func @transform_0(%arg0: i32, %arg1: i32) -> (i32, i32, i32, i32) {
    %c0_i32 = arith.constant 0 : i32
    %c0_i32_0 = arith.constant 0 : i32
    %c0_i32_1 = arith.constant 0 : i32
    %c0_i32_2 = arith.constant 0 : i32
    return %arg0, %c0_i32, %c0_i32_0, %c0_i32_1 : i32, i32, i32, i32
  }
  func.func @transform_1(%arg0: i32, %arg1: i32) -> (i32, i32, i32) {
    %c0_i32 = arith.constant 0 : i32
    %c0_i32_0 = arith.constant 0 : i32
    %c0_i32_1 = arith.constant 0 : i32
    %c0_i32_2 = arith.constant 0 : i32
    return %c0_i32, %c0_i32_0, %c0_i32_1 : i32, i32, i32
  }
  func.func @transform_2(%arg0: i32, %arg1: i32) -> (i32, i32, i32) {
    %c0_i32 = arith.constant 0 : i32
    %c0_i32_0 = arith.constant 0 : i32
    return %arg0, %arg1, %c0_i32 : i32, i32, i32
  }
  func.func @transform_3(%arg0: i32, %arg1: i32) -> (i32, i32, i32, i32) {
    %c0_i32 = arith.constant 0 : i32
    %c0_i32_0 = arith.constant 0 : i32
    %c0_i32_1 = arith.constant 0 : i32
    return %arg0, %arg1, %c0_i32, %c0_i32_0 : i32, i32, i32, i32
  }
}

module attributes {stable_mosaic.version = 11 : i64} {
  func.func @_bn_act_kernel(%arg0: i32, %arg1: i32, %arg2: memref<1x32x128xbf16, #tpu.memory_space<vmem>>, %arg3: memref<2x128xf32, #tpu.memory_space<vmem>>, %arg4: memref<1x32x128xbf16, #tpu.memory_space<vmem>>) attributes {dimension_semantics = [#tpu.dimension_semantics<parallel>, #tpu.dimension_semantics<parallel>], iteration_bounds = array<i64: 2, 1>, scalar_prefetch = 0 : i64, scratch_operands = 0 : i64, tpu.core_type = #tpu.core_type<tc>, window_params = [{transform_indices = @transform_0, window_bounds = array<i64: 1, 32, 128>}, {pipeline_mode = #tpu.pipeline_mode<synchronous>, transform_indices = @transform_1, window_bounds = array<i64: 2, 128>}, {transform_indices = @transform_2, window_bounds = array<i64: 1, 32, 128>}]} {
    %c0 = arith.constant 0 : index
    %c0_0 = arith.constant 0 : index
    %c0_1 = arith.constant 0 : index
    %0 = vector.load %arg2[%c0, %c0_0, %c0_1] : memref<1x32x128xbf16, #tpu.memory_space<vmem>>, vector<1x32x128xbf16>
    %1 = vector.shape_cast %0 : vector<1x32x128xbf16> to vector<32x128xbf16>
    %2 = arith.extf %1 : vector<32x128xbf16> to vector<32x128xf32>
    %c0_2 = arith.constant 0 : index
    %c0_3 = arith.constant 0 : index
    %3 = vector.load %arg3[%c0_2, %c0_3] : memref<2x128xf32, #tpu.memory_space<vmem>>, vector<1x128xf32>
    %4 = vector.broadcast %3 : vector<1x128xf32> to vector<32x128xf32>
    %5 = arith.subf %2, %4 : vector<32x128xf32>
    %c1 = arith.constant 1 : index
    %c0_4 = arith.constant 0 : index
    %6 = vector.load %arg3[%c1, %c0_4] : memref<2x128xf32, #tpu.memory_space<vmem>>, vector<1x128xf32>
    %7 = vector.broadcast %6 : vector<1x128xf32> to vector<32x128xf32>
    %8 = arith.mulf %5, %7 : vector<32x128xf32>
    %cst = arith.constant 0.000000e+00 : f32
    %9 = vector.broadcast %cst : f32 to vector<32x128xf32>
    %10 = arith.cmpf oge, %8, %9 : vector<32x128xf32>
    %cst_5 = arith.constant 2.000000e-01 : f32
    %11 = vector.broadcast %cst_5 : f32 to vector<32x128xf32>
    %12 = arith.mulf %11, %8 : vector<32x128xf32>
    %13 = arith.select %10, %8, %12 : vector<32x128xi1>, vector<32x128xf32>
    %14 = arith.truncf %13 : vector<32x128xf32> to vector<32x128xbf16>
    %c0_6 = arith.constant 0 : index
    %c0_7 = arith.constant 0 : index
    %c0_8 = arith.constant 0 : index
    %15 = vector.load %arg4[%c0_6, %c0_7, %c0_8] : memref<1x32x128xbf16, #tpu.memory_space<vmem>>, vector<1x32x128xbf16>
    %16 = vector.shape_cast %15 : vector<1x32x128xbf16> to vector<32x128xbf16>
    %17 = vector.shape_cast %14 : vector<32x128xbf16> to vector<1x32x128xbf16>
    tpu.vector_store %arg4[%c0_6, %c0_7, %c0_8], %17 {strides = array<i32>} : memref<1x32x128xbf16, #tpu.memory_space<vmem>>, vector<1x32x128xbf16>,
    return
  }
  func.func @transform_0(%arg0: i32, %arg1: i32) -> (i32, i32, i32) {
    %c0_i32 = arith.constant 0 : i32
    %c0_i32_0 = arith.constant 0 : i32
    return %arg0, %arg1, %c0_i32 : i32, i32, i32
  }
  func.func @transform_1(%arg0: i32, %arg1: i32) -> (i32, i32) {
    %c0_i32 = arith.constant 0 : i32
    %c0_i32_0 = arith.constant 0 : i32
    %c0_i32_1 = arith.constant 0 : i32
    return %c0_i32, %c0_i32_0 : i32, i32
  }
  func.func @transform_2(%arg0: i32, %arg1: i32) -> (i32, i32, i32) {
    %c0_i32 = arith.constant 0 : i32
    %c0_i32_0 = arith.constant 0 : i32
    return %arg0, %arg1, %c0_i32 : i32, i32, i32
  }
}

</mosaic_0001>

<bundles_post_ra>
// kernel: discriminator_forward.7
= control target key start
LH: loop header
LB: loop body
LE: loop exit
PB: predicated region body
PF: predicated region fallthrough
CT: control target
= control target key end

     0   :  { %s4245_s9 = smov 0   ;;  %s4247_s10 = smov 0   ;;  %s4618_s0 = inlined_call_operand.vmem [shape: bf16[2,33,32,24], index: 0, kind: input, shape index: {}]   ;;  %s4619_s1 = inlined_call_operand.vmem [shape: bf16[2,24,128], index: 1, kind: input, shape index: {}]   ;;  %s4620_s2 = inlined_call_operand.vmem [shape: bf16[2,1024,128], index: 2, kind: output, shape index: {}]  }
   0x1   :  { %s4249_s11 = smov 0  }
   0x2 LB: > { %s24_s12 = sadd.s32 1, %s4224_s10  ;;  %p2878_p0 = scmp.ge.s32.totalorder %s4228_s11, 1  ;;  %s4228_s11 = sphi %s4249_s11, %s12_s11   ;;  %s4224_s10 = sphi %s4247_s10, %s4622_s10   ;;  %s4220_s9 = sphi %s4245_s9, %s4621_s9  }
   0x3   : > { %p26_p1 = scmp.ge.s32.totalorder %s24_s12, 2  ;;  %p126_p2 = scmp.lt.s32.totalorder %s4228_s11, 3 }
   0x5   : > { %s4624_s12 = smov (%p26_p1, %s24_s12), 0  ;;  %p127_p3 = pnand %p2878_p0, %p126_p2 }
   0x6   : > { %p152_p4 = scmp.lt.s32.totalorder (!%p127_p3), %s4220_s9, 1 }
   0x7   : > { %130 = sbr.rel (%p127_p3) target bundleno = 670 (0x29e), region = 28 }
   0xc   : > { %v3012_v0 = vld [vmem:[%s4619_s1 + $0x14] sm:$0xf]  ;;  %v302_v1 = vld [vmem:[%s4619_s1 + $0x8] sm:$0xf]  ;;  %vm961_vm0 = vcmask 1043456   ;;  %s4626_s9 = smov (!%p152_p4, %s4220_s9), 1 }
   0xd   : > { %v764_v2 = vunpack.c.l.b16 %v3012_v0  ;;  %v1619_v3 = vunpack.c.l.b16 %v302_v1  ;;  %s4181_s17 = smul.u32 528, %s4626_s9  ;;  %v3793_v8 = vld [vmem:[%s4619_s1 + $0xc] sm:$0xff]  ;;  %v3728_v9 = vld [vmem:[%s4619_s1] sm:$0xff]  ;;  %vm768_vm1 = vcmask 195584   ;;  %s3663_s25 = sshll.u32 %s4626_s9, 9 }
   0xe   : > { %s4359_s28 = scalar_lea.vmem %s4620_s2, %s3663_s25 }
   0xf   : > { %v766_v4 = vpack.c.b16 %v764_v2, %v764_v2  ;;  %v1621_v5 = vpack.c.b16 %v1619_v3, %v1619_v3  ;;  %s4281_s24 = scalar_lea.vmem %s4618_s0, %s4181_s17 }
  0x10   : > { %v3729_v10 = vld [vmem:[%s4281_s24 + $0x10] sm:$0xff]  ;;  %v3664_v12 = vld [vmem:[%s4281_s24] sm:$0xff]  ;;  %v3730_v14 = vld [vmem:[%s4281_s24 + $0x18] sm:$0xff] }
  0x11   : > { %v963_v6 = vsel %vm961_vm0, %v766_v4, 0  ;;  %v1816_v7 = vsel %vm961_vm0, %v1621_v5, 0  ;;  %v3761_v11 = vld [vmem:[%s4281_s24 + $0x110] sm:$0xff]  ;;  %v3696_v13 = vld [vmem:[%s4281_s24 + $0x100] sm:$0xff]  ;;  %v3762_v15 = vld [vmem:[%s4281_s24 + $0x118] sm:$0xff] }
  0x12   : > { %971 = vmatpush.bf16.msra.mxu0 %v963_v6  ;;  %4177 = vmatpush.bf16.msra.mxu2 %v963_v6  ;;  %v3665_v16 = vld [vmem:[%s4281_s24 + $0x8] sm:$0xff]  ;;  %v3731_v18 = vld [vmem:[%s4281_s24 + $0x20] sm:$0xff]  ;;  %v3666_v20 = vld [vmem:[%s4281_s24 + $0x10] sm:$0xff] }
  0x13   : > { %1824 = vmatpush.bf16.msra.mxu1 %v1816_v7  ;;  %4179 = vmatpush.bf16.msra.mxu3 %v1816_v7  ;;  %v3697_v17 = vld [vmem:[%s4281_s24 + $0x108] sm:$0xff]  ;;  %v3763_v19 = vld [vmem:[%s4281_s24 + $0x120] sm:$0xff]  ;;  %v3698_v21 = vld [vmem:[%s4281_s24 + $0x110] sm:$0xff] }
  0x14   : > { %v3732_v22 = vld [vmem:[%s4281_s24 + $0x28] sm:$0xff]  ;;  %v3667_v24 = vld [vmem:[%s4281_s24 + $0x18] sm:$0xff]  ;;  %v3733_v26 = vld [vmem:[%s4281_s24 + $0x30] sm:$0xff] }
  0x15   : > { %v3764_v23 = vld [vmem:[%s4281_s24 + $0x128] sm:$0xff]  ;;  %v3699_v25 = vld [vmem:[%s4281_s24 + $0x118] sm:$0xff]  ;;  %v3765_v27 = vld [vmem:[%s4281_s24 + $0x130] sm:$0xff] }
  0x16   : > { %972 = vmatpush.bf16.msra.mxu0 %v3793_v8  ;;  %4178 = vmatpush.bf16.msra.mxu2 %v3793_v8  ;;  %v3668_v28 = vld [vmem:[%s4281_s24 + $0x20] sm:$0xff]  ;;  %v3734_v30 = vld [vmem:[%s4281_s24 + $0x38] sm:$0xff]  ;;  %v3669_v32 = vld [vmem:[%s4281_s24 + $0x28] sm:$0xff] }
  0x17   : > { %1825 = vmatpush.bf16.msra.mxu1 %v3728_v9  ;;  %4180 = vmatpush.bf16.msra.mxu3 %v3728_v9  ;;  %v3700_v29 = vld [vmem:[%s4281_s24 + $0x120] sm:$0xff]  ;;  %v3766_v31 = vld [vmem:[%s4281_s24 + $0x138] sm:$0xff]  ;;  %v3701_v33 = vld [vmem:[%s4281_s24 + $0x128] sm:$0xff] }
  0x18   : > { %v3735_v34 = vld [vmem:[%s4281_s24 + $0x40] sm:$0xff]  ;;  %v3670_v36 = vld [vmem:[%s4281_s24 + $0x30] sm:$0xff]  ;;  %v3736_v38 = vld [vmem:[%s4281_s24 + $0x48] sm:$0xff] }
  0x19   : > { %3273 = vmatmul.msk.bf16.vlgmr.msra.gmra.mxu0 %vm768_vm1, %v3729_v10  ;;  %3305 = vmatmul.msk.bf16.vlgmr.msra.gmra.mxu2 %vm768_vm1, %v3761_v11  ;;  %v3767_v35 = vld [vmem:[%s4281_s24 + $0x140] sm:$0xff]  ;;  %v3702_v37 = vld [vmem:[%s4281_s24 + $0x130] sm:$0xff]  ;;  %v3768_v39 = vld [vmem:[%s4281_s24 + $0x148] sm:$0xff] }
  0x1a   : > { %3597 = vmatmul.msk.bf16.vlgmr.msra.gmra.mxu1 %vm768_vm1, %v3664_v12  ;;  %3629 = vmatmul.msk.bf16.vlgmr.msra.gmra.mxu3 %vm768_vm1, %v3696_v13  ;;  %v3671_v40 = vld [vmem:[%s4281_s24 + $0x38] sm:$0xff]  ;;  %v3737_v42 = vld [vmem:[%s4281_s24 + $0x50] sm:$0xff]  ;;  %v3672_v45 = vld [vmem:[%s4281_s24 + $0x40] sm:$0xff] }
  0x1b   : > { %v3703_v41 = vld [vmem:[%s4281_s24 + $0x138] sm:$0xff]  ;;  %v3769_v43 = vld [vmem:[%s4281_s24 + $0x150] sm:$0xff]  ;;  %v3704_v46 = vld [vmem:[%s4281_s24 + $0x140] sm:$0xff] }
  0x1c   : > { %v3738_v62 = vld [vmem:[%s4281_s24 + $0x58] sm:$0xff]  ;;  %v3673_v3 = vld [vmem:[%s4281_s24 + $0x48] sm:$0xff] }
  0x1d   : > { %v3770_v63 = vld [vmem:[%s4281_s24 + $0x158] sm:$0xff]  ;;  %v3705_v4 = vld [vmem:[%s4281_s24 + $0x148] sm:$0xff] }
  0x29   : > { %3274 = vmatmul.msk.bf16.gmra.mxu0 %vm768_vm1, %v3730_v14  ;;  %3306 = vmatmul.msk.bf16.gmra.mxu2 %vm768_vm1, %v3762_v15 }
  0x2a   : > { %3598 = vmatmul.msk.bf16.gmra.mxu1 %vm768_vm1, %v3665_v16  ;;  %3630 = vmatmul.msk.bf16.gmra.mxu3 %vm768_vm1, %v3697_v17 }
  0x39   : > { %3275 = vmatmul.msk.bf16.gmra.mxu0 %vm768_vm1, %v3731_v18  ;;  %3307 = vmatmul.msk.bf16.gmra.mxu2 %vm768_vm1, %v3763_v19 }
  0x3a   : > { %3599 = vmatmul.msk.bf16.gmra.mxu1 %vm768_vm1, %v3666_v20  ;;  %3631 = vmatmul.msk.bf16.gmra.mxu3 %vm768_vm1, %v3698_v21 }
  0x49   : > { %3276 = vmatmul.msk.bf16.gmra.mxu0 %vm768_vm1, %v3732_v22  ;;  %3308 = vmatmul.msk.bf16.gmra.mxu2 %vm768_vm1, %v3764_v23 }
  0x4a   : > { %3600 = vmatmul.msk.bf16.gmra.mxu1 %vm768_vm1, %v3667_v24  ;;  %3632 = vmatmul.msk.bf16.gmra.mxu3 %vm768_vm1, %v3699_v25  ;;  %v3739_v24 = vld [vmem:[%s4281_s24 + $0x60] sm:$0xff] }
  0x4b   : > { %v3771_v25 = vld [vmem:[%s4281_s24 + $0x160] sm:$0xff] }
  0x59   : > { %3277 = vmatmul.msk.bf16.gmra.mxu0 %vm768_vm1, %v3733_v26  ;;  %3309 = vmatmul.msk.bf16.gmra.mxu2 %vm768_vm1, %v3765_v27 }
  0x5a   : > { %3601 = vmatmul.msk.bf16.gmra.mxu1 %vm768_vm1, %v3668_v28  ;;  %3633 = vmatmul.msk.bf16.gmra.mxu3 %vm768_vm1, %v3700_v29  ;;  %v3674_v29 = vld [vmem:[%s4281_s24 + $0x50] sm:$0xff] }
  0x69   : > { %3278 = vmatmul.msk.bf16.gmra.mxu0 %vm768_vm1, %v3734_v30  ;;  %3310 = vmatmul.msk.bf16.gmra.mxu2 %vm768_vm1, %v3766_v31  ;;  %v3706_v30 = vld [vmem:[%s4281_s24 + $0x150] sm:$0xff] }
  0x6a   : > { %3602 = vmatmul.msk.bf16.gmra.mxu1 %vm768_vm1, %v3669_v32  ;;  %3634 = vmatmul.msk.bf16.gmra.mxu3 %vm768_vm1, %v3701_v33 }
  0x79   : > { %3279 = vmatmul.msk.bf16.gmra.mxu0 %vm768_vm1, %v3735_v34  ;;  %3311 = vmatmul.msk.bf16.gmra.mxu2 %vm768_vm1, %v3767_v35 }
  0x7a   : > { %3603 = vmatmul.msk.bf16.gmra.mxu1 %vm768_vm1, %v3670_v36  ;;  %3635 = vmatmul.msk.bf16.gmra.mxu3 %vm768_vm1, %v3702_v37 }
  0x89   : > { %3280 = vmatmul.msk.bf16.gmra.mxu0 %vm768_vm1, %v3736_v38  ;;  %3312 = vmatmul.msk.bf16.gmra.mxu2 %vm768_vm1, %v3768_v39 }
  0x8a   : > { %3604 = vmatmul.msk.bf16.gmra.mxu1 %vm768_vm1, %v3671_v40  ;;  %3636 = vmatmul.msk.bf16.gmra.mxu3 %vm768_vm1, %v3703_v41 }
  0x96   : > { %v974_v44 = vpop.f32.mrf.mxu0 }
  0x97   : > { %v1827_v47 = vpop.f32.mrf.mxu1 }
  0x98   : > { %v1828_v48 = vadd.f32 %v1827_v47, %v974_v44 }
  0x99   : > { %3281 = vmatmul.msk.bf16.gmra.mxu0 %vm768_vm1, %v3737_v42  ;;  %3313 = vmatmul.msk.bf16.gmra.mxu2 %vm768_vm1, %v3769_v43 }
  0x9a   : > { %3605 = vmatmul.msk.bf16.gmra.mxu1 %vm768_vm1, %v3672_v45  ;;  %3637 = vmatmul.msk.bf16.gmra.mxu3 %vm768_vm1, %v3704_v46  ;;  %v2275_v53 = vmul.f32 0.2, %v1828_v48  ;;  %vm2147_vm2 = vcmp.ge.f32.partialorder %v1828_v48, 0.0 }
  0x9c   : > { %v1134_v49 = vpop.f32.mrf.mxu2  ;;  %v2403_v57 = vsel %vm2147_vm2, %v1828_v48, %v2275_v53 }
  0x9d   : > { %v1987_v50 = vpop.f32.mrf.mxu3 }
  0x9e   : > { %v976_v51 = vpop.f32.mrf.mxu0  ;;  %v1988_v55 = vadd.f32 %v1987_v50, %v1134_v49  ;;  %v3740_v50 = vld [vmem:[%s4281_s24 + $0x68] sm:$0xff] }
  0x9f   : > { %v1829_v52 = vpop.f32.mrf.mxu1 }
  0xa0   : > { %v1830_v54 = vadd.f32 %v1829_v52, %v976_v51  ;;  %v2339_v0 = vmul.f32 0.2, %v1988_v55  ;;  %vm2211_vm4 = vcmp.ge.f32.partialorder %v1988_v55, 0.0  ;;  %v3772_v51 = vld [vmem:[%s4281_s24 + $0x168] sm:$0xff] }
  0xa2   : > { %vm2148_vm3 = vcmp.ge.f32.partialorder %v1830_v54, 0.0  ;;  %v2276_v56 = vmul.f32 0.2, %v1830_v54  ;;  %v2467_v7 = vsel %vm2211_vm4, %v1988_v55, %v2339_v0  ;;  %v3675_v55 = vld [vmem:[%s4281_s24 + $0x58] sm:$0xff] }
  0xa4   : > { %v2404_v58 = vsel %vm2148_vm3, %v1830_v54, %v2276_v56  ;;  %v1136_v59 = vpop.f32.mrf.mxu2  ;;  %v3707_v56 = vld [vmem:[%s4281_s24 + $0x158] sm:$0xff] }
  0xa5   : > { %v3797_v60 = vpack.c.bf16 %v2404_v58, %v2403_v57  ;;  %v1989_v61 = vpop.f32.mrf.mxu3 }
  0xa6   : > { %v1990_v1 = vadd.f32 %v1989_v61, %v1136_v59  ;;  %v979_v2 = vpop.f32.mrf.mxu0 }
  0xa7   : > { %3798 = vst [vmem:[%s4359_s28] sm:$0xff] %v3797_v60   ;;  %v1832_v5 = vpop.f32.mrf.mxu1 }
  0xa8   : > { %vm2212_vm5 = vcmp.ge.f32.partialorder %v1990_v1, 0.0  ;;  %v2340_v6 = vmul.f32 0.2, %v1990_v1  ;;  %v1833_v10 = vadd.f32 %v1832_v5, %v979_v2 }
  0xa9   : > { %3282 = vmatmul.msk.bf16.gmra.mxu0 %vm768_vm1, %v3738_v62  ;;  %3314 = vmatmul.msk.bf16.gmra.mxu2 %vm768_vm1, %v3770_v63 }
  0xaa   : > { %v2468_v8 = vsel %vm2212_vm5, %v1990_v1, %v2340_v6  ;;  %3606 = vmatmul.msk.bf16.gmra.mxu1 %vm768_vm1, %v3673_v3  ;;  %3638 = vmatmul.msk.bf16.gmra.mxu3 %vm768_vm1, %v3705_v4  ;;  %v2277_v15 = vmul.f32 0.2, %v1833_v10  ;;  %vm2149_vm6 = vcmp.ge.f32.partialorder %v1833_v10, 0.0 }
  0xab   : > { %v3957_v9 = vpack.c.bf16 %v2468_v8, %v2467_v7 }
  0xac   : > { %v1139_v11 = vpop.f32.mrf.mxu2  ;;  %v2405_v19 = vsel %vm2149_vm6, %v1833_v10, %v2277_v15 }
  0xad   : > { %4145 = vst [vmem:[%s4359_s28 + $0x100] sm:$0xff] %v3957_v9   ;;  %v1992_v12 = vpop.f32.mrf.mxu3 }
  0xae   : > { %v981_v13 = vpop.f32.mrf.mxu0  ;;  %v1993_v17 = vadd.f32 %v1992_v12, %v1139_v11  ;;  %v3741_v12 = vld [vmem:[%s4281_s24 + $0x70] sm:$0xff] }
  0xaf   : > { %v1834_v14 = vpop.f32.mrf.mxu1 }
  0xb0   : > { %v1835_v16 = vadd.f32 %v1834_v14, %v981_v13  ;;  %v2341_v26 = vmul.f32 0.2, %v1993_v17  ;;  %vm2213_vm8 = vcmp.ge.f32.partialorder %v1993_v17, 0.0  ;;  %v3773_v13 = vld [vmem:[%s4281_s24 + $0x170] sm:$0xff] }
  0xb2   : > { %vm2150_vm7 = vcmp.ge.f32.partialorder %v1835_v16, 0.0  ;;  %v2278_v18 = vmul.f32 0.2, %v1835_v16  ;;  %v2469_v33 = vsel %vm2213_vm8, %v1993_v17, %v2341_v26  ;;  %v3676_v17 = vld [vmem:[%s4281_s24 + $0x60] sm:$0xff] }
  0xb4   : > { %v2406_v20 = vsel %vm2150_vm7, %v1835_v16, %v2278_v18  ;;  %v1141_v21 = vpop.f32.mrf.mxu2  ;;  %v3708_v18 = vld [vmem:[%s4281_s24 + $0x160] sm:$0xff] }
  0xb5   : > { %v3802_v22 = vpack.c.bf16 %v2406_v20, %v2405_v19  ;;  %v1994_v23 = vpop.f32.mrf.mxu3 }
  0xb6   : > { %v1995_v27 = vadd.f32 %v1994_v23, %v1141_v21  ;;  %v984_v28 = vpop.f32.mrf.mxu0 }
  0xb7   : > { %4114 = vst [vmem:[%s4359_s28 + $0x8] sm:$0xff] %v3802_v22   ;;  %v1837_v31 = vpop.f32.mrf.mxu1 }
  0xb8   : > { %vm2214_vm9 = vcmp.ge.f32.partialorder %v1995_v27, 0.0  ;;  %v2342_v32 = vmul.f32 0.2, %v1995_v27  ;;  %v1838_v36 = vadd.f32 %v1837_v31, %v984_v28 }
  0xb9   : > { %3283 = vmatmul.msk.bf16.gmra.mxu0 %vm768_vm1, %v3739_v24  ;;  %3315 = vmatmul.msk.bf16.gmra.mxu2 %vm768_vm1, %v3771_v25 }
  0xba   : > { %v2470_v34 = vsel %vm2214_vm9, %v1995_v27, %v2342_v32  ;;  %3607 = vmatmul.msk.bf16.gmra.mxu1 %vm768_vm1, %v3674_v29  ;;  %3639 = vmatmul.msk.bf16.gmra.mxu3 %vm768_vm1, %v3706_v30  ;;  %v2279_v41 = vmul.f32 0.2, %v1838_v36  ;;  %vm2151_vm10 = vcmp.ge.f32.partialorder %v1838_v36, 0.0 }
  0xbb   : > { %v3962_v35 = vpack.c.bf16 %v2470_v34, %v2469_v33 }
  0xbc   : > { %v1144_v37 = vpop.f32.mrf.mxu2  ;;  %v2407_v45 = vsel %vm2151_vm10, %v1838_v36, %v2279_v41 }
  0xbd   : > { %4146 = vst [vmem:[%s4359_s28 + $0x108] sm:$0xff] %v3962_v35   ;;  %v1997_v38 = vpop.f32.mrf.mxu3 }
  0xbe   : > { %v986_v39 = vpop.f32.mrf.mxu0  ;;  %v1998_v43 = vadd.f32 %v1997_v38, %v1144_v37  ;;  %v3742_v38 = vld [vmem:[%s4281_s24 + $0x78] sm:$0xff] }
  0xbf   : > { %v1839_v40 = vpop.f32.mrf.mxu1 }
  0xc0   : > { %v1840_v42 = vadd.f32 %v1839_v40, %v986_v39  ;;  %v2343_v52 = vmul.f32 0.2, %v1998_v43  ;;  %vm2215_vm12 = vcmp.ge.f32.partialorder %v1998_v43, 0.0  ;;  %v3774_v39 = vld [vmem:[%s4281_s24 + $0x178] sm:$0xff] }
  0xc2   : > { %vm2152_vm11 = vcmp.ge.f32.partialorder %v1840_v42, 0.0  ;;  %v2280_v44 = vmul.f32 0.2, %v1840_v42  ;;  %v2471_v59 = vsel %vm2215_vm12, %v1998_v43, %v2343_v52  ;;  %v3677_v43 = vld [vmem:[%s4281_s24 + $0x68] sm:$0xff] }
  0xc4   : > { %v2408_v46 = vsel %vm2152_vm11, %v1840_v42, %v2280_v44  ;;  %v1146_v47 = vpop.f32.mrf.mxu2  ;;  %v3709_v44 = vld [vmem:[%s4281_s24 + $0x168] sm:$0xff] }
  0xc5   : > { %v3807_v48 = vpack.c.bf16 %v2408_v46, %v2407_v45  ;;  %v1999_v49 = vpop.f32.mrf.mxu3 }
  0xc6   : > { %v2000_v53 = vadd.f32 %v1999_v49, %v1146_v47  ;;  %v989_v54 = vpop.f32.mrf.mxu0 }
  0xc7   : > { %4115 = vst [vmem:[%s4359_s28 + $0x10] sm:$0xff] %v3807_v48   ;;  %v1842_v57 = vpop.f32.mrf.mxu1 }
  0xc8   : > { %vm2216_vm13 = vcmp.ge.f32.partialorder %v2000_v53, 0.0  ;;  %v2344_v58 = vmul.f32 0.2, %v2000_v53  ;;  %v1843_v62 = vadd.f32 %v1842_v57, %v989_v54 }
  0xc9   : > { %3284 = vmatmul.msk.bf16.gmra.mxu0 %vm768_vm1, %v3740_v50  ;;  %3316 = vmatmul.msk.bf16.gmra.mxu2 %vm768_vm1, %v3772_v51 }
  0xca   : > { %v2472_v60 = vsel %vm2216_vm13, %v2000_v53, %v2344_v58  ;;  %3608 = vmatmul.msk.bf16.gmra.mxu1 %vm768_vm1, %v3675_v55  ;;  %3640 = vmatmul.msk.bf16.gmra.mxu3 %vm768_vm1, %v3707_v56  ;;  %v2281_v3 = vmul.f32 0.2, %v1843_v62  ;;  %vm2153_vm14 = vcmp.ge.f32.partialorder %v1843_v62, 0.0 }
  0xcb   : > { %v3967_v61 = vpack.c.bf16 %v2472_v60, %v2471_v59 }
  0xcc   : > { %v1149_v63 = vpop.f32.mrf.mxu2  ;;  %v2409_v7 = vsel %vm2153_vm14, %v1843_v62, %v2281_v3 }
  0xcd   : > { %4147 = vst [vmem:[%s4359_s28 + $0x110] sm:$0xff] %v3967_v61   ;;  %v2002_v0 = vpop.f32.mrf.mxu3 }
  0xce   : > { %v991_v1 = vpop.f32.mrf.mxu0  ;;  %v2003_v5 = vadd.f32 %v2002_v0, %v1149_v63  ;;  %v3743_v0 = vld [vmem:[%s4281_s24 + $0x80] sm:$0xff] }
  0xcf   : > { %v1844_v2 = vpop.f32.mrf.mxu1 }
  0xd0   : > { %v1845_v4 = vadd.f32 %v1844_v2, %v991_v1  ;;  %v2345_v14 = vmul.f32 0.2, %v2003_v5  ;;  %vm2217_vm0 = vcmp.ge.f32.partialorder %v2003_v5, 0.0  ;;  %v3775_v1 = vld [vmem:[%s4281_s24 + $0x180] sm:$0xff] }
  0xd2   : > { %vm2154_vm15 = vcmp.ge.f32.partialorder %v1845_v4, 0.0  ;;  %v2282_v6 = vmul.f32 0.2, %v1845_v4  ;;  %v2473_v21 = vsel %vm2217_vm0, %v2003_v5, %v2345_v14  ;;  %v3678_v5 = vld [vmem:[%s4281_s24 + $0x70] sm:$0xff] }
  0xd4   : > { %v2410_v8 = vsel %vm2154_vm15, %v1845_v4, %v2282_v6  ;;  %v1151_v9 = vpop.f32.mrf.mxu2  ;;  %v3710_v6 = vld [vmem:[%s4281_s24 + $0x170] sm:$0xff] }
  0xd5   : > { %v3812_v10 = vpack.c.bf16 %v2410_v8, %v2409_v7  ;;  %v2004_v11 = vpop.f32.mrf.mxu3 }
  0xd6   : > { %v2005_v15 = vadd.f32 %v2004_v11, %v1151_v9  ;;  %v994_v16 = vpop.f32.mrf.mxu0 }
  0xd7   : > { %4116 = vst [vmem:[%s4359_s28 + $0x18] sm:$0xff] %v3812_v10   ;;  %v1847_v19 = vpop.f32.mrf.mxu1 }
  0xd8   : > { %vm2218_vm2 = vcmp.ge.f32.partialorder %v2005_v15, 0.0  ;;  %v2346_v20 = vmul.f32 0.2, %v2005_v15  ;;  %v1848_v24 = vadd.f32 %v1847_v19, %v994_v16 }
  0xd9   : > { %3285 = vmatmul.msk.bf16.gmra.mxu0 %vm768_vm1, %v3741_v12  ;;  %3317 = vmatmul.msk.bf16.gmra.mxu2 %vm768_vm1, %v3773_v13 }
  0xda   : > { %v2474_v22 = vsel %vm2218_vm2, %v2005_v15, %v2346_v20  ;;  %3609 = vmatmul.msk.bf16.gmra.mxu1 %vm768_vm1, %v3676_v17  ;;  %3641 = vmatmul.msk.bf16.gmra.mxu3 %vm768_vm1, %v3708_v18  ;;  %v2283_v29 = vmul.f32 0.2, %v1848_v24  ;;  %vm2155_vm3 = vcmp.ge.f32.partialorder %v1848_v24, 0.0 }
  0xdb   : > { %v3972_v23 = vpack.c.bf16 %v2474_v22, %v2473_v21 }
  0xdc   : > { %v1154_v25 = vpop.f32.mrf.mxu2  ;;  %v2411_v33 = vsel %vm2155_vm3, %v1848_v24, %v2283_v29 }
  0xdd   : > { %4148 = vst [vmem:[%s4359_s28 + $0x118] sm:$0xff] %v3972_v23   ;;  %v2007_v26 = vpop.f32.mrf.mxu3 }
  0xde   : > { %v996_v27 = vpop.f32.mrf.mxu0  ;;  %v2008_v31 = vadd.f32 %v2007_v26, %v1154_v25  ;;  %v3744_v26 = vld [vmem:[%s4281_s24 + $0x88] sm:$0xff] }
  0xdf   : > { %v1849_v28 = vpop.f32.mrf.mxu1 }
  0xe0   : > { %v1850_v30 = vadd.f32 %v1849_v28, %v996_v27  ;;  %v2347_v40 = vmul.f32 0.2, %v2008_v31  ;;  %vm2219_vm5 = vcmp.ge.f32.partialorder %v2008_v31, 0.0  ;;  %v3776_v27 = vld [vmem:[%s4281_s24 + $0x188] sm:$0xff] }
  0xe2   : > { %vm2156_vm4 = vcmp.ge.f32.partialorder %v1850_v30, 0.0  ;;  %v2284_v32 = vmul.f32 0.2, %v1850_v30  ;;  %v2475_v47 = vsel %vm2219_vm5, %v2008_v31, %v2347_v40  ;;  %v3679_v31 = vld [vmem:[%s4281_s24 + $0x78] sm:$0xff] }
  0xe4   : > { %v2412_v34 = vsel %vm2156_vm4, %v1850_v30, %v2284_v32  ;;  %v1156_v35 = vpop.f32.mrf.mxu2  ;;  %v3711_v32 = vld [vmem:[%s4281_s24 + $0x178] sm:$0xff] }
  0xe5   : > { %v3817_v36 = vpack.c.bf16 %v2412_v34, %v2411_v33  ;;  %v2009_v37 = vpop.f32.mrf.mxu3 }
  0xe6   : > { %v2010_v41 = vadd.f32 %v2009_v37, %v1156_v35  ;;  %v999_v42 = vpop.f32.mrf.mxu0 }
  0xe7   : > { %4117 = vst [vmem:[%s4359_s28 + $0x20] sm:$0xff] %v3817_v36   ;;  %v1852_v45 = vpop.f32.mrf.mxu1 }
  0xe8   : > { %vm2220_vm6 = vcmp.ge.f32.partialorder %v2010_v41, 0.0  ;;  %v2348_v46 = vmul.f32 0.2, %v2010_v41  ;;  %v1853_v50 = vadd.f32 %v1852_v45, %v999_v42 }
  0xe9   : > { %3286 = vmatmul.msk.bf16.gmra.mxu0 %vm768_vm1, %v3742_v38  ;;  %3318 = vmatmul.msk.bf16.gmra.mxu2 %vm768_vm1, %v3774_v39 }
  0xea   : > { %v2476_v48 = vsel %vm2220_vm6, %v2010_v41, %v2348_v46  ;;  %3610 = vmatmul.msk.bf16.gmra.mxu1 %vm768_vm1, %v3677_v43  ;;  %3642 = vmatmul.msk.bf16.gmra.mxu3 %vm768_vm1, %v3709_v44  ;;  %v2285_v55 = vmul.f32 0.2, %v1853_v50  ;;  %vm2157_vm7 = vcmp.ge.f32.partialorder %v1853_v50, 0.0 }
  0xeb   : > { %v3977_v49 = vpack.c.bf16 %v2476_v48, %v2475_v47 }
  0xec   : > { %v1159_v51 = vpop.f32.mrf.mxu2  ;;  %v2413_v59 = vsel %vm2157_vm7, %v1853_v50, %v2285_v55 }
  0xed   : > { %4149 = vst [vmem:[%s4359_s28 + $0x120] sm:$0xff] %v3977_v49   ;;  %v2012_v52 = vpop.f32.mrf.mxu3 }
  0xee   : > { %v1001_v53 = vpop.f32.mrf.mxu0  ;;  %v2013_v57 = vadd.f32 %v2012_v52, %v1159_v51  ;;  %v3745_v52 = vld [vmem:[%s4281_s24 + $0x90] sm:$0xff] }
  0xef   : > { %v1854_v54 = vpop.f32.mrf.mxu1 }
  0xf0   : > { %v1855_v56 = vadd.f32 %v1854_v54, %v1001_v53  ;;  %v2349_v2 = vmul.f32 0.2, %v2013_v57  ;;  %vm2221_vm9 = vcmp.ge.f32.partialorder %v2013_v57, 0.0  ;;  %v3777_v53 = vld [vmem:[%s4281_s24 + $0x190] sm:$0xff] }
  0xf2   : > { %vm2158_vm8 = vcmp.ge.f32.partialorder %v1855_v56, 0.0  ;;  %v2286_v58 = vmul.f32 0.2, %v1855_v56  ;;  %v2477_v9 = vsel %vm2221_vm9, %v2013_v57, %v2349_v2  ;;  %v3680_v57 = vld [vmem:[%s4281_s24 + $0x80] sm:$0xff] }
  0xf4   : > { %v2414_v60 = vsel %vm2158_vm8, %v1855_v56, %v2286_v58  ;;  %v1161_v61 = vpop.f32.mrf.mxu2  ;;  %v3712_v58 = vld [vmem:[%s4281_s24 + $0x180] sm:$0xff] }
  0xf5   : > { %v3822_v62 = vpack.c.bf16 %v2414_v60, %v2413_v59  ;;  %v2014_v63 = vpop.f32.mrf.mxu3 }
  0xf6   : > { %v2015_v3 = vadd.f32 %v2014_v63, %v1161_v61  ;;  %v1004_v4 = vpop.f32.mrf.mxu0 }
  0xf7   : > { %4118 = vst [vmem:[%s4359_s28 + $0x28] sm:$0xff] %v3822_v62   ;;  %v1857_v7 = vpop.f32.mrf.mxu1 }
  0xf8   : > { %vm2222_vm10 = vcmp.ge.f32.partialorder %v2015_v3, 0.0  ;;  %v2350_v8 = vmul.f32 0.2, %v2015_v3  ;;  %v1858_v12 = vadd.f32 %v1857_v7, %v1004_v4 }
  0xf9   : > { %3287 = vmatmul.msk.bf16.gmra.mxu0 %vm768_vm1, %v3743_v0  ;;  %3319 = vmatmul.msk.bf16.gmra.mxu2 %vm768_vm1, %v3775_v1 }
  0xfa   : > { %v2478_v10 = vsel %vm2222_vm10, %v2015_v3, %v2350_v8  ;;  %3611 = vmatmul.msk.bf16.gmra.mxu1 %vm768_vm1, %v3678_v5  ;;  %3643 = vmatmul.msk.bf16.gmra.mxu3 %vm768_vm1, %v3710_v6  ;;  %v2287_v17 = vmul.f32 0.2, %v1858_v12  ;;  %vm2159_vm11 = vcmp.ge.f32.partialorder %v1858_v12, 0.0 }
  0xfb   : > { %v3982_v11 = vpack.c.bf16 %v2478_v10, %v2477_v9 }
  0xfc   : > { %v1164_v13 = vpop.f32.mrf.mxu2  ;;  %v2415_v21 = vsel %vm2159_vm11, %v1858_v12, %v2287_v17 }
  0xfd   : > { %4150 = vst [vmem:[%s4359_s28 + $0x128] sm:$0xff] %v3982_v11   ;;  %v2017_v14 = vpop.f32.mrf.mxu3 }
  0xfe   : > { %v1006_v15 = vpop.f32.mrf.mxu0  ;;  %v2018_v19 = vadd.f32 %v2017_v14, %v1164_v13  ;;  %v3746_v14 = vld [vmem:[%s4281_s24 + $0x98] sm:$0xff] }
  0xff   : > { %v1859_v16 = vpop.f32.mrf.mxu1 }
 0x100   : > { %v1860_v18 = vadd.f32 %v1859_v16, %v1006_v15  ;;  %v2351_v28 = vmul.f32 0.2, %v2018_v19  ;;  %vm2223_vm13 = vcmp.ge.f32.partialorder %v2018_v19, 0.0  ;;  %v3778_v15 = vld [vmem:[%s4281_s24 + $0x198] sm:$0xff] }
 0x102   : > { %vm2160_vm12 = vcmp.ge.f32.partialorder %v1860_v18, 0.0  ;;  %v2288_v20 = vmul.f32 0.2, %v1860_v18  ;;  %v2479_v35 = vsel %vm2223_vm13, %v2018_v19, %v2351_v28  ;;  %v3681_v19 = vld [vmem:[%s4281_s24 + $0x88] sm:$0xff] }
 0x104   : > { %v2416_v22 = vsel %vm2160_vm12, %v1860_v18, %v2288_v20  ;;  %v1166_v23 = vpop.f32.mrf.mxu2  ;;  %v3713_v20 = vld [vmem:[%s4281_s24 + $0x188] sm:$0xff] }
 0x105   : > { %v3827_v24 = vpack.c.bf16 %v2416_v22, %v2415_v21  ;;  %v2019_v25 = vpop.f32.mrf.mxu3 }
 0x106   : > { %v2020_v29 = vadd.f32 %v2019_v25, %v1166_v23  ;;  %v1009_v30 = vpop.f32.mrf.mxu0 }
 0x107   : > { %4119 = vst [vmem:[%s4359_s28 + $0x30] sm:$0xff] %v3827_v24   ;;  %v1862_v33 = vpop.f32.mrf.mxu1 }
 0x108   : > { %vm2224_vm14 = vcmp.ge.f32.partialorder %v2020_v29, 0.0  ;;  %v2352_v34 = vmul.f32 0.2, %v2020_v29  ;;  %v1863_v38 = vadd.f32 %v1862_v33, %v1009_v30 }
 0x109   : > { %3288 = vmatmul.msk.bf16.gmra.mxu0 %vm768_vm1, %v3744_v26  ;;  %3320 = vmatmul.msk.bf16.gmra.mxu2 %vm768_vm1, %v3776_v27 }
 0x10a   : > { %v2480_v36 = vsel %vm2224_vm14, %v2020_v29, %v2352_v34  ;;  %3612 = vmatmul.msk.bf16.gmra.mxu1 %vm768_vm1, %v3679_v31  ;;  %3644 = vmatmul.msk.bf16.gmra.mxu3 %vm768_vm1, %v3711_v32  ;;  %v2289_v43 = vmul.f32 0.2, %v1863_v38  ;;  %vm2161_vm15 = vcmp.ge.f32.partialorder %v1863_v38, 0.0 }
 0x10b   : > { %v3987_v37 = vpack.c.bf16 %v2480_v36, %v2479_v35 }
 0x10c   : > { %v1169_v39 = vpop.f32.mrf.mxu2  ;;  %v2417_v47 = vsel %vm2161_vm15, %v1863_v38, %v2289_v43 }
 0x10d   : > { %4151 = vst [vmem:[%s4359_s28 + $0x130] sm:$0xff] %v3987_v37   ;;  %v2022_v40 = vpop.f32.mrf.mxu3 }
 0x10e   : > { %v1011_v41 = vpop.f32.mrf.mxu0  ;;  %v2023_v45 = vadd.f32 %v2022_v40, %v1169_v39  ;;  %v3747_v40 = vld [vmem:[%s4281_s24 + $0xa0] sm:$0xff] }
 0x10f   : > { %v1864_v42 = vpop.f32.mrf.mxu1 }
 0x110   : > { %v1865_v44 = vadd.f32 %v1864_v42, %v1011_v41  ;;  %v2353_v54 = vmul.f32 0.2, %v2023_v45  ;;  %vm2225_vm2 = vcmp.ge.f32.partialorder %v2023_v45, 0.0  ;;  %v3779_v41 = vld [vmem:[%s4281_s24 + $0x1a0] sm:$0xff] }
 0x112   : > { %vm2162_vm0 = vcmp.ge.f32.partialorder %v1865_v44, 0.0  ;;  %v2290_v46 = vmul.f32 0.2, %v1865_v44  ;;  %v2481_v61 = vsel %vm2225_vm2, %v2023_v45, %v2353_v54  ;;  %v3682_v45 = vld [vmem:[%s4281_s24 + $0x90] sm:$0xff] }
 0x114   : > { %v2418_v48 = vsel %vm2162_vm0, %v1865_v44, %v2290_v46  ;;  %v1171_v49 = vpop.f32.mrf.mxu2  ;;  %v3714_v46 = vld [vmem:[%s4281_s24 + $0x190] sm:$0xff] }
 0x115   : > { %v3832_v50 = vpack.c.bf16 %v2418_v48, %v2417_v47  ;;  %v2024_v51 = vpop.f32.mrf.mxu3 }
 0x116   : > { %v2025_v55 = vadd.f32 %v2024_v51, %v1171_v49  ;;  %v1014_v56 = vpop.f32.mrf.mxu0 }
 0x117   : > { %4120 = vst [vmem:[%s4359_s28 + $0x38] sm:$0xff] %v3832_v50   ;;  %v1867_v59 = vpop.f32.mrf.mxu1 }
 0x118   : > { %vm2226_vm3 = vcmp.ge.f32.partialorder %v2025_v55, 0.0  ;;  %v2354_v60 = vmul.f32 0.2, %v2025_v55  ;;  %v1868_v0 = vadd.f32 %v1867_v59, %v1014_v56 }
 0x119   : > { %3289 = vmatmul.msk.bf16.gmra.mxu0 %vm768_vm1, %v3745_v52  ;;  %3321 = vmatmul.msk.bf16.gmra.mxu2 %vm768_vm1, %v3777_v53 }
 0x11a   : > { %v2482_v62 = vsel %vm2226_vm3, %v2025_v55, %v2354_v60  ;;  %3613 = vmatmul.msk.bf16.gmra.mxu1 %vm768_vm1, %v3680_v57  ;;  %3645 = vmatmul.msk.bf16.gmra.mxu3 %vm768_vm1, %v3712_v58  ;;  %v2291_v5 = vmul.f32 0.2, %v1868_v0  ;;  %vm2163_vm4 = vcmp.ge.f32.partialorder %v1868_v0, 0.0 }
 0x11b   : > { %v3992_v63 = vpack.c.bf16 %v2482_v62, %v2481_v61 }
 0x11c   : > { %v1174_v1 = vpop.f32.mrf.mxu2  ;;  %v2419_v9 = vsel %vm2163_vm4, %v1868_v0, %v2291_v5 }
 0x11d   : > { %4152 = vst [vmem:[%s4359_s28 + $0x138] sm:$0xff] %v3992_v63   ;;  %v2027_v2 = vpop.f32.mrf.mxu3 }
 0x11e   : > { %v1016_v3 = vpop.f32.mrf.mxu0  ;;  %v2028_v7 = vadd.f32 %v2027_v2, %v1174_v1  ;;  %v3748_v2 = vld [vmem:[%s4281_s24 + $0xa8] sm:$0xff] }
 0x11f   : > { %v1869_v4 = vpop.f32.mrf.mxu1 }
 0x120   : > { %v1870_v6 = vadd.f32 %v1869_v4, %v1016_v3  ;;  %v2355_v16 = vmul.f32 0.2, %v2028_v7  ;;  %vm2227_vm6 = vcmp.ge.f32.partialorder %v2028_v7, 0.0  ;;  %v3780_v3 = vld [vmem:[%s4281_s24 + $0x1a8] sm:$0xff] }
 0x122   : > { %vm2164_vm5 = vcmp.ge.f32.partialorder %v1870_v6, 0.0  ;;  %v2292_v8 = vmul.f32 0.2, %v1870_v6  ;;  %v2483_v23 = vsel %vm2227_vm6, %v2028_v7, %v2355_v16  ;;  %v3683_v7 = vld [vmem:[%s4281_s24 + $0x98] sm:$0xff] }
 0x124   : > { %v2420_v10 = vsel %vm2164_vm5, %v1870_v6, %v2292_v8  ;;  %v1176_v11 = vpop.f32.mrf.mxu2  ;;  %v3715_v8 = vld [vmem:[%s4281_s24 + $0x198] sm:$0xff] }
 0x125   : > { %v3837_v12 = vpack.c.bf16 %v2420_v10, %v2419_v9  ;;  %v2029_v13 = vpop.f32.mrf.mxu3 }
 0x126   : > { %v2030_v17 = vadd.f32 %v2029_v13, %v1176_v11  ;;  %v1019_v18 = vpop.f32.mrf.mxu0 }
 0x127   : > { %4121 = vst [vmem:[%s4359_s28 + $0x40] sm:$0xff] %v3837_v12   ;;  %v1872_v21 = vpop.f32.mrf.mxu1 }
 0x128   : > { %vm2228_vm7 = vcmp.ge.f32.partialorder %v2030_v17, 0.0  ;;  %v2356_v22 = vmul.f32 0.2, %v2030_v17  ;;  %v1873_v26 = vadd.f32 %v1872_v21, %v1019_v18 }
 0x129   : > { %3290 = vmatmul.msk.bf16.gmra.mxu0 %vm768_vm1, %v3746_v14  ;;  %3322 = vmatmul.msk.bf16.gmra.mxu2 %vm768_vm1, %v3778_v15 }
 0x12a   : > { %v2484_v24 = vsel %vm2228_vm7, %v2030_v17, %v2356_v22  ;;  %3614 = vmatmul.msk.bf16.gmra.mxu1 %vm768_vm1, %v3681_v19  ;;  %3646 = vmatmul.msk.bf16.gmra.mxu3 %vm768_vm1, %v3713_v20  ;;  %v2293_v31 = vmul.f32 0.2, %v1873_v26  ;;  %vm2165_vm8 = vcmp.ge.f32.partialorder %v1873_v26, 0.0 }
 0x12b   : > { %v3997_v25 = vpack.c.bf16 %v2484_v24, %v2483_v23 }
 0x12c   : > { %v1179_v27 = vpop.f32.mrf.mxu2  ;;  %v2421_v35 = vsel %vm2165_vm8, %v1873_v26, %v2293_v31 }
 0x12d   : > { %4153 = vst [vmem:[%s4359_s28 + $0x140] sm:$0xff] %v3997_v25   ;;  %v2032_v28 = vpop.f32.mrf.mxu3 }
 0x12e   : > { %v1021_v29 = vpop.f32.mrf.mxu0  ;;  %v2033_v33 = vadd.f32 %v2032_v28, %v1179_v27  ;;  %v3749_v28 = vld [vmem:[%s4281_s24 + $0xb0] sm:$0xff] }
 0x12f   : > { %v1874_v30 = vpop.f32.mrf.mxu1 }
 0x130   : > { %v1875_v32 = vadd.f32 %v1874_v30, %v1021_v29  ;;  %v2357_v42 = vmul.f32 0.2, %v2033_v33  ;;  %vm2229_vm10 = vcmp.ge.f32.partialorder %v2033_v33, 0.0  ;;  %v3781_v29 = vld [vmem:[%s4281_s24 + $0x1b0] sm:$0xff] }
 0x132   : > { %vm2166_vm9 = vcmp.ge.f32.partialorder %v1875_v32, 0.0  ;;  %v2294_v34 = vmul.f32 0.2, %v1875_v32  ;;  %v2485_v49 = vsel %vm2229_vm10, %v2033_v33, %v2357_v42  ;;  %v3684_v33 = vld [vmem:[%s4281_s24 + $0xa0] sm:$0xff] }
 0x134   : > { %v2422_v36 = vsel %vm2166_vm9, %v1875_v32, %v2294_v34  ;;  %v1181_v37 = vpop.f32.mrf.mxu2  ;;  %v3716_v34 = vld [vmem:[%s4281_s24 + $0x1a0] sm:$0xff] }
 0x135   : > { %v3842_v38 = vpack.c.bf16 %v2422_v36, %v2421_v35  ;;  %v2034_v39 = vpop.f32.mrf.mxu3 }
 0x136   : > { %v2035_v43 = vadd.f32 %v2034_v39, %v1181_v37  ;;  %v1024_v44 = vpop.f32.mrf.mxu0 }
 0x137   : > { %4122 = vst [vmem:[%s4359_s28 + $0x48] sm:$0xff] %v3842_v38   ;;  %v1877_v47 = vpop.f32.mrf.mxu1 }
 0x138   : > { %vm2230_vm11 = vcmp.ge.f32.partialorder %v2035_v43, 0.0  ;;  %v2358_v48 = vmul.f32 0.2, %v2035_v43  ;;  %v1878_v52 = vadd.f32 %v1877_v47, %v1024_v44 }
 0x139   : > { %3291 = vmatmul.msk.bf16.gmra.mxu0 %vm768_vm1, %v3747_v40  ;;  %3323 = vmatmul.msk.bf16.gmra.mxu2 %vm768_vm1, %v3779_v41 }
 0x13a   : > { %v2486_v50 = vsel %vm2230_vm11, %v2035_v43, %v2358_v48  ;;  %3615 = vmatmul.msk.bf16.gmra.mxu1 %vm768_vm1, %v3682_v45  ;;  %3647 = vmatmul.msk.bf16.gmra.mxu3 %vm768_vm1, %v3714_v46  ;;  %v2295_v57 = vmul.f32 0.2, %v1878_v52  ;;  %vm2167_vm12 = vcmp.ge.f32.partialorder %v1878_v52, 0.0 }
 0x13b   : > { %v4002_v51 = vpack.c.bf16 %v2486_v50, %v2485_v49 }
 0x13c   : > { %v1184_v53 = vpop.f32.mrf.mxu2  ;;  %v2423_v61 = vsel %vm2167_vm12, %v1878_v52, %v2295_v57 }
 0x13d   : > { %4154 = vst [vmem:[%s4359_s28 + $0x148] sm:$0xff] %v4002_v51   ;;  %v2037_v54 = vpop.f32.mrf.mxu3 }
 0x13e   : > { %v1026_v55 = vpop.f32.mrf.mxu0  ;;  %v2038_v59 = vadd.f32 %v2037_v54, %v1184_v53  ;;  %v3750_v54 = vld [vmem:[%s4281_s24 + $0xb8] sm:$0xff] }
 0x13f   : > { %v1879_v56 = vpop.f32.mrf.mxu1 }
 0x140   : > { %v1880_v58 = vadd.f32 %v1879_v56, %v1026_v55  ;;  %v2359_v4 = vmul.f32 0.2, %v2038_v59  ;;  %vm2231_vm14 = vcmp.ge.f32.partialorder %v2038_v59, 0.0  ;;  %v3782_v55 = vld [vmem:[%s4281_s24 + $0x1b8] sm:$0xff] }
 0x142   : > { %vm2168_vm13 = vcmp.ge.f32.partialorder %v1880_v58, 0.0  ;;  %v2296_v60 = vmul.f32 0.2, %v1880_v58  ;;  %v2487_v11 = vsel %vm2231_vm14, %v2038_v59, %v2359_v4  ;;  %v3685_v59 = vld [vmem:[%s4281_s24 + $0xa8] sm:$0xff] }
 0x144   : > { %v2424_v62 = vsel %vm2168_vm13, %v1880_v58, %v2296_v60  ;;  %v1186_v63 = vpop.f32.mrf.mxu2  ;;  %v3717_v60 = vld [vmem:[%s4281_s24 + $0x1a8] sm:$0xff] }
 0x145   : > { %v3847_v0 = vpack.c.bf16 %v2424_v62, %v2423_v61  ;;  %v2039_v1 = vpop.f32.mrf.mxu3 }
 0x146   : > { %v2040_v5 = vadd.f32 %v2039_v1, %v1186_v63  ;;  %v1029_v6 = vpop.f32.mrf.mxu0 }
 0x147   : > { %4123 = vst [vmem:[%s4359_s28 + $0x50] sm:$0xff] %v3847_v0   ;;  %v1882_v9 = vpop.f32.mrf.mxu1 }
 0x148   : > { %vm2232_vm15 = vcmp.ge.f32.partialorder %v2040_v5, 0.0  ;;  %v2360_v10 = vmul.f32 0.2, %v2040_v5  ;;  %v1883_v14 = vadd.f32 %v1882_v9, %v1029_v6 }
 0x149   : > { %3292 = vmatmul.msk.bf16.gmra.mxu0 %vm768_vm1, %v3748_v2  ;;  %3324 = vmatmul.msk.bf16.gmra.mxu2 %vm768_vm1, %v3780_v3 }
 0x14a   : > { %v2488_v12 = vsel %vm2232_vm15, %v2040_v5, %v2360_v10  ;;  %3616 = vmatmul.msk.bf16.gmra.mxu1 %vm768_vm1, %v3683_v7  ;;  %3648 = vmatmul.msk.bf16.gmra.mxu3 %vm768_vm1, %v3715_v8  ;;  %v2297_v19 = vmul.f32 0.2, %v1883_v14  ;;  %vm2169_vm0 = vcmp.ge.f32.partialorder %v1883_v14, 0.0 }
 0x14b   : > { %v4007_v13 = vpack.c.bf16 %v2488_v12, %v2487_v11 }
 0x14c   : > { %v1189_v15 = vpop.f32.mrf.mxu2  ;;  %v2425_v23 = vsel %vm2169_vm0, %v1883_v14, %v2297_v19 }
 0x14d   : > { %4155 = vst [vmem:[%s4359_s28 + $0x150] sm:$0xff] %v4007_v13   ;;  %v2042_v16 = vpop.f32.mrf.mxu3 }
 0x14e   : > { %v1031_v17 = vpop.f32.mrf.mxu0  ;;  %v2043_v21 = vadd.f32 %v2042_v16, %v1189_v15  ;;  %v3751_v16 = vld [vmem:[%s4281_s24 + $0xc0] sm:$0xff] }
 0x14f   : > { %v1884_v18 = vpop.f32.mrf.mxu1 }
 0x150   : > { %v1885_v20 = vadd.f32 %v1884_v18, %v1031_v17  ;;  %v2361_v30 = vmul.f32 0.2, %v2043_v21  ;;  %vm2233_vm3 = vcmp.ge.f32.partialorder %v2043_v21, 0.0  ;;  %v3783_v17 = vld [vmem:[%s4281_s24 + $0x1c0] sm:$0xff] }
 0x152   : > { %vm2170_vm2 = vcmp.ge.f32.partialorder %v1885_v20, 0.0  ;;  %v2298_v22 = vmul.f32 0.2, %v1885_v20  ;;  %v2489_v37 = vsel %vm2233_vm3, %v2043_v21, %v2361_v30  ;;  %v3686_v21 = vld [vmem:[%s4281_s24 + $0xb0] sm:$0xff] }
 0x154   : > { %v2426_v24 = vsel %vm2170_vm2, %v1885_v20, %v2298_v22  ;;  %v1191_v25 = vpop.f32.mrf.mxu2  ;;  %v3718_v22 = vld [vmem:[%s4281_s24 + $0x1b0] sm:$0xff] }
 0x155   : > { %v3852_v26 = vpack.c.bf16 %v2426_v24, %v2425_v23  ;;  %v2044_v27 = vpop.f32.mrf.mxu3 }
 0x156   : > { %v2045_v31 = vadd.f32 %v2044_v27, %v1191_v25  ;;  %v1034_v32 = vpop.f32.mrf.mxu0 }
 0x157   : > { %4124 = vst [vmem:[%s4359_s28 + $0x58] sm:$0xff] %v3852_v26   ;;  %v1887_v35 = vpop.f32.mrf.mxu1 }
 0x158   : > { %vm2234_vm4 = vcmp.ge.f32.partialorder %v2045_v31, 0.0  ;;  %v2362_v36 = vmul.f32 0.2, %v2045_v31  ;;  %v1888_v40 = vadd.f32 %v1887_v35, %v1034_v32 }
 0x159   : > { %3293 = vmatmul.msk.bf16.gmra.mxu0 %vm768_vm1, %v3749_v28  ;;  %3325 = vmatmul.msk.bf16.gmra.mxu2 %vm768_vm1, %v3781_v29 }
 0x15a   : > { %v2490_v38 = vsel %vm2234_vm4, %v2045_v31, %v2362_v36  ;;  %3617 = vmatmul.msk.bf16.gmra.mxu1 %vm768_vm1, %v3684_v33  ;;  %3649 = vmatmul.msk.bf16.gmra.mxu3 %vm768_vm1, %v3716_v34  ;;  %v2299_v45 = vmul.f32 0.2, %v1888_v40  ;;  %vm2171_vm5 = vcmp.ge.f32.partialorder %v1888_v40, 0.0 }
 0x15b   : > { %v4012_v39 = vpack.c.bf16 %v2490_v38, %v2489_v37 }
 0x15c   : > { %v1194_v41 = vpop.f32.mrf.mxu2  ;;  %v2427_v49 = vsel %vm2171_vm5, %v1888_v40, %v2299_v45 }
 0x15d   : > { %4156 = vst [vmem:[%s4359_s28 + $0x158] sm:$0xff] %v4012_v39   ;;  %v2047_v42 = vpop.f32.mrf.mxu3 }
 0x15e   : > { %v1036_v43 = vpop.f32.mrf.mxu0  ;;  %v2048_v47 = vadd.f32 %v2047_v42, %v1194_v41  ;;  %v3752_v42 = vld [vmem:[%s4281_s24 + $0xc8] sm:$0xff] }
 0x15f   : > { %v1889_v44 = vpop.f32.mrf.mxu1 }
 0x160   : > { %v1890_v46 = vadd.f32 %v1889_v44, %v1036_v43  ;;  %v2363_v56 = vmul.f32 0.2, %v2048_v47  ;;  %vm2235_vm7 = vcmp.ge.f32.partialorder %v2048_v47, 0.0  ;;  %v3784_v43 = vld [vmem:[%s4281_s24 + $0x1c8] sm:$0xff] }
 0x162   : > { %vm2172_vm6 = vcmp.ge.f32.partialorder %v1890_v46, 0.0  ;;  %v2300_v48 = vmul.f32 0.2, %v1890_v46  ;;  %v2491_v63 = vsel %vm2235_vm7, %v2048_v47, %v2363_v56  ;;  %v3687_v47 = vld [vmem:[%s4281_s24 + $0xb8] sm:$0xff] }
 0x164   : > { %v2428_v50 = vsel %vm2172_vm6, %v1890_v46, %v2300_v48  ;;  %v1196_v51 = vpop.f32.mrf.mxu2  ;;  %v3719_v48 = vld [vmem:[%s4281_s24 + $0x1b8] sm:$0xff] }
 0x165   : > { %v3857_v52 = vpack.c.bf16 %v2428_v50, %v2427_v49  ;;  %v2049_v53 = vpop.f32.mrf.mxu3 }
 0x166   : > { %v2050_v57 = vadd.f32 %v2049_v53, %v1196_v51  ;;  %v1039_v58 = vpop.f32.mrf.mxu0 }
 0x167   : > { %4125 = vst [vmem:[%s4359_s28 + $0x60] sm:$0xff] %v3857_v52   ;;  %v1892_v61 = vpop.f32.mrf.mxu1 }
 0x168   : > { %vm2236_vm8 = vcmp.ge.f32.partialorder %v2050_v57, 0.0  ;;  %v2364_v62 = vmul.f32 0.2, %v2050_v57  ;;  %v1893_v2 = vadd.f32 %v1892_v61, %v1039_v58 }
 0x169   : > { %3294 = vmatmul.msk.bf16.gmra.mxu0 %vm768_vm1, %v3750_v54  ;;  %3326 = vmatmul.msk.bf16.gmra.mxu2 %vm768_vm1, %v3782_v55 }
 0x16a   : > { %v2492_v0 = vsel %vm2236_vm8, %v2050_v57, %v2364_v62  ;;  %3618 = vmatmul.msk.bf16.gmra.mxu1 %vm768_vm1, %v3685_v59  ;;  %3650 = vmatmul.msk.bf16.gmra.mxu3 %vm768_vm1, %v3717_v60  ;;  %v2301_v7 = vmul.f32 0.2, %v1893_v2  ;;  %vm2173_vm9 = vcmp.ge.f32.partialorder %v1893_v2, 0.0 }
 0x16b   : > { %v4017_v1 = vpack.c.bf16 %v2492_v0, %v2491_v63 }
 0x16c   : > { %v1199_v3 = vpop.f32.mrf.mxu2  ;;  %v2429_v11 = vsel %vm2173_vm9, %v1893_v2, %v2301_v7 }
 0x16d   : > { %4157 = vst [vmem:[%s4359_s28 + $0x160] sm:$0xff] %v4017_v1   ;;  %v2052_v4 = vpop.f32.mrf.mxu3 }
 0x16e   : > { %v1041_v5 = vpop.f32.mrf.mxu0  ;;  %v2053_v9 = vadd.f32 %v2052_v4, %v1199_v3  ;;  %v3753_v4 = vld [vmem:[%s4281_s24 + $0xd0] sm:$0xff] }
 0x16f   : > { %v1894_v6 = vpop.f32.mrf.mxu1 }
 0x170   : > { %v1895_v8 = vadd.f32 %v1894_v6, %v1041_v5  ;;  %v2365_v18 = vmul.f32 0.2, %v2053_v9  ;;  %vm2237_vm11 = vcmp.ge.f32.partialorder %v2053_v9, 0.0  ;;  %v3785_v5 = vld [vmem:[%s4281_s24 + $0x1d0] sm:$0xff] }
 0x172   : > { %vm2174_vm10 = vcmp.ge.f32.partialorder %v1895_v8, 0.0  ;;  %v2302_v10 = vmul.f32 0.2, %v1895_v8  ;;  %v2493_v25 = vsel %vm2237_vm11, %v2053_v9, %v2365_v18  ;;  %v3688_v9 = vld [vmem:[%s4281_s24 + $0xc0] sm:$0xff] }
 0x174   : > { %v2430_v12 = vsel %vm2174_vm10, %v1895_v8, %v2302_v10  ;;  %v1201_v13 = vpop.f32.mrf.mxu2  ;;  %v3720_v10 = vld [vmem:[%s4281_s24 + $0x1c0] sm:$0xff] }
 0x175   : > { %v3862_v14 = vpack.c.bf16 %v2430_v12, %v2429_v11  ;;  %v2054_v15 = vpop.f32.mrf.mxu3 }
 0x176   : > { %v2055_v19 = vadd.f32 %v2054_v15, %v1201_v13  ;;  %v1044_v20 = vpop.f32.mrf.mxu0 }
 0x177   : > { %4126 = vst [vmem:[%s4359_s28 + $0x68] sm:$0xff] %v3862_v14   ;;  %v1897_v23 = vpop.f32.mrf.mxu1 }
 0x178   : > { %vm2238_vm12 = vcmp.ge.f32.partialorder %v2055_v19, 0.0  ;;  %v2366_v24 = vmul.f32 0.2, %v2055_v19  ;;  %v1898_v28 = vadd.f32 %v1897_v23, %v1044_v20 }
 0x179   : > { %3295 = vmatmul.msk.bf16.gmra.mxu0 %vm768_vm1, %v3751_v16  ;;  %3327 = vmatmul.msk.bf16.gmra.mxu2 %vm768_vm1, %v3783_v17 }
 0x17a   : > { %v2494_v26 = vsel %vm2238_vm12, %v2055_v19, %v2366_v24  ;;  %3619 = vmatmul.msk.bf16.gmra.mxu1 %vm768_vm1, %v3686_v21  ;;  %3651 = vmatmul.msk.bf16.gmra.mxu3 %vm768_vm1, %v3718_v22  ;;  %v2303_v33 = vmul.f32 0.2, %v1898_v28  ;;  %vm2175_vm13 = vcmp.ge.f32.partialorder %v1898_v28, 0.0 }
 0x17b   : > { %v4022_v27 = vpack.c.bf16 %v2494_v26, %v2493_v25 }
 0x17c   : > { %v1204_v29 = vpop.f32.mrf.mxu2  ;;  %v2431_v37 = vsel %vm2175_vm13, %v1898_v28, %v2303_v33 }
 0x17d   : > { %4158 = vst [vmem:[%s4359_s28 + $0x168] sm:$0xff] %v4022_v27   ;;  %v2057_v30 = vpop.f32.mrf.mxu3 }
 0x17e   : > { %v1046_v31 = vpop.f32.mrf.mxu0  ;;  %v2058_v35 = vadd.f32 %v2057_v30, %v1204_v29  ;;  %v3754_v30 = vld [vmem:[%s4281_s24 + $0xd8] sm:$0xff] }
 0x17f   : > { %v1899_v32 = vpop.f32.mrf.mxu1 }
 0x180   : > { %v1900_v34 = vadd.f32 %v1899_v32, %v1046_v31  ;;  %v2367_v44 = vmul.f32 0.2, %v2058_v35  ;;  %vm2239_vm15 = vcmp.ge.f32.partialorder %v2058_v35, 0.0  ;;  %v3786_v31 = vld [vmem:[%s4281_s24 + $0x1d8] sm:$0xff] }
 0x182   : > { %vm2176_vm14 = vcmp.ge.f32.partialorder %v1900_v34, 0.0  ;;  %v2304_v36 = vmul.f32 0.2, %v1900_v34  ;;  %v2495_v51 = vsel %vm2239_vm15, %v2058_v35, %v2367_v44  ;;  %v3689_v35 = vld [vmem:[%s4281_s24 + $0xc8] sm:$0xff] }
 0x184   : > { %v2432_v38 = vsel %vm2176_vm14, %v1900_v34, %v2304_v36  ;;  %v1206_v39 = vpop.f32.mrf.mxu2  ;;  %v3721_v36 = vld [vmem:[%s4281_s24 + $0x1c8] sm:$0xff] }
 0x185   : > { %v3867_v40 = vpack.c.bf16 %v2432_v38, %v2431_v37  ;;  %v2059_v41 = vpop.f32.mrf.mxu3 }
 0x186   : > { %v2060_v45 = vadd.f32 %v2059_v41, %v1206_v39  ;;  %v1049_v46 = vpop.f32.mrf.mxu0 }
 0x187   : > { %4127 = vst [vmem:[%s4359_s28 + $0x70] sm:$0xff] %v3867_v40   ;;  %v1902_v49 = vpop.f32.mrf.mxu1 }
 0x188   : > { %vm2240_vm0 = vcmp.ge.f32.partialorder %v2060_v45, 0.0  ;;  %v2368_v50 = vmul.f32 0.2, %v2060_v45  ;;  %v1903_v54 = vadd.f32 %v1902_v49, %v1049_v46 }
 0x189   : > { %3296 = vmatmul.msk.bf16.gmra.mxu0 %vm768_vm1, %v3752_v42  ;;  %3328 = vmatmul.msk.bf16.gmra.mxu2 %vm768_vm1, %v3784_v43 }
 0x18a   : > { %v2496_v52 = vsel %vm2240_vm0, %v2060_v45, %v2368_v50  ;;  %3620 = vmatmul.msk.bf16.gmra.mxu1 %vm768_vm1, %v3687_v47  ;;  %3652 = vmatmul.msk.bf16.gmra.mxu3 %vm768_vm1, %v3719_v48  ;;  %v2305_v59 = vmul.f32 0.2, %v1903_v54  ;;  %vm2177_vm2 = vcmp.ge.f32.partialorder %v1903_v54, 0.0 }
 0x18b   : > { %v4027_v53 = vpack.c.bf16 %v2496_v52, %v2495_v51 }
 0x18c   : > { %v1209_v55 = vpop.f32.mrf.mxu2  ;;  %v2433_v63 = vsel %vm2177_vm2, %v1903_v54, %v2305_v59 }
 0x18d   : > { %4159 = vst [vmem:[%s4359_s28 + $0x170] sm:$0xff] %v4027_v53   ;;  %v2062_v56 = vpop.f32.mrf.mxu3 }
 0x18e   : > { %v1051_v57 = vpop.f32.mrf.mxu0  ;;  %v2063_v61 = vadd.f32 %v2062_v56, %v1209_v55  ;;  %v3755_v56 = vld [vmem:[%s4281_s24 + $0xe0] sm:$0xff] }
 0x18f   : > { %v1904_v58 = vpop.f32.mrf.mxu1 }
 0x190   : > { %v1905_v60 = vadd.f32 %v1904_v58, %v1051_v57  ;;  %v2369_v6 = vmul.f32 0.2, %v2063_v61  ;;  %vm2241_vm4 = vcmp.ge.f32.partialorder %v2063_v61, 0.0  ;;  %v3787_v57 = vld [vmem:[%s4281_s24 + $0x1e0] sm:$0xff] }
 0x192   : > { %vm2178_vm3 = vcmp.ge.f32.partialorder %v1905_v60, 0.0  ;;  %v2306_v62 = vmul.f32 0.2, %v1905_v60  ;;  %v2497_v13 = vsel %vm2241_vm4, %v2063_v61, %v2369_v6  ;;  %v3690_v61 = vld [vmem:[%s4281_s24 + $0xd0] sm:$0xff] }
 0x194   : > { %v2434_v0 = vsel %vm2178_vm3, %v1905_v60, %v2306_v62  ;;  %v1211_v1 = vpop.f32.mrf.mxu2  ;;  %v3722_v62 = vld [vmem:[%s4281_s24 + $0x1d0] sm:$0xff] }
 0x195   : > { %v3872_v2 = vpack.c.bf16 %v2434_v0, %v2433_v63  ;;  %v2064_v3 = vpop.f32.mrf.mxu3 }
 0x196   : > { %v2065_v7 = vadd.f32 %v2064_v3, %v1211_v1  ;;  %v1054_v8 = vpop.f32.mrf.mxu0 }
 0x197   : > { %4128 = vst [vmem:[%s4359_s28 + $0x78] sm:$0xff] %v3872_v2   ;;  %v1907_v11 = vpop.f32.mrf.mxu1 }
 0x198   : > { %vm2242_vm5 = vcmp.ge.f32.partialorder %v2065_v7, 0.0  ;;  %v2370_v12 = vmul.f32 0.2, %v2065_v7  ;;  %v1908_v16 = vadd.f32 %v1907_v11, %v1054_v8 }
 0x199   : > { %3297 = vmatmul.msk.bf16.gmra.mxu0 %vm768_vm1, %v3753_v4  ;;  %3329 = vmatmul.msk.bf16.gmra.mxu2 %vm768_vm1, %v3785_v5 }
 0x19a   : > { %v2498_v14 = vsel %vm2242_vm5, %v2065_v7, %v2370_v12  ;;  %3621 = vmatmul.msk.bf16.gmra.mxu1 %vm768_vm1, %v3688_v9  ;;  %3653 = vmatmul.msk.bf16.gmra.mxu3 %vm768_vm1, %v3720_v10  ;;  %v2307_v21 = vmul.f32 0.2, %v1908_v16  ;;  %vm2179_vm6 = vcmp.ge.f32.partialorder %v1908_v16, 0.0 }
 0x19b   : > { %v4032_v15 = vpack.c.bf16 %v2498_v14, %v2497_v13 }
 0x19c   : > { %v1214_v17 = vpop.f32.mrf.mxu2  ;;  %v2435_v25 = vsel %vm2179_vm6, %v1908_v16, %v2307_v21 }
 0x19d   : > { %4160 = vst [vmem:[%s4359_s28 + $0x178] sm:$0xff] %v4032_v15   ;;  %v2067_v18 = vpop.f32.mrf.mxu3 }
 0x19e   : > { %v1056_v19 = vpop.f32.mrf.mxu0  ;;  %v2068_v23 = vadd.f32 %v2067_v18, %v1214_v17  ;;  %v3756_v18 = vld [vmem:[%s4281_s24 + $0xe8] sm:$0xff] }
 0x19f   : > { %v1909_v20 = vpop.f32.mrf.mxu1 }
 0x1a0   : > { %v1910_v22 = vadd.f32 %v1909_v20, %v1056_v19  ;;  %v2371_v32 = vmul.f32 0.2, %v2068_v23  ;;  %vm2243_vm8 = vcmp.ge.f32.partialorder %v2068_v23, 0.0  ;;  %v3788_v19 = vld [vmem:[%s4281_s24 + $0x1e8] sm:$0xff] }
 0x1a2   : > { %vm2180_vm7 = vcmp.ge.f32.partialorder %v1910_v22, 0.0  ;;  %v2308_v24 = vmul.f32 0.2, %v1910_v22  ;;  %v2499_v39 = vsel %vm2243_vm8, %v2068_v23, %v2371_v32  ;;  %v3691_v23 = vld [vmem:[%s4281_s24 + $0xd8] sm:$0xff] }
 0x1a4   : > { %v2436_v26 = vsel %vm2180_vm7, %v1910_v22, %v2308_v24  ;;  %v1216_v27 = vpop.f32.mrf.mxu2  ;;  %v3723_v24 = vld [vmem:[%s4281_s24 + $0x1d8] sm:$0xff] }
 0x1a5   : > { %v3877_v28 = vpack.c.bf16 %v2436_v26, %v2435_v25  ;;  %v2069_v29 = vpop.f32.mrf.mxu3 }
 0x1a6   : > { %v2070_v33 = vadd.f32 %v2069_v29, %v1216_v27  ;;  %v1059_v34 = vpop.f32.mrf.mxu0 }
 0x1a7   : > { %4129 = vst [vmem:[%s4359_s28 + $0x80] sm:$0xff] %v3877_v28   ;;  %v1912_v37 = vpop.f32.mrf.mxu1 }
 0x1a8   : > { %vm2244_vm9 = vcmp.ge.f32.partialorder %v2070_v33, 0.0  ;;  %v2372_v38 = vmul.f32 0.2, %v2070_v33  ;;  %v1913_v42 = vadd.f32 %v1912_v37, %v1059_v34 }
 0x1a9   : > { %3298 = vmatmul.msk.bf16.gmra.mxu0 %vm768_vm1, %v3754_v30  ;;  %3330 = vmatmul.msk.bf16.gmra.mxu2 %vm768_vm1, %v3786_v31 }
 0x1aa   : > { %v2500_v40 = vsel %vm2244_vm9, %v2070_v33, %v2372_v38  ;;  %3622 = vmatmul.msk.bf16.gmra.mxu1 %vm768_vm1, %v3689_v35  ;;  %3654 = vmatmul.msk.bf16.gmra.mxu3 %vm768_vm1, %v3721_v36  ;;  %v2309_v47 = vmul.f32 0.2, %v1913_v42  ;;  %vm2181_vm10 = vcmp.ge.f32.partialorder %v1913_v42, 0.0 }
 0x1ab   : > { %v4037_v41 = vpack.c.bf16 %v2500_v40, %v2499_v39 }
 0x1ac   : > { %v1219_v43 = vpop.f32.mrf.mxu2  ;;  %v2437_v51 = vsel %vm2181_vm10, %v1913_v42, %v2309_v47 }
 0x1ad   : > { %4161 = vst [vmem:[%s4359_s28 + $0x180] sm:$0xff] %v4037_v41   ;;  %v2072_v44 = vpop.f32.mrf.mxu3 }
 0x1ae   : > { %v1061_v45 = vpop.f32.mrf.mxu0  ;;  %v2073_v49 = vadd.f32 %v2072_v44, %v1219_v43  ;;  %v3757_v44 = vld [vmem:[%s4281_s24 + $0xf0] sm:$0xff] }
 0x1af   : > { %v1914_v46 = vpop.f32.mrf.mxu1 }
 0x1b0   : > { %v1915_v48 = vadd.f32 %v1914_v46, %v1061_v45  ;;  %v2373_v58 = vmul.f32 0.2, %v2073_v49  ;;  %vm2245_vm12 = vcmp.ge.f32.partialorder %v2073_v49, 0.0  ;;  %v3789_v45 = vld [vmem:[%s4281_s24 + $0x1f0] sm:$0xff] }
 0x1b2   : > { %vm2182_vm11 = vcmp.ge.f32.partialorder %v1915_v48, 0.0  ;;  %v2310_v50 = vmul.f32 0.2, %v1915_v48  ;;  %v2501_v1 = vsel %vm2245_vm12, %v2073_v49, %v2373_v58  ;;  %v3692_v49 = vld [vmem:[%s4281_s24 + $0xe0] sm:$0xff] }
 0x1b4   : > { %v2438_v52 = vsel %vm2182_vm11, %v1915_v48, %v2310_v50  ;;  %v1221_v53 = vpop.f32.mrf.mxu2  ;;  %v3724_v50 = vld [vmem:[%s4281_s24 + $0x1e0] sm:$0xff] }
 0x1b5   : > { %v3882_v54 = vpack.c.bf16 %v2438_v52, %v2437_v51  ;;  %v2074_v55 = vpop.f32.mrf.mxu3 }
 0x1b6   : > { %v2075_v59 = vadd.f32 %v2074_v55, %v1221_v53  ;;  %v1064_v60 = vpop.f32.mrf.mxu0 }
 0x1b7   : > { %4130 = vst [vmem:[%s4359_s28 + $0x88] sm:$0xff] %v3882_v54   ;;  %v1917_v63 = vpop.f32.mrf.mxu1 }
 0x1b8   : > { %vm2246_vm13 = vcmp.ge.f32.partialorder %v2075_v59, 0.0  ;;  %v2374_v0 = vmul.f32 0.2, %v2075_v59  ;;  %v1918_v4 = vadd.f32 %v1917_v63, %v1064_v60 }
 0x1b9   : > { %3299 = vmatmul.msk.bf16.gmra.mxu0 %vm768_vm1, %v3755_v56  ;;  %3331 = vmatmul.msk.bf16.gmra.mxu2 %vm768_vm1, %v3787_v57 }
 0x1ba   : > { %v2502_v2 = vsel %vm2246_vm13, %v2075_v59, %v2374_v0  ;;  %3623 = vmatmul.msk.bf16.gmra.mxu1 %vm768_vm1, %v3690_v61  ;;  %3655 = vmatmul.msk.bf16.gmra.mxu3 %vm768_vm1, %v3722_v62  ;;  %v2311_v9 = vmul.f32 0.2, %v1918_v4  ;;  %vm2183_vm14 = vcmp.ge.f32.partialorder %v1918_v4, 0.0 }
 0x1bb   : > { %v4042_v3 = vpack.c.bf16 %v2502_v2, %v2501_v1 }
 0x1bc   : > { %v1224_v5 = vpop.f32.mrf.mxu2  ;;  %v2439_v13 = vsel %vm2183_vm14, %v1918_v4, %v2311_v9 }
 0x1bd   : > { %4162 = vst [vmem:[%s4359_s28 + $0x188] sm:$0xff] %v4042_v3   ;;  %v2077_v6 = vpop.f32.mrf.mxu3 }
 0x1be   : > { %v1066_v7 = vpop.f32.mrf.mxu0  ;;  %v2078_v11 = vadd.f32 %v2077_v6, %v1224_v5  ;;  %v3758_v6 = vld [vmem:[%s4281_s24 + $0xf8] sm:$0xff] }
 0x1bf   : > { %v1919_v8 = vpop.f32.mrf.mxu1 }
 0x1c0   : > { %v1920_v10 = vadd.f32 %v1919_v8, %v1066_v7  ;;  %v2375_v20 = vmul.f32 0.2, %v2078_v11  ;;  %vm2247_vm0 = vcmp.ge.f32.partialorder %v2078_v11, 0.0  ;;  %v3790_v7 = vld [vmem:[%s4281_s24 + $0x1f8] sm:$0xff] }
 0x1c2   : > { %vm2184_vm15 = vcmp.ge.f32.partialorder %v1920_v10, 0.0  ;;  %v2312_v12 = vmul.f32 0.2, %v1920_v10  ;;  %v2503_v27 = vsel %vm2247_vm0, %v2078_v11, %v2375_v20  ;;  %v3693_v11 = vld [vmem:[%s4281_s24 + $0xe8] sm:$0xff] }
 0x1c4   : > { %v2440_v14 = vsel %vm2184_vm15, %v1920_v10, %v2312_v12  ;;  %v1226_v15 = vpop.f32.mrf.mxu2  ;;  %v3725_v12 = vld [vmem:[%s4281_s24 + $0x1e8] sm:$0xff] }
 0x1c5   : > { %v3887_v16 = vpack.c.bf16 %v2440_v14, %v2439_v13  ;;  %v2079_v17 = vpop.f32.mrf.mxu3 }
 0x1c6   : > { %v2080_v21 = vadd.f32 %v2079_v17, %v1226_v15  ;;  %v1069_v22 = vpop.f32.mrf.mxu0 }
 0x1c7   : > { %4131 = vst [vmem:[%s4359_s28 + $0x90] sm:$0xff] %v3887_v16   ;;  %v1922_v25 = vpop.f32.mrf.mxu1 }
 0x1c8   : > { %vm2248_vm2 = vcmp.ge.f32.partialorder %v2080_v21, 0.0  ;;  %v2376_v26 = vmul.f32 0.2, %v2080_v21  ;;  %v1923_v30 = vadd.f32 %v1922_v25, %v1069_v22 }
 0x1c9   : > { %3300 = vmatmul.msk.bf16.gmra.mxu0 %vm768_vm1, %v3756_v18  ;;  %3332 = vmatmul.msk.bf16.gmra.mxu2 %vm768_vm1, %v3788_v19 }
 0x1ca   : > { %v2504_v28 = vsel %vm2248_vm2, %v2080_v21, %v2376_v26  ;;  %3624 = vmatmul.msk.bf16.gmra.mxu1 %vm768_vm1, %v3691_v23  ;;  %3656 = vmatmul.msk.bf16.gmra.mxu3 %vm768_vm1, %v3723_v24  ;;  %v2313_v35 = vmul.f32 0.2, %v1923_v30  ;;  %vm2185_vm3 = vcmp.ge.f32.partialorder %v1923_v30, 0.0 }
 0x1cb   : > { %v4047_v29 = vpack.c.bf16 %v2504_v28, %v2503_v27 }
 0x1cc   : > { %v1229_v31 = vpop.f32.mrf.mxu2  ;;  %v2441_v39 = vsel %vm2185_vm3, %v1923_v30, %v2313_v35 }
 0x1cd   : > { %4163 = vst [vmem:[%s4359_s28 + $0x190] sm:$0xff] %v4047_v29   ;;  %v2082_v32 = vpop.f32.mrf.mxu3 }
 0x1ce   : > { %v1071_v33 = vpop.f32.mrf.mxu0  ;;  %v2083_v37 = vadd.f32 %v2082_v32, %v1229_v31  ;;  %v3759_v32 = vld [vmem:[%s4281_s24 + $0x100] sm:$0xff] }
 0x1cf   : > { %v1924_v34 = vpop.f32.mrf.mxu1 }
 0x1d0   : > { %v1925_v36 = vadd.f32 %v1924_v34, %v1071_v33  ;;  %v2377_v46 = vmul.f32 0.2, %v2083_v37  ;;  %vm2249_vm5 = vcmp.ge.f32.partialorder %v2083_v37, 0.0  ;;  %v3791_v33 = vld [vmem:[%s4281_s24 + $0x200] sm:$0xff] }
 0x1d2   : > { %vm2186_vm4 = vcmp.ge.f32.partialorder %v1925_v36, 0.0  ;;  %v2314_v38 = vmul.f32 0.2, %v1925_v36  ;;  %v2505_v53 = vsel %vm2249_vm5, %v2083_v37, %v2377_v46  ;;  %v3694_v37 = vld [vmem:[%s4281_s24 + $0xf0] sm:$0xff] }
 0x1d4   : > { %v2442_v40 = vsel %vm2186_vm4, %v1925_v36, %v2314_v38  ;;  %v1231_v41 = vpop.f32.mrf.mxu2  ;;  %v3726_v38 = vld [vmem:[%s4281_s24 + $0x1f0] sm:$0xff] }
 0x1d5   : > { %v3892_v42 = vpack.c.bf16 %v2442_v40, %v2441_v39  ;;  %v2084_v43 = vpop.f32.mrf.mxu3 }
 0x1d6   : > { %v2085_v47 = vadd.f32 %v2084_v43, %v1231_v41  ;;  %v1074_v48 = vpop.f32.mrf.mxu0 }
 0x1d7   : > { %4132 = vst [vmem:[%s4359_s28 + $0x98] sm:$0xff] %v3892_v42   ;;  %v1927_v51 = vpop.f32.mrf.mxu1 }
 0x1d8   : > { %vm2250_vm6 = vcmp.ge.f32.partialorder %v2085_v47, 0.0  ;;  %v2378_v52 = vmul.f32 0.2, %v2085_v47  ;;  %v1928_v56 = vadd.f32 %v1927_v51, %v1074_v48 }
 0x1d9   : > { %3301 = vmatmul.msk.bf16.gmra.mxu0 %vm768_vm1, %v3757_v44  ;;  %3333 = vmatmul.msk.bf16.gmra.mxu2 %vm768_vm1, %v3789_v45 }
 0x1da   : > { %v2506_v54 = vsel %vm2250_vm6, %v2085_v47, %v2378_v52  ;;  %3625 = vmatmul.msk.bf16.gmra.mxu1 %vm768_vm1, %v3692_v49  ;;  %3657 = vmatmul.msk.bf16.gmra.mxu3 %vm768_vm1, %v3724_v50  ;;  %v2315_v61 = vmul.f32 0.2, %v1928_v56  ;;  %vm2187_vm7 = vcmp.ge.f32.partialorder %v1928_v56, 0.0 }
 0x1db   : > { %v4052_v55 = vpack.c.bf16 %v2506_v54, %v2505_v53 }
 0x1dc   : > { %v1234_v57 = vpop.f32.mrf.mxu2  ;;  %v2443_v1 = vsel %vm2187_vm7, %v1928_v56, %v2315_v61 }
 0x1dd   : > { %4164 = vst [vmem:[%s4359_s28 + $0x198] sm:$0xff] %v4052_v55   ;;  %v2087_v58 = vpop.f32.mrf.mxu3 }
 0x1de   : > { %v1076_v59 = vpop.f32.mrf.mxu0  ;;  %v2088_v63 = vadd.f32 %v2087_v58, %v1234_v57  ;;  %v3760_v58 = vld [vmem:[%s4281_s24 + $0x108] sm:$0xff] }
 0x1df   : > { %v1929_v60 = vpop.f32.mrf.mxu1 }
 0x1e0   : > { %v1930_v62 = vadd.f32 %v1929_v60, %v1076_v59  ;;  %v2379_v8 = vmul.f32 0.2, %v2088_v63  ;;  %vm2251_vm9 = vcmp.ge.f32.partialorder %v2088_v63, 0.0  ;;  %v3792_v59 = vld [vmem:[%s4281_s24 + $0x208] sm:$0xff] }
 0x1e2   : > { %vm2188_vm8 = vcmp.ge.f32.partialorder %v1930_v62, 0.0  ;;  %v2316_v0 = vmul.f32 0.2, %v1930_v62  ;;  %v2507_v15 = vsel %vm2251_vm9, %v2088_v63, %v2379_v8  ;;  %v3695_v63 = vld [vmem:[%s4281_s24 + $0xf8] sm:$0xff] }
 0x1e4   : > { %v2444_v2 = vsel %vm2188_vm8, %v1930_v62, %v2316_v0  ;;  %v1236_v3 = vpop.f32.mrf.mxu2  ;;  %v3727_v0 = vld [vmem:[%s4281_s24 + $0x1f8] sm:$0xff] }
 0x1e5   : > { %v3897_v4 = vpack.c.bf16 %v2444_v2, %v2443_v1  ;;  %v2089_v5 = vpop.f32.mrf.mxu3 }
 0x1e6   : > { %v2090_v9 = vadd.f32 %v2089_v5, %v1236_v3  ;;  %v1079_v10 = vpop.f32.mrf.mxu0 }
 0x1e7   : > { %4133 = vst [vmem:[%s4359_s28 + $0xa0] sm:$0xff] %v3897_v4   ;;  %v1932_v13 = vpop.f32.mrf.mxu1 }
 0x1e8   : > { %vm2252_vm10 = vcmp.ge.f32.partialorder %v2090_v9, 0.0  ;;  %v2380_v14 = vmul.f32 0.2, %v2090_v9  ;;  %v1933_v18 = vadd.f32 %v1932_v13, %v1079_v10 }
 0x1e9   : > { %3302 = vmatmul.msk.bf16.gmra.mxu0 %vm768_vm1, %v3758_v6  ;;  %3334 = vmatmul.msk.bf16.gmra.mxu2 %vm768_vm1, %v3790_v7 }
 0x1ea   : > { %v2508_v16 = vsel %vm2252_vm10, %v2090_v9, %v2380_v14  ;;  %3626 = vmatmul.msk.bf16.gmra.mxu1 %vm768_vm1, %v3693_v11  ;;  %3658 = vmatmul.msk.bf16.gmra.mxu3 %vm768_vm1, %v3725_v12  ;;  %v2317_v23 = vmul.f32 0.2, %v1933_v18  ;;  %vm2189_vm11 = vcmp.ge.f32.partialorder %v1933_v18, 0.0 }
 0x1eb   : > { %v4057_v17 = vpack.c.bf16 %v2508_v16, %v2507_v15 }
 0x1ec   : > { %v1239_v19 = vpop.f32.mrf.mxu2  ;;  %v2445_v27 = vsel %vm2189_vm11, %v1933_v18, %v2317_v23 }
 0x1ed   : > { %4165 = vst [vmem:[%s4359_s28 + $0x1a0] sm:$0xff] %v4057_v17   ;;  %v2092_v20 = vpop.f32.mrf.mxu3 }
 0x1ee   : > { %v1081_v21 = vpop.f32.mrf.mxu0  ;;  %v2093_v25 = vadd.f32 %v2092_v20, %v1239_v19 }
 0x1ef   : > { %v1934_v22 = vpop.f32.mrf.mxu1 }
 0x1f0   : > { %v1935_v24 = vadd.f32 %v1934_v22, %v1081_v21  ;;  %v2381_v34 = vmul.f32 0.2, %v2093_v25  ;;  %vm2253_vm13 = vcmp.ge.f32.partialorder %v2093_v25, 0.0 }
 0x1f2   : > { %vm2190_vm12 = vcmp.ge.f32.partialorder %v1935_v24, 0.0  ;;  %v2318_v26 = vmul.f32 0.2, %v1935_v24  ;;  %v2509_v41 = vsel %vm2253_vm13, %v2093_v25, %v2381_v34 }
 0x1f4   : > { %v2446_v28 = vsel %vm2190_vm12, %v1935_v24, %v2318_v26  ;;  %v1241_v29 = vpop.f32.mrf.mxu2 }
 0x1f5   : > { %v3902_v30 = vpack.c.bf16 %v2446_v28, %v2445_v27  ;;  %v2094_v31 = vpop.f32.mrf.mxu3 }
 0x1f6   : > { %v2095_v35 = vadd.f32 %v2094_v31, %v1241_v29  ;;  %v1084_v36 = vpop.f32.mrf.mxu0 }
 0x1f7   : > { %4134 = vst [vmem:[%s4359_s28 + $0xa8] sm:$0xff] %v3902_v30   ;;  %v1937_v39 = vpop.f32.mrf.mxu1 }
 0x1f8   : > { %vm2254_vm14 = vcmp.ge.f32.partialorder %v2095_v35, 0.0  ;;  %v2382_v40 = vmul.f32 0.2, %v2095_v35  ;;  %v1938_v44 = vadd.f32 %v1937_v39, %v1084_v36 }
 0x1f9   : > { %3303 = vmatmul.msk.bf16.gmra.mxu0 %vm768_vm1, %v3759_v32  ;;  %3335 = vmatmul.msk.bf16.gmra.mxu2 %vm768_vm1, %v3791_v33 }
 0x1fa   : > { %v2510_v42 = vsel %vm2254_vm14, %v2095_v35, %v2382_v40  ;;  %3627 = vmatmul.msk.bf16.gmra.mxu1 %vm768_vm1, %v3694_v37  ;;  %3659 = vmatmul.msk.bf16.gmra.mxu3 %vm768_vm1, %v3726_v38  ;;  %v2319_v49 = vmul.f32 0.2, %v1938_v44  ;;  %vm2191_vm15 = vcmp.ge.f32.partialorder %v1938_v44, 0.0 }
 0x1fb   : > { %v4062_v43 = vpack.c.bf16 %v2510_v42, %v2509_v41 }
 0x1fc   : > { %v1244_v45 = vpop.f32.mrf.mxu2  ;;  %v2447_v53 = vsel %vm2191_vm15, %v1938_v44, %v2319_v49 }
 0x1fd   : > { %4166 = vst [vmem:[%s4359_s28 + $0x1a8] sm:$0xff] %v4062_v43   ;;  %v2097_v46 = vpop.f32.mrf.mxu3 }
 0x1fe   : > { %v1086_v47 = vpop.f32.mrf.mxu0  ;;  %v2098_v51 = vadd.f32 %v2097_v46, %v1244_v45 }
 0x1ff   : > { %v1939_v48 = vpop.f32.mrf.mxu1 }
 0x200   : > { %v1940_v50 = vadd.f32 %v1939_v48, %v1086_v47  ;;  %v2383_v60 = vmul.f32 0.2, %v2098_v51  ;;  %vm2255_vm2 = vcmp.ge.f32.partialorder %v2098_v51, 0.0 }
 0x202   : > { %vm2192_vm0 = vcmp.ge.f32.partialorder %v1940_v50, 0.0  ;;  %v2320_v52 = vmul.f32 0.2, %v1940_v50  ;;  %v2511_v3 = vsel %vm2255_vm2, %v2098_v51, %v2383_v60 }
 0x204   : > { %v2448_v54 = vsel %vm2192_vm0, %v1940_v50, %v2320_v52  ;;  %v1246_v55 = vpop.f32.mrf.mxu2 }
 0x205   : > { %v3907_v56 = vpack.c.bf16 %v2448_v54, %v2447_v53  ;;  %v2099_v57 = vpop.f32.mrf.mxu3 }
 0x206   : > { %v2100_v61 = vadd.f32 %v2099_v57, %v1246_v55  ;;  %v1089_v62 = vpop.f32.mrf.mxu0 }
 0x207   : > { %4135 = vst [vmem:[%s4359_s28 + $0xb0] sm:$0xff] %v3907_v56   ;;  %v1942_v1 = vpop.f32.mrf.mxu1 }
 0x208   : > { %vm2256_vm3 = vcmp.ge.f32.partialorder %v2100_v61, 0.0  ;;  %v2384_v2 = vmul.f32 0.2, %v2100_v61  ;;  %v1943_v6 = vadd.f32 %v1942_v1, %v1089_v62 }
 0x209   : > { %3304 = vmatmul.msk.bf16.gmra.mxu0 %vm768_vm1, %v3760_v58  ;;  %3336 = vmatmul.msk.bf16.gmra.mxu2 %vm768_vm1, %v3792_v59 }
 0x20a   : > { %v2512_v4 = vsel %vm2256_vm3, %v2100_v61, %v2384_v2  ;;  %3628 = vmatmul.msk.bf16.gmra.mxu1 %vm768_vm1, %v3695_v63  ;;  %3660 = vmatmul.msk.bf16.gmra.mxu3 %vm768_vm1, %v3727_v0  ;;  %v2321_v11 = vmul.f32 0.2, %v1943_v6  ;;  %vm2193_vm4 = vcmp.ge.f32.partialorder %v1943_v6, 0.0 }
 0x20b   : > { %v4067_v5 = vpack.c.bf16 %v2512_v4, %v2511_v3 }
 0x20c   : > { %v1249_v7 = vpop.f32.mrf.mxu2  ;;  %v2449_v15 = vsel %vm2193_vm4, %v1943_v6, %v2321_v11 }
 0x20d   : > { %4167 = vst [vmem:[%s4359_s28 + $0x1b0] sm:$0xff] %v4067_v5   ;;  %v2102_v8 = vpop.f32.mrf.mxu3 }
 0x20e   : > { %v1091_v9 = vpop.f32.mrf.mxu0  ;;  %v2103_v13 = vadd.f32 %v2102_v8, %v1249_v7 }
 0x20f   : > { %v1944_v10 = vpop.f32.mrf.mxu1 }
 0x210   : > { %v1945_v12 = vadd.f32 %v1944_v10, %v1091_v9  ;;  %v2385_v20 = vmul.f32 0.2, %v2103_v13  ;;  %vm2257_vm1 = vcmp.ge.f32.partialorder %v2103_v13, 0.0 }
 0x212   : > { %vm2194_vm5 = vcmp.ge.f32.partialorder %v1945_v12, 0.0  ;;  %v2322_v14 = vmul.f32 0.2, %v1945_v12  ;;  %v2513_v25 = vsel %vm2257_vm1, %v2103_v13, %v2385_v20 }
 0x214   : > { %v2450_v16 = vsel %vm2194_vm5, %v1945_v12, %v2322_v14  ;;  %v1251_v17 = vpop.f32.mrf.mxu2 }
 0x215   : > { %v3912_v18 = vpack.c.bf16 %v2450_v16, %v2449_v15  ;;  %v2104_v19 = vpop.f32.mrf.mxu3 }
 0x216   : > { %v2105_v21 = vadd.f32 %v2104_v19, %v1251_v17  ;;  %v1094_v22 = vpop.f32.mrf.mxu0 }
 0x217   : > { %4136 = vst [vmem:[%s4359_s28 + $0xb8] sm:$0xff] %v3912_v18   ;;  %v1947_v23 = vpop.f32.mrf.mxu1 }
 0x218   : > { %vm2258_vm6 = vcmp.ge.f32.partialorder %v2105_v21, 0.0  ;;  %v2386_v24 = vmul.f32 0.2, %v2105_v21  ;;  %v1948_v28 = vadd.f32 %v1947_v23, %v1094_v22 }
 0x21a   : > { %v2514_v26 = vsel %vm2258_vm6, %v2105_v21, %v2386_v24  ;;  %v2323_v33 = vmul.f32 0.2, %v1948_v28  ;;  %vm2195_vm7 = vcmp.ge.f32.partialorder %v1948_v28, 0.0 }
 0x21b   : > { %v4072_v27 = vpack.c.bf16 %v2514_v26, %v2513_v25 }
 0x21c   : > { %v1254_v29 = vpop.f32.mrf.mxu2  ;;  %v2451_v37 = vsel %vm2195_vm7, %v1948_v28, %v2323_v33 }
 0x21d   : > { %4168 = vst [vmem:[%s4359_s28 + $0x1b8] sm:$0xff] %v4072_v27   ;;  %v2107_v30 = vpop.f32.mrf.mxu3 }
 0x21e   : > { %v1096_v31 = vpop.f32.mrf.mxu0  ;;  %v2108_v35 = vadd.f32 %v2107_v30, %v1254_v29 }
 0x21f   : > { %v1949_v32 = vpop.f32.mrf.mxu1 }
 0x220   : > { %v1950_v34 = vadd.f32 %v1949_v32, %v1096_v31  ;;  %v2387_v42 = vmul.f32 0.2, %v2108_v35  ;;  %vm2259_vm9 = vcmp.ge.f32.partialorder %v2108_v35, 0.0 }
 0x222   : > { %vm2196_vm8 = vcmp.ge.f32.partialorder %v1950_v34, 0.0  ;;  %v2324_v36 = vmul.f32 0.2, %v1950_v34  ;;  %v2515_v47 = vsel %vm2259_vm9, %v2108_v35, %v2387_v42 }
 0x224   : > { %v2452_v38 = vsel %vm2196_vm8, %v1950_v34, %v2324_v36  ;;  %v1256_v39 = vpop.f32.mrf.mxu2 }
 0x225   : > { %v3917_v40 = vpack.c.bf16 %v2452_v38, %v2451_v37  ;;  %v2109_v41 = vpop.f32.mrf.mxu3 }
 0x226   : > { %v2110_v43 = vadd.f32 %v2109_v41, %v1256_v39  ;;  %v1099_v44 = vpop.f32.mrf.mxu0 }
 0x227   : > { %4137 = vst [vmem:[%s4359_s28 + $0xc0] sm:$0xff] %v3917_v40   ;;  %v1952_v45 = vpop.f32.mrf.mxu1 }
 0x228   : > { %vm2260_vm10 = vcmp.ge.f32.partialorder %v2110_v43, 0.0  ;;  %v2388_v46 = vmul.f32 0.2, %v2110_v43  ;;  %v1953_v50 = vadd.f32 %v1952_v45, %v1099_v44 }
 0x22a   : > { %v2516_v48 = vsel %vm2260_vm10, %v2110_v43, %v2388_v46  ;;  %v2325_v55 = vmul.f32 0.2, %v1953_v50  ;;  %vm2197_vm11 = vcmp.ge.f32.partialorder %v1953_v50, 0.0 }
 0x22b   : > { %v4077_v49 = vpack.c.bf16 %v2516_v48, %v2515_v47 }
 0x22c   : > { %v1259_v51 = vpop.f32.mrf.mxu2  ;;  %v2453_v59 = vsel %vm2197_vm11, %v1953_v50, %v2325_v55 }
 0x22d   : > { %4169 = vst [vmem:[%s4359_s28 + $0x1c0] sm:$0xff] %v4077_v49   ;;  %v2112_v52 = vpop.f32.mrf.mxu3 }
 0x22e   : > { %v1101_v53 = vpop.f32.mrf.mxu0  ;;  %v2113_v57 = vadd.f32 %v2112_v52, %v1259_v51 }
 0x22f   : > { %v1954_v54 = vpop.f32.mrf.mxu1 }
 0x230   : > { %v1955_v56 = vadd.f32 %v1954_v54, %v1101_v53  ;;  %v2389_v0 = vmul.f32 0.2, %v2113_v57  ;;  %vm2261_vm13 = vcmp.ge.f32.partialorder %v2113_v57, 0.0 }
 0x232   : > { %vm2198_vm12 = vcmp.ge.f32.partialorder %v1955_v56, 0.0  ;;  %v2326_v58 = vmul.f32 0.2, %v1955_v56  ;;  %v2517_v5 = vsel %vm2261_vm13, %v2113_v57, %v2389_v0 }
 0x234   : > { %v2454_v60 = vsel %vm2198_vm12, %v1955_v56, %v2326_v58  ;;  %v1261_v61 = vpop.f32.mrf.mxu2 }
 0x235   : > { %v3922_v62 = vpack.c.bf16 %v2454_v60, %v2453_v59  ;;  %v2114_v63 = vpop.f32.mrf.mxu3 }
 0x236   : > { %v2115_v1 = vadd.f32 %v2114_v63, %v1261_v61  ;;  %v1104_v2 = vpop.f32.mrf.mxu0 }
 0x237   : > { %4138 = vst [vmem:[%s4359_s28 + $0xc8] sm:$0xff] %v3922_v62   ;;  %v1957_v3 = vpop.f32.mrf.mxu1 }
 0x238   : > { %vm2262_vm14 = vcmp.ge.f32.partialorder %v2115_v1, 0.0  ;;  %v2390_v4 = vmul.f32 0.2, %v2115_v1  ;;  %v1958_v8 = vadd.f32 %v1957_v3, %v1104_v2 }
 0x23a   : > { %v2518_v6 = vsel %vm2262_vm14, %v2115_v1, %v2390_v4  ;;  %v2327_v13 = vmul.f32 0.2, %v1958_v8  ;;  %vm2199_vm15 = vcmp.ge.f32.partialorder %v1958_v8, 0.0 }
 0x23b   : > { %v4082_v7 = vpack.c.bf16 %v2518_v6, %v2517_v5 }
 0x23c   : > { %v1264_v9 = vpop.f32.mrf.mxu2  ;;  %v2455_v17 = vsel %vm2199_vm15, %v1958_v8, %v2327_v13 }
 0x23d   : > { %4170 = vst [vmem:[%s4359_s28 + $0x1c8] sm:$0xff] %v4082_v7   ;;  %v2117_v10 = vpop.f32.mrf.mxu3 }
 0x23e   : > { %v1106_v11 = vpop.f32.mrf.mxu0  ;;  %v2118_v15 = vadd.f32 %v2117_v10, %v1264_v9 }
 0x23f   : > { %v1959_v12 = vpop.f32.mrf.mxu1 }
 0x240   : > { %v1960_v14 = vadd.f32 %v1959_v12, %v1106_v11  ;;  %v2391_v22 = vmul.f32 0.2, %v2118_v15  ;;  %vm2263_vm2 = vcmp.ge.f32.partialorder %v2118_v15, 0.0 }
 0x242   : > { %vm2200_vm0 = vcmp.ge.f32.partialorder %v1960_v14, 0.0  ;;  %v2328_v16 = vmul.f32 0.2, %v1960_v14  ;;  %v2519_v27 = vsel %vm2263_vm2, %v2118_v15, %v2391_v22 }
 0x244   : > { %v2456_v18 = vsel %vm2200_vm0, %v1960_v14, %v2328_v16  ;;  %v1266_v19 = vpop.f32.mrf.mxu2 }
 0x245   : > { %v3927_v20 = vpack.c.bf16 %v2456_v18, %v2455_v17  ;;  %v2119_v21 = vpop.f32.mrf.mxu3 }
 0x246   : > { %v2120_v23 = vadd.f32 %v2119_v21, %v1266_v19  ;;  %v1109_v24 = vpop.f32.mrf.mxu0 }
 0x247   : > { %4139 = vst [vmem:[%s4359_s28 + $0xd0] sm:$0xff] %v3927_v20   ;;  %v1962_v25 = vpop.f32.mrf.mxu1 }
 0x248   : > { %vm2264_vm3 = vcmp.ge.f32.partialorder %v2120_v23, 0.0  ;;  %v2392_v26 = vmul.f32 0.2, %v2120_v23  ;;  %v1963_v30 = vadd.f32 %v1962_v25, %v1109_v24 }
 0x24a   : > { %v2520_v28 = vsel %vm2264_vm3, %v2120_v23, %v2392_v26  ;;  %v2329_v35 = vmul.f32 0.2, %v1963_v30  ;;  %vm2201_vm4 = vcmp.ge.f32.partialorder %v1963_v30, 0.0 }
 0x24b   : > { %v4087_v29 = vpack.c.bf16 %v2520_v28, %v2519_v27 }
 0x24c   : > { %v1269_v31 = vpop.f32.mrf.mxu2  ;;  %v2457_v39 = vsel %vm2201_vm4, %v1963_v30, %v2329_v35 }
 0x24d   : > { %4171 = vst [vmem:[%s4359_s28 + $0x1d0] sm:$0xff] %v4087_v29   ;;  %v2122_v32 = vpop.f32.mrf.mxu3 }
 0x24e   : > { %v1111_v33 = vpop.f32.mrf.mxu0  ;;  %v2123_v37 = vadd.f32 %v2122_v32, %v1269_v31 }
 0x24f   : > { %v1964_v34 = vpop.f32.mrf.mxu1 }
 0x250   : > { %v1965_v36 = vadd.f32 %v1964_v34, %v1111_v33  ;;  %v2393_v44 = vmul.f32 0.2, %v2123_v37  ;;  %vm2265_vm1 = vcmp.ge.f32.partialorder %v2123_v37, 0.0 }
 0x252   : > { %vm2202_vm5 = vcmp.ge.f32.partialorder %v1965_v36, 0.0  ;;  %v2330_v38 = vmul.f32 0.2, %v1965_v36  ;;  %v2521_v49 = vsel %vm2265_vm1, %v2123_v37, %v2393_v44 }
 0x254   : > { %v2458_v40 = vsel %vm2202_vm5, %v1965_v36, %v2330_v38  ;;  %v1271_v41 = vpop.f32.mrf.mxu2 }
 0x255   : > { %v3932_v42 = vpack.c.bf16 %v2458_v40, %v2457_v39  ;;  %v2124_v43 = vpop.f32.mrf.mxu3 }
 0x256   : > { %v2125_v45 = vadd.f32 %v2124_v43, %v1271_v41  ;;  %v1114_v46 = vpop.f32.mrf.mxu0 }
 0x257   : > { %4140 = vst [vmem:[%s4359_s28 + $0xd8] sm:$0xff] %v3932_v42   ;;  %v1967_v47 = vpop.f32.mrf.mxu1 }
 0x258   : > { %vm2266_vm6 = vcmp.ge.f32.partialorder %v2125_v45, 0.0  ;;  %v2394_v48 = vmul.f32 0.2, %v2125_v45  ;;  %v1968_v52 = vadd.f32 %v1967_v47, %v1114_v46 }
 0x25a   : > { %v2522_v50 = vsel %vm2266_vm6, %v2125_v45, %v2394_v48  ;;  %v2331_v57 = vmul.f32 0.2, %v1968_v52  ;;  %vm2203_vm7 = vcmp.ge.f32.partialorder %v1968_v52, 0.0 }
 0x25b   : > { %v4092_v51 = vpack.c.bf16 %v2522_v50, %v2521_v49 }
 0x25c   : > { %v1274_v53 = vpop.f32.mrf.mxu2  ;;  %v2459_v61 = vsel %vm2203_vm7, %v1968_v52, %v2331_v57 }
 0x25d   : > { %4172 = vst [vmem:[%s4359_s28 + $0x1d8] sm:$0xff] %v4092_v51   ;;  %v2127_v54 = vpop.f32.mrf.mxu3 }
 0x25e   : > { %v1116_v55 = vpop.f32.mrf.mxu0  ;;  %v2128_v59 = vadd.f32 %v2127_v54, %v1274_v53 }
 0x25f   : > { %v1969_v56 = vpop.f32.mrf.mxu1 }
 0x260   : > { %v1970_v58 = vadd.f32 %v1969_v56, %v1116_v55  ;;  %v2395_v2 = vmul.f32 0.2, %v2128_v59  ;;  %vm2267_vm9 = vcmp.ge.f32.partialorder %v2128_v59, 0.0 }
 0x262   : > { %vm2204_vm8 = vcmp.ge.f32.partialorder %v1970_v58, 0.0  ;;  %v2332_v60 = vmul.f32 0.2, %v1970_v58  ;;  %v2523_v7 = vsel %vm2267_vm9, %v2128_v59, %v2395_v2 }
 0x264   : > { %v2460_v62 = vsel %vm2204_vm8, %v1970_v58, %v2332_v60  ;;  %v1276_v63 = vpop.f32.mrf.mxu2 }
 0x265   : > { %v3937_v0 = vpack.c.bf16 %v2460_v62, %v2459_v61  ;;  %v2129_v1 = vpop.f32.mrf.mxu3 }
 0x266   : > { %v2130_v3 = vadd.f32 %v2129_v1, %v1276_v63  ;;  %v1119_v4 = vpop.f32.mrf.mxu0 }
 0x267   : > { %4141 = vst [vmem:[%s4359_s28 + $0xe0] sm:$0xff] %v3937_v0   ;;  %v1972_v5 = vpop.f32.mrf.mxu1 }
 0x268   : > { %vm2268_vm10 = vcmp.ge.f32.partialorder %v2130_v3, 0.0  ;;  %v2396_v6 = vmul.f32 0.2, %v2130_v3  ;;  %v1973_v10 = vadd.f32 %v1972_v5, %v1119_v4 }
 0x26a   : > { %v2524_v8 = vsel %vm2268_vm10, %v2130_v3, %v2396_v6  ;;  %v2333_v15 = vmul.f32 0.2, %v1973_v10  ;;  %vm2205_vm11 = vcmp.ge.f32.partialorder %v1973_v10, 0.0 }
 0x26b   : > { %v4097_v9 = vpack.c.bf16 %v2524_v8, %v2523_v7 }
 0x26c   : > { %v1279_v11 = vpop.f32.mrf.mxu2  ;;  %v2461_v19 = vsel %vm2205_vm11, %v1973_v10, %v2333_v15 }
 0x26d   : > { %4173 = vst [vmem:[%s4359_s28 + $0x1e0] sm:$0xff] %v4097_v9   ;;  %v2132_v12 = vpop.f32.mrf.mxu3 }
 0x26e   : > { %v1121_v13 = vpop.f32.mrf.mxu0  ;;  %v2133_v17 = vadd.f32 %v2132_v12, %v1279_v11 }
 0x26f   : > { %v1974_v14 = vpop.f32.mrf.mxu1 }
 0x270   : > { %v1975_v16 = vadd.f32 %v1974_v14, %v1121_v13  ;;  %v2397_v24 = vmul.f32 0.2, %v2133_v17  ;;  %vm2269_vm13 = vcmp.ge.f32.partialorder %v2133_v17, 0.0 }
 0x272   : > { %vm2206_vm12 = vcmp.ge.f32.partialorder %v1975_v16, 0.0  ;;  %v2334_v18 = vmul.f32 0.2, %v1975_v16  ;;  %v2525_v29 = vsel %vm2269_vm13, %v2133_v17, %v2397_v24 }
 0x274   : > { %v2462_v20 = vsel %vm2206_vm12, %v1975_v16, %v2334_v18  ;;  %v1281_v21 = vpop.f32.mrf.mxu2 }
 0x275   : > { %v3942_v22 = vpack.c.bf16 %v2462_v20, %v2461_v19  ;;  %v2134_v23 = vpop.f32.mrf.mxu3 }
 0x276   : > { %v2135_v25 = vadd.f32 %v2134_v23, %v1281_v21  ;;  %v1124_v26 = vpop.f32.mrf.mxu0 }
 0x277   : > { %4142 = vst [vmem:[%s4359_s28 + $0xe8] sm:$0xff] %v3942_v22   ;;  %v1977_v27 = vpop.f32.mrf.mxu1 }
 0x278   : > { %vm2270_vm14 = vcmp.ge.f32.partialorder %v2135_v25, 0.0  ;;  %v2398_v28 = vmul.f32 0.2, %v2135_v25  ;;  %v1978_v32 = vadd.f32 %v1977_v27, %v1124_v26 }
 0x27a   : > { %v2526_v30 = vsel %vm2270_vm14, %v2135_v25, %v2398_v28  ;;  %v2335_v37 = vmul.f32 0.2, %v1978_v32  ;;  %vm2207_vm15 = vcmp.ge.f32.partialorder %v1978_v32, 0.0 }
 0x27b   : > { %v4102_v31 = vpack.c.bf16 %v2526_v30, %v2525_v29 }
 0x27c   : > { %v1284_v33 = vpop.f32.mrf.mxu2  ;;  %v2463_v41 = vsel %vm2207_vm15, %v1978_v32, %v2335_v37 }
 0x27d   : > { %4174 = vst [vmem:[%s4359_s28 + $0x1e8] sm:$0xff] %v4102_v31   ;;  %v2137_v34 = vpop.f32.mrf.mxu3 }
 0x27e   : > { %v1126_v35 = vpop.f32.mrf.mxu0  ;;  %v2138_v39 = vadd.f32 %v2137_v34, %v1284_v33 }
 0x27f   : > { %v1979_v36 = vpop.f32.mrf.mxu1 }
 0x280   : > { %v1980_v38 = vadd.f32 %v1979_v36, %v1126_v35  ;;  %v2399_v46 = vmul.f32 0.2, %v2138_v39  ;;  %vm2271_vm2 = vcmp.ge.f32.partialorder %v2138_v39, 0.0 }
 0x282   : > { %vm2208_vm0 = vcmp.ge.f32.partialorder %v1980_v38, 0.0  ;;  %v2336_v40 = vmul.f32 0.2, %v1980_v38  ;;  %v2527_v51 = vsel %vm2271_vm2, %v2138_v39, %v2399_v46 }
 0x284   : > { %v2464_v42 = vsel %vm2208_vm0, %v1980_v38, %v2336_v40  ;;  %v1286_v43 = vpop.f32.mrf.mxu2 }
 0x285   : > { %v3947_v44 = vpack.c.bf16 %v2464_v42, %v2463_v41  ;;  %v2139_v45 = vpop.f32.mrf.mxu3 }
 0x286   : > { %v2140_v47 = vadd.f32 %v2139_v45, %v1286_v43  ;;  %v1129_v48 = vpop.f32.mrf.mxu0 }
 0x287   : > { %4143 = vst [vmem:[%s4359_s28 + $0xf0] sm:$0xff] %v3947_v44   ;;  %v1982_v49 = vpop.f32.mrf.mxu1 }
 0x288   : > { %vm2272_vm3 = vcmp.ge.f32.partialorder %v2140_v47, 0.0  ;;  %v2400_v50 = vmul.f32 0.2, %v2140_v47  ;;  %v1983_v54 = vadd.f32 %v1982_v49, %v1129_v48 }
 0x28a   : > { %v2528_v52 = vsel %vm2272_vm3, %v2140_v47, %v2400_v50  ;;  %v2337_v59 = vmul.f32 0.2, %v1983_v54  ;;  %vm2209_vm4 = vcmp.ge.f32.partialorder %v1983_v54, 0.0 }
 0x28b   : > { %v4107_v53 = vpack.c.bf16 %v2528_v52, %v2527_v51 }
 0x28c   : > { %v1289_v55 = vpop.f32.mrf.mxu2  ;;  %v2465_v63 = vsel %vm2209_vm4, %v1983_v54, %v2337_v59 }
 0x28d   : > { %4175 = vst [vmem:[%s4359_s28 + $0x1f0] sm:$0xff] %v4107_v53   ;;  %v2142_v56 = vpop.f32.mrf.mxu3 }
 0x28e   : > { %v1131_v57 = vpop.f32.mrf.mxu0  ;;  %v2143_v61 = vadd.f32 %v2142_v56, %v1289_v55 }
 0x28f   : > { %v1984_v58 = vpop.f32.mrf.mxu1 }
 0x290   : > { %v1985_v60 = vadd.f32 %v1984_v58, %v1131_v57  ;;  %v2401_v4 = vmul.f32 0.2, %v2143_v61  ;;  %vm2273_vm1 = vcmp.ge.f32.partialorder %v2143_v61, 0.0 }
 0x292   : > { %vm2210_vm5 = vcmp.ge.f32.partialorder %v1985_v60, 0.0  ;;  %v2338_v62 = vmul.f32 0.2, %v1985_v60  ;;  %v2529_v7 = vsel %vm2273_vm1, %v2143_v61, %v2401_v4 }
 0x294   : > { %v2466_v0 = vsel %vm2210_vm5, %v1985_v60, %v2338_v62  ;;  %v1291_v1 = vpop.f32.mrf.mxu2 }
 0x295   : > { %v3952_v2 = vpack.c.bf16 %v2466_v0, %v2465_v63  ;;  %v2144_v3 = vpop.f32.mrf.mxu3 }
 0x296   : > { %v2145_v5 = vadd.f32 %v2144_v3, %v1291_v1 }
 0x297   : > { %4144 = vst [vmem:[%s4359_s28 + $0xf8] sm:$0xff] %v3952_v2  }
 0x298   : > { %vm2274_vm6 = vcmp.ge.f32.partialorder %v2145_v5, 0.0  ;;  %v2402_v6 = vmul.f32 0.2, %v2145_v5 }
 0x29a   : > { %v2530_v8 = vsel %vm2274_vm6, %v2145_v5, %v2402_v6 }
 0x29b   : > { %v4112_v9 = vpack.c.bf16 %v2530_v8, %v2529_v7 }
 0x29d   : > { %4176 = vst [vmem:[%s4359_s28 + $0x1f8] sm:$0xff] %v4112_v9  }
 0x29e PF: > { %s12_s11 = sadd.s32 1, %s4228_s11   ;;  %s4621_s9 = smov %s4224_s10 }
 0x29f   : > { %p9_p5 = scmp.ge.s32.totalorder %s12_s11, 4   ;;  %s4622_s10 = smov %s4624_s12 }
 0x2a1   :  { %11 = sbr.rel (!%p9_p5) target bundleno = 2 (0x2), region = 61 }

// kernel: discriminator_forward.8
= control target key start
LH: loop header
LB: loop body
LE: loop exit
PB: predicated region body
PF: predicated region fallthrough
CT: control target
= control target key end

     0   :  { %s1543_s12 = smov 0   ;;  %s1545_s13 = smov 0   ;;  %s1788_s0 = inlined_call_operand.vmem [shape: bf16[2,17,16,64], index: 0, kind: input, shape index: {}]   ;;  %s1789_s1 = inlined_call_operand.vmem [shape: bf16[2,64,128], index: 1, kind: input, shape index: {}]   ;;  %s1790_s2 = inlined_call_operand.vmem [shape: bf16[2,256,128], index: 2, kind: output, shape index: {0}]   ;;  %s1791_s3 = inlined_call_operand.vmem [shape: f32[2,1,2,128], index: 3, kind: output, shape index: {1}]  }
   0x1   :  { %s1547_s14 = smov 0  }
   0x2 LB: > { %s26_s15 = sadd.s32 1, %s1517_s13  ;;  %p1091_p0 = scmp.ge.s32.totalorder %s1521_s14, 1  ;;  %s1521_s14 = sphi %s1547_s14, %s14_s14   ;;  %s1517_s13 = sphi %s1545_s13, %s1793_s13   ;;  %s1513_s12 = sphi %s1543_s12, %s1792_s12  }
   0x3   : > { %p28_p1 = scmp.ge.s32.totalorder %s26_s15, 2  ;;  %p156_p2 = scmp.lt.s32.totalorder %s1521_s14, 3 }
   0x5   : > { %s1795_s15 = smov (%p28_p1, %s26_s15), 0  ;;  %p157_p3 = pnand %p1091_p0, %p156_p2 }
   0x6   : > { %p191_p4 = scmp.lt.s32.totalorder (!%p157_p3), %s1513_s12, 1 }
   0x7   : > { %160 = sbr.rel (%p157_p3) target bundleno = 327 (0x147), region = 28 }
   0xc   : > { %v1370_v0 = vld [vmem:[%s1789_s1 + $0x38] sm:$0xff]  ;;  %v1369_v2 = vld [vmem:[%s1789_s1 + $0x30] sm:$0xff]  ;;  %s1797_s12 = smov (!%p191_p4, %s1513_s12), 1  ;;  %v1368_v4 = vld [vmem:[%s1789_s1 + $0x28] sm:$0xff]  ;;  %vm407_vm0 = vcmask 523264   ;;  %vm956_vm1 = vcmask 1040384  }
   0xd   : > { %v1350_v1 = vld [vmem:[%s1789_s1 + $0x18] sm:$0xff]  ;;  %460 = vmatpush.bf16.msra.mxu0 %v1370_v0  ;;  %v1349_v3 = vld [vmem:[%s1789_s1 + $0x10] sm:$0xff]  ;;  %1466 = vmatpush.bf16.msra.mxu2 %v1370_v0  ;;  %v1348_v5 = vld [vmem:[%s1789_s1 + $0x8] sm:$0xff]  ;;  %s1474_s28 = smul.u32 136, %s1797_s12  ;;  %s1330_s9 = sshll.u32 %s1797_s12, 7 }
   0xe   : > { %701 = vmatpush.bf16.msra.mxu1 %v1350_v1  ;;  %1470 = vmatpush.bf16.msra.mxu3 %v1350_v1  ;;  %v1367_v6 = vld [vmem:[%s1789_s1 + $0x20] sm:$0xff]  ;;  %s1661_s16 = scalar_lea.vmem %s1790_s2, %s1330_s9  ;;  %s1095_s17 = sshll.u32 %s1797_s12, 1 }
   0xf   : > { %v1347_v7 = vld [vmem:[%s1789_s1] sm:$0xff]  ;;  %s1591_s8 = scalar_lea.vmem %s1788_s0, %s1474_s28  ;;  %s212_s20 = scalar_lea.vmem %s1791_s3, %s1095_s17 }
  0x10   : > { %v1351_v8 = vld [vmem:[%s1591_s8 + $0x8] sm:$0xff]  ;;  %v1331_v9 = vld [vmem:[%s1591_s8] sm:$0xff]  ;;  %v1352_v12 = vld [vmem:[%s1591_s8 + $0x10] sm:$0xff] }
  0x11   : > { %461 = vmatpush.bf16.msra.mxu0 %v1369_v2  ;;  %1467 = vmatpush.bf16.msra.mxu2 %v1369_v2  ;;  %v1359_v10 = vld [vmem:[%s1591_s8 + $0x48] sm:$0xff]  ;;  %v1339_v11 = vld [vmem:[%s1591_s8 + $0x40] sm:$0xff]  ;;  %v1360_v14 = vld [vmem:[%s1591_s8 + $0x50] sm:$0xff] }
  0x12   : > { %702 = vmatpush.bf16.msra.mxu1 %v1349_v3  ;;  %1471 = vmatpush.bf16.msra.mxu3 %v1349_v3  ;;  %v1332_v13 = vld [vmem:[%s1591_s8 + $0x8] sm:$0xff]  ;;  %v1353_v16 = vld [vmem:[%s1591_s8 + $0x18] sm:$0xff]  ;;  %v1333_v17 = vld [vmem:[%s1591_s8 + $0x10] sm:$0xff] }
  0x13   : > { %v1340_v15 = vld [vmem:[%s1591_s8 + $0x48] sm:$0xff]  ;;  %v1361_v18 = vld [vmem:[%s1591_s8 + $0x58] sm:$0xff]  ;;  %v1341_v19 = vld [vmem:[%s1591_s8 + $0x50] sm:$0xff] }
  0x14   : > { %v1354_v20 = vld [vmem:[%s1591_s8 + $0x20] sm:$0xff]  ;;  %v1334_v21 = vld [vmem:[%s1591_s8 + $0x18] sm:$0xff]  ;;  %v1355_v24 = vld [vmem:[%s1591_s8 + $0x28] sm:$0xff] }
  0x15   : > { %462 = vmatpush.bf16.msra.mxu0 %v1368_v4  ;;  %1468 = vmatpush.bf16.msra.mxu2 %v1368_v4  ;;  %v1362_v22 = vld [vmem:[%s1591_s8 + $0x60] sm:$0xff]  ;;  %v1342_v23 = vld [vmem:[%s1591_s8 + $0x58] sm:$0xff]  ;;  %v1363_v26 = vld [vmem:[%s1591_s8 + $0x68] sm:$0xff] }
  0x16   : > { %703 = vmatpush.bf16.msra.mxu1 %v1348_v5  ;;  %1472 = vmatpush.bf16.msra.mxu3 %v1348_v5  ;;  %v1335_v25 = vld [vmem:[%s1591_s8 + $0x20] sm:$0xff]  ;;  %v1356_v28 = vld [vmem:[%s1591_s8 + $0x30] sm:$0xff]  ;;  %v1336_v29 = vld [vmem:[%s1591_s8 + $0x28] sm:$0xff] }
  0x17   : > { %v1343_v27 = vld [vmem:[%s1591_s8 + $0x60] sm:$0xff]  ;;  %v1364_v30 = vld [vmem:[%s1591_s8 + $0x70] sm:$0xff]  ;;  %v1344_v31 = vld [vmem:[%s1591_s8 + $0x68] sm:$0xff] }
  0x18   : > { %v1357_v32 = vld [vmem:[%s1591_s8 + $0x38] sm:$0xff]  ;;  %v1337_v33 = vld [vmem:[%s1591_s8 + $0x30] sm:$0xff]  ;;  %v1358_v36 = vld [vmem:[%s1591_s8 + $0x40] sm:$0xff] }
  0x19   : > { %463 = vmatpush.bf16.msra.mxu0 %v1367_v6  ;;  %1469 = vmatpush.bf16.msra.mxu2 %v1367_v6  ;;  %v1365_v34 = vld [vmem:[%s1591_s8 + $0x78] sm:$0xff]  ;;  %v1345_v35 = vld [vmem:[%s1591_s8 + $0x70] sm:$0xff]  ;;  %v1366_v38 = vld [vmem:[%s1591_s8 + $0x80] sm:$0xff] }
  0x1a   : > { %704 = vmatpush.bf16.msra.mxu1 %v1347_v7  ;;  %1473 = vmatpush.bf16.msra.mxu3 %v1347_v7  ;;  %v1338_v37 = vld [vmem:[%s1591_s8 + $0x38] sm:$0xff] }
  0x1b   : > { %v1346_v39 = vld [vmem:[%s1591_s8 + $0x78] sm:$0xff] }
  0x1c   : > { %1216 = vmatmul.msk.bf16.vlgmr.msra.gmra.mxu0 %vm407_vm0, %v1351_v8  ;;  %1224 = vmatmul.msk.bf16.vlgmr.msra.gmra.mxu2 %vm407_vm0, %v1359_v10 }
  0x1d   : > { %1312 = vmatmul.msk.bf16.vlgmr.msra.gmra.mxu1 %vm407_vm0, %v1331_v9  ;;  %1320 = vmatmul.msk.bf16.vlgmr.msra.gmra.mxu3 %vm407_vm0, %v1339_v11 }
  0x2c   : > { %1217 = vmatmul.msk.bf16.gmra.mxu0 %vm407_vm0, %v1352_v12  ;;  %1225 = vmatmul.msk.bf16.gmra.mxu2 %vm407_vm0, %v1360_v14 }
  0x2d   : > { %1313 = vmatmul.msk.bf16.gmra.mxu1 %vm407_vm0, %v1332_v13  ;;  %1321 = vmatmul.msk.bf16.gmra.mxu3 %vm407_vm0, %v1340_v15 }
  0x3c   : > { %1218 = vmatmul.msk.bf16.gmra.mxu0 %vm407_vm0, %v1353_v16  ;;  %1226 = vmatmul.msk.bf16.gmra.mxu2 %vm407_vm0, %v1361_v18 }
  0x3d   : > { %1314 = vmatmul.msk.bf16.gmra.mxu1 %vm407_vm0, %v1333_v17  ;;  %1322 = vmatmul.msk.bf16.gmra.mxu3 %vm407_vm0, %v1341_v19 }
  0x4c   : > { %1219 = vmatmul.msk.bf16.gmra.mxu0 %vm407_vm0, %v1354_v20  ;;  %1227 = vmatmul.msk.bf16.gmra.mxu2 %vm407_vm0, %v1362_v22 }
  0x4d   : > { %1315 = vmatmul.msk.bf16.gmra.mxu1 %vm407_vm0, %v1334_v21  ;;  %1323 = vmatmul.msk.bf16.gmra.mxu3 %vm407_vm0, %v1342_v23 }
  0x5c   : > { %1220 = vmatmul.msk.bf16.gmra.mxu0 %vm407_vm0, %v1355_v24  ;;  %1228 = vmatmul.msk.bf16.gmra.mxu2 %vm407_vm0, %v1363_v26 }
  0x5d   : > { %1316 = vmatmul.msk.bf16.gmra.mxu1 %vm407_vm0, %v1335_v25  ;;  %1324 = vmatmul.msk.bf16.gmra.mxu3 %vm407_vm0, %v1343_v27 }
  0x6c   : > { %1221 = vmatmul.msk.bf16.gmra.mxu0 %vm407_vm0, %v1356_v28  ;;  %1229 = vmatmul.msk.bf16.gmra.mxu2 %vm407_vm0, %v1364_v30 }
  0x6d   : > { %1317 = vmatmul.msk.bf16.gmra.mxu1 %vm407_vm0, %v1336_v29  ;;  %1325 = vmatmul.msk.bf16.gmra.mxu3 %vm407_vm0, %v1344_v31 }
  0x7c   : > { %1222 = vmatmul.msk.bf16.gmra.mxu0 %vm407_vm0, %v1357_v32  ;;  %1230 = vmatmul.msk.bf16.gmra.mxu2 %vm407_vm0, %v1365_v34 }
  0x7d   : > { %1318 = vmatmul.msk.bf16.gmra.mxu1 %vm407_vm0, %v1337_v33  ;;  %1326 = vmatmul.msk.bf16.gmra.mxu3 %vm407_vm0, %v1345_v35 }
  0x8c   : > { %1223 = vmatmul.msk.bf16.gmra.mxu0 %vm407_vm0, %v1358_v36  ;;  %1231 = vmatmul.msk.bf16.gmra.mxu2 %vm407_vm0, %v1366_v38 }
  0x8d   : > { %1319 = vmatmul.msk.bf16.gmra.mxu1 %vm407_vm0, %v1338_v37  ;;  %1327 = vmatmul.msk.bf16.gmra.mxu3 %vm407_vm0, %v1346_v39 }
  0x99   : > { %v465_v40 = vpop.f32.mrf.mxu0 }
  0x9a   : > { %v706_v41 = vpop.f32.mrf.mxu1 }
  0x9b   : > { %v707_v42 = vadd.f32 %v706_v41, %v465_v40 }
  0x9d   : > { %v887_v48 = vmul.f32 %v707_v42, %v707_v42 }
  0x9f   : > { %v505_v43 = vpop.f32.mrf.mxu2 }
  0xa0   : > { %v746_v44 = vpop.f32.mrf.mxu3 }
  0xa1   : > { %v467_v45 = vpop.f32.mrf.mxu0  ;;  %v1664_v53 = vadd.f32 %v746_v44, %v505_v43 }
  0xa2   : > { %v708_v46 = vpop.f32.mrf.mxu1 }
  0xa3   : > { %v709_v47 = vadd.f32 %v708_v46, %v467_v45 }
  0xa5   : > { %v1374_v49 = vpack.c.bf16 %v709_v47, %v707_v42  ;;  %v850_v50 = vadd.f32 %v709_v47, %v707_v42  ;;  %v888_v51 = vmul.f32 %v709_v47, %v709_v47 }
  0xa7   : > { %1375 = vst [vmem:[%s1661_s16] sm:$0xff] %v1374_v49   ;;  %v919_v52 = vadd.f32 %v888_v51, %v887_v48  ;;  %v507_v54 = vpop.f32.mrf.mxu2 }
  0xa8   : > { %v748_v55 = vpop.f32.mrf.mxu3 }
  0xa9   : > { %v470_v56 = vpop.f32.mrf.mxu0  ;;  %v1666_v58 = vadd.f32 %v748_v55, %v507_v54 }
  0xaa   : > { %v711_v57 = vpop.f32.mrf.mxu1 }
  0xab   : > { %v712_v59 = vadd.f32 %v711_v57, %v470_v56  ;;  %v1414_v60 = vpack.c.bf16 %v1666_v58, %v1664_v53 }
  0xad   : > { %v851_v61 = vadd.f32 %v850_v50, %v712_v59  ;;  %v889_v62 = vmul.f32 %v712_v59, %v712_v59  ;;  %1458 = vst [vmem:[%s1661_s16 + $0x40] sm:$0xff] %v1414_v60  }
  0xaf   : > { %v920_v63 = vadd.f32 %v919_v52, %v889_v62  ;;  %v510_v0 = vpop.f32.mrf.mxu2 }
  0xb0   : > { %v751_v1 = vpop.f32.mrf.mxu3 }
  0xb1   : > { %v472_v2 = vpop.f32.mrf.mxu0  ;;  %v1676_v9 = vadd.f32 %v751_v1, %v510_v0 }
  0xb2   : > { %v713_v3 = vpop.f32.mrf.mxu1 }
  0xb3   : > { %v714_v4 = vadd.f32 %v713_v3, %v472_v2 }
  0xb5   : > { %v1379_v5 = vpack.c.bf16 %v714_v4, %v712_v59  ;;  %v1671_v6 = vadd.f32 %v851_v61, %v714_v4  ;;  %v890_v7 = vmul.f32 %v714_v4, %v714_v4 }
  0xb7   : > { %1451 = vst [vmem:[%s1661_s16 + $0x8] sm:$0xff] %v1379_v5   ;;  %v1674_v8 = vadd.f32 %v920_v63, %v890_v7  ;;  %v512_v10 = vpop.f32.mrf.mxu2 }
  0xb8   : > { %v753_v11 = vpop.f32.mrf.mxu3 }
  0xb9   : > { %v475_v12 = vpop.f32.mrf.mxu0  ;;  %v1678_v14 = vadd.f32 %v753_v11, %v512_v10 }
  0xba   : > { %v716_v13 = vpop.f32.mrf.mxu1 }
  0xbb   : > { %v1419_v15 = vpack.c.bf16 %v1678_v14, %v1676_v9  ;;  %v717_v20 = vadd.f32 %v716_v13, %v475_v12 }
  0xbd   : > { %1459 = vst [vmem:[%s1661_s16 + $0x48] sm:$0xff] %v1419_v15   ;;  %v891_v12 = vmul.f32 %v717_v20, %v717_v20 }
  0xbf   : > { %v515_v16 = vpop.f32.mrf.mxu2 }
  0xc0   : > { %v756_v17 = vpop.f32.mrf.mxu3 }
  0xc1   : > { %v477_v18 = vpop.f32.mrf.mxu0  ;;  %v1687_v23 = vadd.f32 %v756_v17, %v515_v16  ;;  %v853_v16 = vadd.f32 %v1671_v6, %v717_v20  ;;  %v922_v17 = vadd.f32 %v1674_v8, %v891_v12 }
  0xc2   : > { %v718_v19 = vpop.f32.mrf.mxu1 }
  0xc3   : > { %v1683_v21 = vadd.f32 %v718_v19, %v477_v18 }
  0xc5   : > { %v1384_v22 = vpack.c.bf16 %v1683_v21, %v717_v20  ;;  %v892_v15 = vmul.f32 %v1683_v21, %v1683_v21  ;;  %v854_v18 = vadd.f32 %v853_v16, %v1683_v21 }
  0xc7   : > { %1452 = vst [vmem:[%s1661_s16 + $0x10] sm:$0xff] %v1384_v22   ;;  %v517_v24 = vpop.f32.mrf.mxu2 }
  0xc8   : > { %v758_v25 = vpop.f32.mrf.mxu3 }
  0xc9   : > { %v480_v26 = vpop.f32.mrf.mxu0  ;;  %v1689_v28 = vadd.f32 %v758_v25, %v517_v24  ;;  %v923_v25 = vadd.f32 %v922_v17, %v892_v15 }
  0xca   : > { %v721_v27 = vpop.f32.mrf.mxu1 }
  0xcb   : > { %v1424_v29 = vpack.c.bf16 %v1689_v28, %v1687_v23  ;;  %v722_v34 = vadd.f32 %v721_v27, %v480_v26 }
  0xcd   : > { %1460 = vst [vmem:[%s1661_s16 + $0x50] sm:$0xff] %v1424_v29   ;;  %v893_v19 = vmul.f32 %v722_v34, %v722_v34  ;;  %v855_v29 = vadd.f32 %v854_v18, %v722_v34  ;;  %v903_v18 = vmul.f32 %v1664_v53, %v1664_v53 }
  0xcf   : > { %v520_v30 = vpop.f32.mrf.mxu2 }
  0xd0   : > { %v761_v31 = vpop.f32.mrf.mxu3 }
  0xd1   : > { %v482_v32 = vpop.f32.mrf.mxu0  ;;  %v1695_v37 = vadd.f32 %v761_v31, %v520_v30 }
  0xd2   : > { %v723_v33 = vpop.f32.mrf.mxu1 }
  0xd3   : > { %v724_v35 = vadd.f32 %v723_v33, %v482_v32  ;;  %v924_v33 = vadd.f32 %v923_v25, %v893_v19  ;;  %v904_v25 = vmul.f32 %v1666_v58, %v1666_v58 }
  0xd5   : > { %v1389_v36 = vpack.c.bf16 %v724_v35, %v722_v34  ;;  %v894_v30 = vmul.f32 %v724_v35, %v724_v35 }
  0xd7   : > { %1453 = vst [vmem:[%s1661_s16 + $0x18] sm:$0xff] %v1389_v36   ;;  %v522_v38 = vpop.f32.mrf.mxu2  ;;  %v856_v36 = vadd.f32 %v855_v29, %v724_v35  ;;  %v925_v6 = vadd.f32 %v924_v33, %v894_v30 }
  0xd8   : > { %v763_v39 = vpop.f32.mrf.mxu3 }
  0xd9   : > { %v485_v40 = vpop.f32.mrf.mxu0  ;;  %v1697_v42 = vadd.f32 %v763_v39, %v522_v38 }
  0xda   : > { %v726_v41 = vpop.f32.mrf.mxu1 }
  0xdb   : > { %v1429_v43 = vpack.c.bf16 %v1697_v42, %v1695_v37  ;;  %v727_v48 = vadd.f32 %v726_v41, %v485_v40 }
  0xdd   : > { %1461 = vst [vmem:[%s1661_s16 + $0x58] sm:$0xff] %v1429_v43   ;;  %v895_v38 = vmul.f32 %v727_v48, %v727_v48  ;;  %v857_v20 = vadd.f32 %v856_v36, %v727_v48 }
  0xdf   : > { %v525_v44 = vpop.f32.mrf.mxu2  ;;  %v926_v40 = vadd.f32 %v925_v6, %v895_v38 }
  0xe0   : > { %v766_v45 = vpop.f32.mrf.mxu3 }
  0xe1   : > { %v487_v46 = vpop.f32.mrf.mxu0  ;;  %v1703_v51 = vadd.f32 %v766_v45, %v525_v44 }
  0xe2   : > { %v728_v47 = vpop.f32.mrf.mxu1 }
  0xe3   : > { %v729_v49 = vadd.f32 %v728_v47, %v487_v46 }
  0xe5   : > { %v1394_v50 = vpack.c.bf16 %v729_v49, %v727_v48  ;;  %v896_v8 = vmul.f32 %v729_v49, %v729_v49  ;;  %v858_v41 = vadd.f32 %v857_v20, %v729_v49 }
  0xe7   : > { %1454 = vst [vmem:[%s1661_s16 + $0x20] sm:$0xff] %v1394_v50   ;;  %v527_v52 = vpop.f32.mrf.mxu2  ;;  %v927_v50 = vadd.f32 %v926_v40, %v896_v8  ;;  %v908_v40 = vmul.f32 %v1689_v28, %v1689_v28 }
  0xe8   : > { %v768_v54 = vpop.f32.mrf.mxu3 }
  0xe9   : > { %v490_v55 = vpop.f32.mrf.mxu0  ;;  %v1705_v57 = vadd.f32 %v768_v54, %v527_v52 }
  0xea   : > { %v731_v56 = vpop.f32.mrf.mxu1 }
  0xeb   : > { %v1434_v59 = vpack.c.bf16 %v1705_v57, %v1703_v51  ;;  %v732_v0 = vadd.f32 %v731_v56, %v490_v55 }
  0xed   : > { %1462 = vst [vmem:[%s1661_s16 + $0x60] sm:$0xff] %v1434_v59   ;;  %v897_v43 = vmul.f32 %v732_v0, %v732_v0  ;;  %v859_v35 = vadd.f32 %v858_v41, %v732_v0 }
  0xef   : > { %v530_v60 = vpop.f32.mrf.mxu2  ;;  %v928_v54 = vadd.f32 %v927_v50, %v897_v43  ;;  %v909_v43 = vmul.f32 %v1695_v37, %v1695_v37 }
  0xf0   : > { %v771_v61 = vpop.f32.mrf.mxu3 }
  0xf1   : > { %v492_v62 = vpop.f32.mrf.mxu0  ;;  %v1711_v3 = vadd.f32 %v771_v61, %v530_v60 }
  0xf2   : > { %v733_v63 = vpop.f32.mrf.mxu1 }
  0xf3   : > { %v734_v1 = vadd.f32 %v733_v63, %v492_v62 }
  0xf5   : > { %v1399_v2 = vpack.c.bf16 %v734_v1, %v732_v0  ;;  %v898_v52 = vmul.f32 %v734_v1, %v734_v1  ;;  %v860_v55 = vadd.f32 %v859_v35, %v734_v1 }
  0xf7   : > { %1455 = vst [vmem:[%s1661_s16 + $0x28] sm:$0xff] %v1399_v2   ;;  %v532_v4 = vpop.f32.mrf.mxu2  ;;  %v929_v60 = vadd.f32 %v928_v54, %v898_v52 }
  0xf8   : > { %v773_v5 = vpop.f32.mrf.mxu3 }
  0xf9   : > { %v495_v7 = vpop.f32.mrf.mxu0  ;;  %v1713_v11 = vadd.f32 %v773_v5, %v532_v4 }
  0xfa   : > { %v736_v10 = vpop.f32.mrf.mxu1 }
  0xfb   : > { %v1439_v13 = vpack.c.bf16 %v1713_v11, %v1711_v3  ;;  %v737_v31 = vadd.f32 %v736_v10, %v495_v7 }
  0xfd   : > { %1463 = vst [vmem:[%s1661_s16 + $0x68] sm:$0xff] %v1439_v13   ;;  %v899_v56 = vmul.f32 %v737_v31, %v737_v31  ;;  %v861_v49 = vadd.f32 %v860_v55, %v737_v31 }
  0xff   : > { %v535_v22 = vpop.f32.mrf.mxu2  ;;  %v930_v62 = vadd.f32 %v929_v60, %v899_v56 }
 0x100   : > { %v776_v24 = vpop.f32.mrf.mxu3 }
 0x101   : > { %v497_v26 = vpop.f32.mrf.mxu0  ;;  %v1724_v21 = vadd.f32 %v776_v24, %v535_v22 }
 0x102   : > { %v738_v27 = vpop.f32.mrf.mxu1 }
 0x103   : > { %v739_v32 = vadd.f32 %v738_v27, %v497_v26  ;;  %v915_v60 = vmul.f32 %v1724_v21, %v1724_v21 }
 0x105   : > { %v1404_v39 = vpack.c.bf16 %v739_v32, %v737_v31  ;;  %v900_v61 = vmul.f32 %v739_v32, %v739_v32  ;;  %v862_v63 = vadd.f32 %v861_v49, %v739_v32  ;;  %v905_v32 = vmul.f32 %v1676_v9, %v1676_v9 }
 0x107   : > { %1456 = vst [vmem:[%s1661_s16 + $0x30] sm:$0xff] %v1404_v39   ;;  %v537_v44 = vpop.f32.mrf.mxu2  ;;  %v931_v10 = vadd.f32 %v930_v62, %v900_v61 }
 0x108   : > { %v778_v45 = vpop.f32.mrf.mxu3 }
 0x109   : > { %v500_v34 = vpop.f32.mrf.mxu0  ;;  %v1726_v47 = vadd.f32 %v778_v45, %v537_v44  ;;  %v910_v45 = vmul.f32 %v1697_v42, %v1697_v42 }
 0x10a   : > { %v741_v46 = vpop.f32.mrf.mxu1 }
 0x10b   : > { %v1444_v48 = vpack.c.bf16 %v1726_v47, %v1724_v21  ;;  %v742_v59 = vadd.f32 %v741_v46, %v500_v34  ;;  %v916_v62 = vmul.f32 %v1726_v47, %v1726_v47 }
 0x10d   : > { %1464 = vst [vmem:[%s1661_s16 + $0x70] sm:$0xff] %v1444_v48   ;;  %v901_v2 = vmul.f32 %v742_v59, %v742_v59  ;;  %v863_v12 = vadd.f32 %v862_v63, %v742_v59 }
 0x10f   : > { %v540_v4 = vpop.f32.mrf.mxu2  ;;  %v932_v15 = vadd.f32 %v931_v10, %v901_v2 }
 0x110   : > { %v781_v5 = vpop.f32.mrf.mxu3 }
 0x111   : > { %v502_v7 = vpop.f32.mrf.mxu0  ;;  %v782_v24 = vadd.f32 %v781_v5, %v540_v4 }
 0x112   : > { %v743_v0 = vpop.f32.mrf.mxu1 }
 0x113   : > { %v744_v13 = vadd.f32 %v743_v0, %v502_v7  ;;  %v917_v2 = vmul.f32 %v782_v24, %v782_v24 }
 0x115   : > { %v1409_v16 = vpack.c.bf16 %v744_v13, %v742_v59  ;;  %v864_v1 = vadd.f32 %v863_v12, %v744_v13  ;;  %v902_v17 = vmul.f32 %v744_v13, %v744_v13 }
 0x117   : > { %1457 = vst [vmem:[%s1661_s16 + $0x38] sm:$0xff] %v1409_v16   ;;  %v865_v19 = vadd.f32 %v864_v1, %v1664_v53  ;;  %v933_v22 = vadd.f32 %v932_v15, %v902_v17  ;;  %v542_v29 = vpop.f32.mrf.mxu2  ;;  %v906_v53 = vmul.f32 %v1678_v14, %v1678_v14 }
 0x118   : > { %v783_v30 = vpop.f32.mrf.mxu3 }
 0x119   : > { %v866_v26 = vadd.f32 %v865_v19, %v1666_v58  ;;  %v934_v27 = vadd.f32 %v933_v22, %v903_v18  ;;  %v784_v31 = vadd.f32 %v783_v30, %v542_v29  ;;  %v907_v58 = vmul.f32 %v1687_v23, %v1687_v23 }
 0x11b   : > { %v867_v33 = vadd.f32 %v866_v26, %v1676_v9  ;;  %v935_v36 = vadd.f32 %v934_v27, %v904_v25  ;;  %v1449_v38 = vpack.c.bf16 %v784_v31, %v782_v24 }
 0x11d   : > { %v868_v39 = vadd.f32 %v867_v33, %v1678_v14  ;;  %v936_v6 = vadd.f32 %v935_v36, %v905_v32  ;;  %1465 = vst [vmem:[%s1661_s16 + $0x78] sm:$0xff] %v1449_v38  }
 0x11f   : > { %v869_v20 = vadd.f32 %v868_v39, %v1687_v23  ;;  %v937_v8 = vadd.f32 %v936_v6, %v906_v53  ;;  %v911_v23 = vmul.f32 %v1703_v51, %v1703_v51 }
 0x121   : > { %v870_v9 = vadd.f32 %v869_v20, %v1689_v28  ;;  %v938_v41 = vadd.f32 %v937_v8, %v907_v58  ;;  %v912_v28 = vmul.f32 %v1705_v57, %v1705_v57 }
 0x123   : > { %v939_v44 = vadd.f32 %v938_v41, %v908_v40  ;;  %v871_v14 = vadd.f32 %v870_v9, %v1695_v37  ;;  %v913_v37 = vmul.f32 %v1711_v3, %v1711_v3 }
 0x125   : > { %v872_v34 = vadd.f32 %v871_v14, %v1697_v42  ;;  %v940_v46 = vadd.f32 %v939_v44, %v909_v43  ;;  %v914_v42 = vmul.f32 %v1713_v11, %v1713_v11 }
 0x127   : > { %v873_v50 = vadd.f32 %v872_v34, %v1703_v51  ;;  %v941_v35 = vadd.f32 %v940_v46, %v910_v45 }
 0x129   : > { %v874_v52 = vadd.f32 %v873_v50, %v1705_v57  ;;  %v942_v48 = vadd.f32 %v941_v35, %v911_v23 }
 0x12b   : > { %v875_v54 = vadd.f32 %v874_v52, %v1711_v3  ;;  %v943_v55 = vadd.f32 %v942_v48, %v912_v28 }
 0x12d   : > { %v876_v56 = vadd.f32 %v875_v54, %v1713_v11  ;;  %v944_v59 = vadd.f32 %v943_v55, %v913_v37  ;;  %v918_v11 = vmul.f32 %v784_v31, %v784_v31 }
 0x12f   : > { %v877_v51 = vadd.f32 %v876_v56, %v1724_v21  ;;  %v945_v49 = vadd.f32 %v944_v59, %v914_v42 }
 0x131   : > { %v946_v57 = vadd.f32 %v945_v49, %v915_v60  ;;  %v878_v61 = vadd.f32 %v877_v51, %v1726_v47 }
 0x133   : > { %v947_v3 = vadd.f32 %v946_v57, %v916_v62  ;;  %v879_v63 = vadd.f32 %v878_v61, %v782_v24 }
 0x135   : > { %v948_v4 = vadd.f32 %v947_v3, %v917_v2  ;;  %v880_v5 = vadd.f32 %v879_v63, %v784_v31 }
 0x137   : > { %v881_v7 = vrot.slane %v880_v5, 4  ;;  %v949_v0 = vadd.f32 %v948_v4, %v918_v11 }
 0x139   : > { %v882_v10 = vadd.f32 %v881_v7, %v880_v5  ;;  %v950_v12 = vrot.slane %v949_v0, 4 }
 0x13b   : > { %v883_v13 = vrot.slane %v882_v10, 2  ;;  %v951_v21 = vadd.f32 %v950_v12, %v949_v0 }
 0x13d   : > { %v884_v15 = vadd.f32 %v883_v13, %v882_v10  ;;  %v952_v16 = vrot.slane %v951_v21, 2 }
 0x13f   : > { %v885_v1 = vrot.slane %v884_v15, 1  ;;  %v953_v17 = vadd.f32 %v952_v16, %v951_v21 }
 0x141   : > { %v954_v18 = vrot.slane %v953_v17, 1  ;;  %v886_v47 = vadd.f32 %v885_v1, %v884_v15 }
 0x143   : > { %v955_v19 = vadd.f32 %v954_v18, %v953_v17 }
 0x145   : > { %v957_v22 = vsel %vm956_vm1, %v886_v47, %v955_v19 }
 0x146   : > { %958 = vst [vmem:[%s212_s20] sm:$0x3] %v957_v22 }
 0x147 PF: > { %s14_s14 = sadd.s32 1, %s1521_s14   ;;  %s1792_s12 = smov %s1517_s13 }
 0x148   : > { %p11_p5 = scmp.ge.s32.totalorder %s14_s14, 4   ;;  %s1793_s13 = smov %s1795_s15 }
 0x14a   :  { %13 = sbr.rel (!%p11_p5) target bundleno = 2 (0x2), region = 73 }

// kernel: discriminator_forward.9
= control target key start
LH: loop header
LB: loop body
LE: loop exit
PB: predicated region body
PF: predicated region fallthrough
CT: control target
= control target key end

     0   :  { %s814_s9 = smov 0   ;;  %s816_s10 = smov 0   ;;  %s965_s0 = inlined_call_operand.vmem [shape: bf16[2,256,128], index: 0, kind: input, shape index: {}]   ;;  %s966_s1 = inlined_call_operand.vmem [shape: f32[2,128], index: 1, kind: input, shape index: {}]   ;;  %s967_s2 = inlined_call_operand.vmem [shape: bf16[2,256,128], index: 2, kind: output, shape index: {}]  }
   0x1   :  { %s818_s11 = smov 0  }
   0x2 LB: > { %s24_s12 = sadd.s32 1, %s793_s10  ;;  %p566_p0 = scmp.ge.s32.totalorder %s797_s11, 1  ;;  %s797_s11 = sphi %s818_s11, %s12_s11   ;;  %s793_s10 = sphi %s816_s10, %s969_s10   ;;  %s789_s9 = sphi %s814_s9, %s968_s9  }
   0x3   : > { %p26_p1 = scmp.ge.s32.totalorder %s24_s12, 2  ;;  %p133_p2 = scmp.lt.s32.totalorder %s797_s11, 3 }
   0x5   : > { %s971_s12 = smov (%p26_p1, %s24_s12), 0  ;;  %p134_p3 = pnand %p566_p0, %p133_p2 }
   0x6   : > { %p164_p4 = scmp.lt.s32.totalorder (!%p134_p3), %s789_s9, 1 }
   0x7   : > { %137 = sbr.rel (%p134_p3) target bundleno = 75 (0x4b), region = 28 }
   0xc   : > { %s973_s9 = smov (!%p164_p4, %s789_s9), 1  ;;  %v845_v0 = vld [vmem:[%s966_s1] ss:$0 sm:$0xff]  ;;  %v853_v6 = vld [vmem:[%s966_s1 + $0x1] ss:$0 sm:$0xff] }
   0xd   : > { %s573_s13 = sshll.u32 %s973_s9, 7 }
   0xe   : > { %s840_s16 = scalar_lea.vmem %s965_s0, %s573_s13  ;;  %s877_s23 = scalar_lea.vmem %s967_s2, %s573_s13 }
   0xf   : > { %v576_v1 = vld [vmem:[%s840_s16] sm:$0xff]   ;;  %v719_v2 = vld [vmem:[%s840_s16 + $0x8] sm:$0xff]   ;;  %v720_v3 = vld [vmem:[%s840_s16 + $0x10] sm:$0xff]  }
  0x10   : > { %v577_v4 = vunpack.c.l.bf16 %v576_v1  ;;  %v578_v5 = vunpack.c.h.bf16 %v576_v1  ;;  %v581_v7 = vunpack.c.l.bf16 %v719_v2  ;;  %v582_v8 = vunpack.c.h.bf16 %v719_v2  ;;  %v721_v9 = vld [vmem:[%s840_s16 + $0x18] sm:$0xff]   ;;  %v722_v36 = vld [vmem:[%s840_s16 + $0x20] sm:$0xff]   ;;  %v723_v41 = vld [vmem:[%s840_s16 + $0x28] sm:$0xff]  }
  0x11   : > { %v585_v10 = vunpack.c.l.bf16 %v720_v3  ;;  %v586_v11 = vunpack.c.h.bf16 %v720_v3  ;;  %v589_v12 = vunpack.c.l.bf16 %v721_v9  ;;  %v590_v13 = vunpack.c.h.bf16 %v721_v9  ;;  %v724_v52 = vld [vmem:[%s840_s16 + $0x30] sm:$0xff]   ;;  %v725_v53 = vld [vmem:[%s840_s16 + $0x38] sm:$0xff]  }
  0x12   : > { %v249_v14 = vsub.f32 %v577_v4, %v845_v0  ;;  %v250_v15 = vsub.f32 %v578_v5, %v845_v0  ;;  %v251_v16 = vsub.f32 %v581_v7, %v845_v0  ;;  %v252_v17 = vsub.f32 %v582_v8, %v845_v0 }
  0x13   : > { %v253_v18 = vsub.f32 %v585_v10, %v845_v0  ;;  %v254_v19 = vsub.f32 %v586_v11, %v845_v0  ;;  %v255_v20 = vsub.f32 %v589_v12, %v845_v0  ;;  %v256_v21 = vsub.f32 %v590_v13, %v845_v0 }
  0x14   : > { %v283_v22 = vmul.f32 %v853_v6, %v249_v14  ;;  %v284_v23 = vmul.f32 %v853_v6, %v250_v15  ;;  %v285_v24 = vmul.f32 %v853_v6, %v251_v16  ;;  %v286_v25 = vmul.f32 %v853_v6, %v252_v17 }
  0x15   : > { %v287_v26 = vmul.f32 %v853_v6, %v253_v18  ;;  %v288_v27 = vmul.f32 %v853_v6, %v254_v19  ;;  %v289_v28 = vmul.f32 %v853_v6, %v255_v20  ;;  %v290_v29 = vmul.f32 %v853_v6, %v256_v21  ;;  %v726_v20 = vld [vmem:[%s840_s16 + $0x40] sm:$0xff]  }
  0x16   : > { %vm315_vm0 = vcmp.ge.f32.partialorder %v283_v22, 0.0  ;;  %vm316_vm1 = vcmp.ge.f32.partialorder %v284_v23, 0.0  ;;  %v347_v30 = vmul.f32 0.2, %v283_v22  ;;  %v348_v31 = vmul.f32 0.2, %v284_v23 }
  0x17   : > { %vm317_vm2 = vcmp.ge.f32.partialorder %v285_v24, 0.0  ;;  %vm318_vm3 = vcmp.ge.f32.partialorder %v286_v25, 0.0  ;;  %v349_v32 = vmul.f32 0.2, %v285_v24  ;;  %v350_v33 = vmul.f32 0.2, %v286_v25 }
  0x18   : > { %v379_v34 = vsel %vm315_vm0, %v283_v22, %v347_v30  ;;  %v380_v35 = vsel %vm316_vm1, %v284_v23, %v348_v31  ;;  %vm319_vm4 = vcmp.ge.f32.partialorder %v287_v26, 0.0  ;;  %vm320_vm5 = vcmp.ge.f32.partialorder %v288_v27, 0.0 }
  0x19   : > { %v642_v37 = vpack.c.bf16 %v380_v35, %v379_v34  ;;  %v381_v38 = vsel %vm317_vm2, %v285_v24, %v349_v32  ;;  %v382_v39 = vsel %vm318_vm3, %v286_v25, %v350_v33  ;;  %v351_v40 = vmul.f32 0.2, %v287_v26  ;;  %v727_v24 = vld [vmem:[%s840_s16 + $0x48] sm:$0xff]  }
  0x1a   : > { %v647_v42 = vpack.c.bf16 %v382_v39, %v381_v38  ;;  %v352_v43 = vmul.f32 0.2, %v288_v27  ;;  %vm321_vm6 = vcmp.ge.f32.partialorder %v289_v28, 0.0  ;;  %vm322_vm7 = vcmp.ge.f32.partialorder %v290_v29, 0.0 }
  0x1b   : > { %643 = vst [vmem:[%s877_s23] sm:$0xff] %v642_v37   ;;  %v383_v44 = vsel %vm319_vm4, %v287_v26, %v351_v40  ;;  %v353_v45 = vmul.f32 0.2, %v289_v28  ;;  %v354_v46 = vmul.f32 0.2, %v290_v29  ;;  %v593_v47 = vunpack.c.l.bf16 %v722_v36 }
  0x1c   : > { %734 = vst [vmem:[%s877_s23 + $0x8] sm:$0xff] %v647_v42   ;;  %v384_v48 = vsel %vm320_vm5, %v288_v27, %v352_v43  ;;  %v594_v49 = vunpack.c.h.bf16 %v722_v36  ;;  %v597_v50 = vunpack.c.l.bf16 %v723_v41  ;;  %v598_v51 = vunpack.c.h.bf16 %v723_v41  ;;  %v728_v36 = vld [vmem:[%s840_s16 + $0x50] sm:$0xff]  }
  0x1d   : > { %v652_v54 = vpack.c.bf16 %v384_v48, %v383_v44  ;;  %v385_v55 = vsel %vm321_vm6, %v289_v28, %v353_v45  ;;  %v386_v56 = vsel %vm322_vm7, %v290_v29, %v354_v46  ;;  %v257_v57 = vsub.f32 %v593_v47, %v845_v0 }
  0x1e   : > { %v657_v58 = vpack.c.bf16 %v386_v56, %v385_v55  ;;  %v258_v59 = vsub.f32 %v594_v49, %v845_v0  ;;  %v259_v60 = vsub.f32 %v597_v50, %v845_v0  ;;  %v260_v61 = vsub.f32 %v598_v51, %v845_v0 }
  0x1f   : > { %735 = vst [vmem:[%s877_s23 + $0x10] sm:$0xff] %v652_v54   ;;  %v291_v62 = vmul.f32 %v853_v6, %v257_v57  ;;  %v601_v63 = vunpack.c.l.bf16 %v724_v52  ;;  %v602_v1 = vunpack.c.h.bf16 %v724_v52  ;;  %v605_v2 = vunpack.c.l.bf16 %v725_v53 }
  0x20   : > { %736 = vst [vmem:[%s877_s23 + $0x18] sm:$0xff] %v657_v58   ;;  %v292_v3 = vmul.f32 %v853_v6, %v258_v59  ;;  %v293_v4 = vmul.f32 %v853_v6, %v259_v60  ;;  %v294_v5 = vmul.f32 %v853_v6, %v260_v61  ;;  %v606_v7 = vunpack.c.h.bf16 %v725_v53  ;;  %v729_v59 = vld [vmem:[%s840_s16 + $0x58] sm:$0xff]  }
  0x21   : > { %vm323_vm8 = vcmp.ge.f32.partialorder %v291_v62, 0.0  ;;  %v355_v8 = vmul.f32 0.2, %v291_v62  ;;  %v261_v9 = vsub.f32 %v601_v63, %v845_v0  ;;  %v262_v10 = vsub.f32 %v602_v1, %v845_v0  ;;  %v730_v1 = vld [vmem:[%s840_s16 + $0x60] sm:$0xff]  }
  0x22   : > { %vm324_vm9 = vcmp.ge.f32.partialorder %v292_v3, 0.0  ;;  %v356_v11 = vmul.f32 0.2, %v292_v3  ;;  %vm325_vm10 = vcmp.ge.f32.partialorder %v293_v4, 0.0  ;;  %vm326_vm11 = vcmp.ge.f32.partialorder %v294_v5, 0.0 }
  0x23   : > { %v387_v12 = vsel %vm323_vm8, %v291_v62, %v355_v8  ;;  %v357_v13 = vmul.f32 0.2, %v293_v4  ;;  %v358_v14 = vmul.f32 0.2, %v294_v5  ;;  %v295_v15 = vmul.f32 %v853_v6, %v261_v9 }
  0x24   : > { %v388_v16 = vsel %vm324_vm9, %v292_v3, %v356_v11  ;;  %v296_v17 = vmul.f32 %v853_v6, %v262_v10  ;;  %v263_v18 = vsub.f32 %v605_v2, %v845_v0  ;;  %v264_v19 = vsub.f32 %v606_v7, %v845_v0 }
  0x25   : > { %v662_v21 = vpack.c.bf16 %v388_v16, %v387_v12  ;;  %v389_v22 = vsel %vm325_vm10, %v293_v4, %v357_v13  ;;  %v390_v23 = vsel %vm326_vm11, %v294_v5, %v358_v14  ;;  %vm327_vm12 = vcmp.ge.f32.partialorder %v295_v15, 0.0  ;;  %v731_v5 = vld [vmem:[%s840_s16 + $0x68] sm:$0xff]   ;;  %v732_v14 = vld [vmem:[%s840_s16 + $0x70] sm:$0xff]  }
  0x26   : > { %v667_v25 = vpack.c.bf16 %v390_v23, %v389_v22  ;;  %vm328_vm13 = vcmp.ge.f32.partialorder %v296_v17, 0.0  ;;  %v359_v26 = vmul.f32 0.2, %v295_v15  ;;  %v360_v27 = vmul.f32 0.2, %v296_v17 }
  0x27   : > { %737 = vst [vmem:[%s877_s23 + $0x20] sm:$0xff] %v662_v21   ;;  %v297_v28 = vmul.f32 %v853_v6, %v263_v18  ;;  %v298_v29 = vmul.f32 %v853_v6, %v264_v19  ;;  %v609_v30 = vunpack.c.l.bf16 %v726_v20  ;;  %v610_v31 = vunpack.c.h.bf16 %v726_v20 }
  0x28   : > { %738 = vst [vmem:[%s877_s23 + $0x28] sm:$0xff] %v667_v25   ;;  %v391_v32 = vsel %vm327_vm12, %v295_v15, %v359_v26  ;;  %v392_v33 = vsel %vm328_vm13, %v296_v17, %v360_v27  ;;  %v613_v34 = vunpack.c.l.bf16 %v727_v24  ;;  %v614_v35 = vunpack.c.h.bf16 %v727_v24 }
  0x29   : > { %v672_v37 = vpack.c.bf16 %v392_v33, %v391_v32  ;;  %vm329_vm14 = vcmp.ge.f32.partialorder %v297_v28, 0.0  ;;  %vm330_vm15 = vcmp.ge.f32.partialorder %v298_v29, 0.0  ;;  %v361_v38 = vmul.f32 0.2, %v297_v28 }
  0x2a   : > { %v362_v39 = vmul.f32 0.2, %v298_v29  ;;  %v265_v40 = vsub.f32 %v609_v30, %v845_v0  ;;  %v266_v41 = vsub.f32 %v610_v31, %v845_v0  ;;  %v267_v42 = vsub.f32 %v613_v34, %v845_v0 }
  0x2b   : > { %739 = vst [vmem:[%s877_s23 + $0x30] sm:$0xff] %v672_v37   ;;  %v393_v43 = vsel %vm329_vm14, %v297_v28, %v361_v38  ;;  %v268_v44 = vsub.f32 %v614_v35, %v845_v0  ;;  %v617_v45 = vunpack.c.l.bf16 %v728_v36  ;;  %v618_v46 = vunpack.c.h.bf16 %v728_v36 }
  0x2c   : > { %v394_v47 = vsel %vm330_vm15, %v298_v29, %v362_v39  ;;  %v299_v48 = vmul.f32 %v853_v6, %v265_v40  ;;  %v300_v49 = vmul.f32 %v853_v6, %v266_v41  ;;  %v301_v50 = vmul.f32 %v853_v6, %v267_v42  ;;  %v733_v42 = vld [vmem:[%s840_s16 + $0x78] sm:$0xff]  }
  0x2d   : > { %v677_v51 = vpack.c.bf16 %v394_v47, %v393_v43  ;;  %v302_v52 = vmul.f32 %v853_v6, %v268_v44  ;;  %v269_v53 = vsub.f32 %v617_v45, %v845_v0  ;;  %v270_v54 = vsub.f32 %v618_v46, %v845_v0 }
  0x2e   : > { %vm331_vm0 = vcmp.ge.f32.partialorder %v299_v48, 0.0  ;;  %vm332_vm1 = vcmp.ge.f32.partialorder %v300_v49, 0.0  ;;  %v363_v55 = vmul.f32 0.2, %v299_v48  ;;  %v364_v56 = vmul.f32 0.2, %v300_v49 }
  0x2f   : > { %740 = vst [vmem:[%s877_s23 + $0x38] sm:$0xff] %v677_v51   ;;  %vm333_vm2 = vcmp.ge.f32.partialorder %v301_v50, 0.0  ;;  %vm334_vm3 = vcmp.ge.f32.partialorder %v302_v52, 0.0  ;;  %v365_v57 = vmul.f32 0.2, %v301_v50  ;;  %v303_v58 = vmul.f32 %v853_v6, %v269_v53 }
  0x30   : > { %v395_v60 = vsel %vm331_vm0, %v299_v48, %v363_v55  ;;  %v396_v61 = vsel %vm332_vm1, %v300_v49, %v364_v56  ;;  %v366_v62 = vmul.f32 0.2, %v302_v52  ;;  %v304_v63 = vmul.f32 %v853_v6, %v270_v54 }
  0x31   : > { %v682_v2 = vpack.c.bf16 %v396_v61, %v395_v60  ;;  %v397_v3 = vsel %vm333_vm2, %v301_v50, %v365_v57  ;;  %vm335_vm4 = vcmp.ge.f32.partialorder %v303_v58, 0.0  ;;  %v367_v4 = vmul.f32 0.2, %v303_v58 }
  0x32   : > { %v398_v7 = vsel %vm334_vm3, %v302_v52, %v366_v62  ;;  %vm336_vm5 = vcmp.ge.f32.partialorder %v304_v63, 0.0  ;;  %v368_v8 = vmul.f32 0.2, %v304_v63  ;;  %v621_v9 = vunpack.c.l.bf16 %v729_v59 }
  0x33   : > { %741 = vst [vmem:[%s877_s23 + $0x40] sm:$0xff] %v682_v2   ;;  %v687_v10 = vpack.c.bf16 %v398_v7, %v397_v3  ;;  %v399_v11 = vsel %vm335_vm4, %v303_v58, %v367_v4  ;;  %v622_v12 = vunpack.c.h.bf16 %v729_v59  ;;  %v625_v13 = vunpack.c.l.bf16 %v730_v1 }
  0x34   : > { %v400_v15 = vsel %vm336_vm5, %v304_v63, %v368_v8  ;;  %v271_v16 = vsub.f32 %v621_v9, %v845_v0  ;;  %v626_v17 = vunpack.c.h.bf16 %v730_v1  ;;  %v629_v18 = vunpack.c.l.bf16 %v731_v5 }
  0x35   : > { %742 = vst [vmem:[%s877_s23 + $0x48] sm:$0xff] %v687_v10   ;;  %v692_v19 = vpack.c.bf16 %v400_v15, %v399_v11  ;;  %v272_v20 = vsub.f32 %v622_v12, %v845_v0  ;;  %v273_v21 = vsub.f32 %v625_v13, %v845_v0  ;;  %v630_v22 = vunpack.c.h.bf16 %v731_v5 }
  0x36   : > { %v305_v23 = vmul.f32 %v853_v6, %v271_v16  ;;  %v274_v24 = vsub.f32 %v626_v17, %v845_v0  ;;  %v275_v25 = vsub.f32 %v629_v18, %v845_v0  ;;  %v633_v26 = vunpack.c.l.bf16 %v732_v14 }
  0x37   : > { %743 = vst [vmem:[%s877_s23 + $0x50] sm:$0xff] %v692_v19   ;;  %v306_v27 = vmul.f32 %v853_v6, %v272_v20  ;;  %v307_v28 = vmul.f32 %v853_v6, %v273_v21  ;;  %v276_v29 = vsub.f32 %v630_v22, %v845_v0  ;;  %v634_v30 = vunpack.c.h.bf16 %v732_v14 }
  0x38   : > { %vm337_vm6 = vcmp.ge.f32.partialorder %v305_v23, 0.0  ;;  %v369_v31 = vmul.f32 0.2, %v305_v23  ;;  %v308_v32 = vmul.f32 %v853_v6, %v274_v24  ;;  %v309_v33 = vmul.f32 %v853_v6, %v275_v25 }
  0x39   : > { %vm338_vm7 = vcmp.ge.f32.partialorder %v306_v27, 0.0  ;;  %v370_v34 = vmul.f32 0.2, %v306_v27  ;;  %vm339_vm8 = vcmp.ge.f32.partialorder %v307_v28, 0.0  ;;  %v371_v35 = vmul.f32 0.2, %v307_v28 }
  0x3a   : > { %v401_v36 = vsel %vm337_vm6, %v305_v23, %v369_v31  ;;  %vm340_vm9 = vcmp.ge.f32.partialorder %v308_v32, 0.0  ;;  %v372_v37 = vmul.f32 0.2, %v308_v32  ;;  %v310_v38 = vmul.f32 %v853_v6, %v276_v29 }
  0x3b   : > { %v402_v39 = vsel %vm338_vm7, %v306_v27, %v370_v34  ;;  %v403_v40 = vsel %vm339_vm8, %v307_v28, %v371_v35  ;;  %vm341_vm10 = vcmp.ge.f32.partialorder %v309_v33, 0.0  ;;  %v373_v41 = vmul.f32 0.2, %v309_v33 }
  0x3c   : > { %v697_v43 = vpack.c.bf16 %v402_v39, %v401_v36  ;;  %v404_v44 = vsel %vm340_vm9, %v308_v32, %v372_v37  ;;  %vm342_vm11 = vcmp.ge.f32.partialorder %v310_v38, 0.0  ;;  %v374_v45 = vmul.f32 0.2, %v310_v38 }
  0x3d   : > { %v702_v46 = vpack.c.bf16 %v404_v44, %v403_v40  ;;  %v405_v47 = vsel %vm341_vm10, %v309_v33, %v373_v41  ;;  %v277_v48 = vsub.f32 %v633_v26, %v845_v0  ;;  %v278_v49 = vsub.f32 %v634_v30, %v845_v0 }
  0x3e   : > { %744 = vst [vmem:[%s877_s23 + $0x58] sm:$0xff] %v697_v43   ;;  %v406_v50 = vsel %vm342_vm11, %v310_v38, %v374_v45  ;;  %v637_v51 = vunpack.c.l.bf16 %v733_v42  ;;  %v638_v52 = vunpack.c.h.bf16 %v733_v42 }
  0x3f   : > { %745 = vst [vmem:[%s877_s23 + $0x60] sm:$0xff] %v702_v46   ;;  %v707_v53 = vpack.c.bf16 %v406_v50, %v405_v47  ;;  %v311_v54 = vmul.f32 %v853_v6, %v277_v48  ;;  %v312_v55 = vmul.f32 %v853_v6, %v278_v49 }
  0x40   : > { %v279_v56 = vsub.f32 %v637_v51, %v845_v0  ;;  %v280_v57 = vsub.f32 %v638_v52, %v845_v0 }
  0x41   : > { %746 = vst [vmem:[%s877_s23 + $0x68] sm:$0xff] %v707_v53   ;;  %vm343_vm12 = vcmp.ge.f32.partialorder %v311_v54, 0.0  ;;  %vm344_vm13 = vcmp.ge.f32.partialorder %v312_v55, 0.0  ;;  %v375_v58 = vmul.f32 0.2, %v311_v54 }
  0x42   : > { %v376_v59 = vmul.f32 0.2, %v312_v55  ;;  %v313_v60 = vmul.f32 %v853_v6, %v279_v56  ;;  %v314_v61 = vmul.f32 %v853_v6, %v280_v57 }
  0x43   : > { %v407_v62 = vsel %vm343_vm12, %v311_v54, %v375_v58 }
  0x44   : > { %v408_v63 = vsel %vm344_vm13, %v312_v55, %v376_v59  ;;  %vm345_vm14 = vcmp.ge.f32.partialorder %v313_v60, 0.0  ;;  %vm346_vm15 = vcmp.ge.f32.partialorder %v314_v61, 0.0  ;;  %v377_v1 = vmul.f32 0.2, %v313_v60 }
  0x45   : > { %v712_v2 = vpack.c.bf16 %v408_v63, %v407_v62  ;;  %v378_v3 = vmul.f32 0.2, %v314_v61 }
  0x46   : > { %v409_v4 = vsel %vm345_vm14, %v313_v60, %v377_v1 }
  0x47   : > { %747 = vst [vmem:[%s877_s23 + $0x70] sm:$0xff] %v712_v2   ;;  %v410_v0 = vsel %vm346_vm15, %v314_v61, %v378_v3 }
  0x48   : > { %v717_v5 = vpack.c.bf16 %v410_v0, %v409_v4 }
  0x4a   : > { %748 = vst [vmem:[%s877_s23 + $0x78] sm:$0xff] %v717_v5  }
  0x4b PF: > { %s12_s11 = sadd.s32 1, %s797_s11   ;;  %s968_s9 = smov %s793_s10 }
  0x4c   : > { %p9_p5 = scmp.ge.s32.totalorder %s12_s11, 4   ;;  %s969_s10 = smov %s971_s12 }
  0x4e   :  { %11 = sbr.rel (!%p9_p5) target bundleno = 2 (0x2), region = 58 }

// kernel: discriminator_forward.11
= control target key start
LH: loop header
LB: loop body
LE: loop exit
PB: predicated region body
PF: predicated region fallthrough
CT: control target
= control target key end

     0   :  { %s466_s9 = smov 0   ;;  %s468_s10 = smov 0   ;;  %s512_s0 = inlined_call_operand.vmem [shape: bf16[2,64,128], index: 0, kind: input, shape index: {}]   ;;  %s513_s1 = inlined_call_operand.vmem [shape: f32[2,128], index: 1, kind: input, shape index: {}]   ;;  %s514_s2 = inlined_call_operand.vmem [shape: bf16[2,64,128], index: 2, kind: output, shape index: {}]  }
   0x1   :  { %s470_s11 = smov 0  }
   0x2 LB: > { %s24_s12 = sadd.s32 1, %s445_s10  ;;  %p350_p0 = scmp.ge.s32.totalorder %s449_s11, 1  ;;  %s449_s11 = sphi %s470_s11, %s12_s11   ;;  %s445_s10 = sphi %s468_s10, %s516_s10   ;;  %s441_s9 = sphi %s466_s9, %s515_s9  }
   0x3   : > { %p26_p1 = scmp.ge.s32.totalorder %s24_s12, 2  ;;  %p133_p2 = scmp.lt.s32.totalorder %s449_s11, 3 }
   0x5   : > { %s518_s12 = smov (%p26_p1, %s24_s12), 0  ;;  %p134_p3 = pnand %p350_p0, %p133_p2 }
   0x6   : > { %p164_p4 = scmp.lt.s32.totalorder (!%p134_p3), %s441_s9, 1 }
   0x7   : > { %137 = sbr.rel (%p134_p3) target bundleno = 33 (0x21), region = 28 }
   0xc   : > { %s520_s9 = smov (!%p164_p4, %s441_s9), 1  ;;  %v425_v0 = vld [vmem:[%s513_s1] ss:$0 sm:$0xff]  ;;  %v426_v9 = vld [vmem:[%s513_s1 + $0x1] ss:$0 sm:$0xff] }
   0xd   : > { %s357_s13 = sshll.u32 %s520_s9, 5 }
   0xe   : > { %s171_s16 = scalar_lea.vmem %s512_s0, %s357_s13  ;;  %s181_s23 = scalar_lea.vmem %s514_s2, %s357_s13 }
   0xf   : > { %v360_v1 = vld [vmem:[%s171_s16] sm:$0xff]   ;;  %v395_v2 = vld [vmem:[%s171_s16 + $0x8] sm:$0xff]   ;;  %v396_v3 = vld [vmem:[%s171_s16 + $0x10] sm:$0xff]  }
  0x10   : > { %v361_v4 = vunpack.c.l.bf16 %v360_v1  ;;  %v362_v5 = vunpack.c.h.bf16 %v360_v1  ;;  %v365_v6 = vunpack.c.l.bf16 %v395_v2  ;;  %v366_v7 = vunpack.c.h.bf16 %v395_v2  ;;  %v397_v8 = vld [vmem:[%s171_s16 + $0x18] sm:$0xff]  }
  0x11   : > { %v369_v10 = vunpack.c.l.bf16 %v396_v3  ;;  %v370_v11 = vunpack.c.h.bf16 %v396_v3  ;;  %v373_v12 = vunpack.c.l.bf16 %v397_v8  ;;  %v374_v13 = vunpack.c.h.bf16 %v397_v8 }
  0x12   : > { %v201_v14 = vsub.f32 %v361_v4, %v425_v0  ;;  %v202_v15 = vsub.f32 %v362_v5, %v425_v0  ;;  %v203_v16 = vsub.f32 %v365_v6, %v425_v0  ;;  %v204_v17 = vsub.f32 %v366_v7, %v425_v0 }
  0x13   : > { %v205_v18 = vsub.f32 %v369_v10, %v425_v0  ;;  %v206_v19 = vsub.f32 %v370_v11, %v425_v0  ;;  %v207_v20 = vsub.f32 %v373_v12, %v425_v0  ;;  %v208_v21 = vsub.f32 %v374_v13, %v425_v0 }
  0x14   : > { %v211_v22 = vmul.f32 %v426_v9, %v201_v14  ;;  %v212_v23 = vmul.f32 %v426_v9, %v202_v15  ;;  %v213_v24 = vmul.f32 %v426_v9, %v203_v16  ;;  %v214_v25 = vmul.f32 %v426_v9, %v204_v17 }
  0x15   : > { %v215_v26 = vmul.f32 %v426_v9, %v205_v18  ;;  %v216_v27 = vmul.f32 %v426_v9, %v206_v19  ;;  %v217_v28 = vmul.f32 %v426_v9, %v207_v20  ;;  %v218_v29 = vmul.f32 %v426_v9, %v208_v21 }
  0x16   : > { %vm219_vm0 = vcmp.ge.f32.partialorder %v211_v22, 0.0  ;;  %vm220_vm1 = vcmp.ge.f32.partialorder %v212_v23, 0.0  ;;  %v227_v30 = vmul.f32 0.2, %v211_v22  ;;  %v228_v31 = vmul.f32 0.2, %v212_v23 }
  0x17   : > { %vm221_vm2 = vcmp.ge.f32.partialorder %v213_v24, 0.0  ;;  %vm222_vm3 = vcmp.ge.f32.partialorder %v214_v25, 0.0  ;;  %v229_v32 = vmul.f32 0.2, %v213_v24  ;;  %v230_v33 = vmul.f32 0.2, %v214_v25 }
  0x18   : > { %v235_v34 = vsel %vm219_vm0, %v211_v22, %v227_v30  ;;  %v236_v35 = vsel %vm220_vm1, %v212_v23, %v228_v31  ;;  %vm223_vm4 = vcmp.ge.f32.partialorder %v215_v26, 0.0  ;;  %vm224_vm5 = vcmp.ge.f32.partialorder %v216_v27, 0.0 }
  0x19   : > { %v378_v36 = vpack.c.bf16 %v236_v35, %v235_v34  ;;  %v237_v37 = vsel %vm221_vm2, %v213_v24, %v229_v32  ;;  %v238_v38 = vsel %vm222_vm3, %v214_v25, %v230_v33  ;;  %v231_v39 = vmul.f32 0.2, %v215_v26 }
  0x1a   : > { %v383_v40 = vpack.c.bf16 %v238_v38, %v237_v37  ;;  %v232_v41 = vmul.f32 0.2, %v216_v27  ;;  %vm225_vm6 = vcmp.ge.f32.partialorder %v217_v28, 0.0  ;;  %vm226_vm7 = vcmp.ge.f32.partialorder %v218_v29, 0.0 }
  0x1b   : > { %379 = vst [vmem:[%s181_s23] sm:$0xff] %v378_v36   ;;  %v239_v42 = vsel %vm223_vm4, %v215_v26, %v231_v39  ;;  %v233_v43 = vmul.f32 0.2, %v217_v28  ;;  %v234_v44 = vmul.f32 0.2, %v218_v29 }
  0x1c   : > { %398 = vst [vmem:[%s181_s23 + $0x8] sm:$0xff] %v383_v40   ;;  %v240_v45 = vsel %vm224_vm5, %v216_v27, %v232_v41 }
  0x1d   : > { %v388_v46 = vpack.c.bf16 %v240_v45, %v239_v42  ;;  %v241_v47 = vsel %vm225_vm6, %v217_v28, %v233_v43  ;;  %v242_v48 = vsel %vm226_vm7, %v218_v29, %v234_v44 }
  0x1e   : > { %v393_v49 = vpack.c.bf16 %v242_v48, %v241_v47 }
  0x1f   : > { %399 = vst [vmem:[%s181_s23 + $0x10] sm:$0xff] %v388_v46  }
  0x20   : > { %400 = vst [vmem:[%s181_s23 + $0x18] sm:$0xff] %v393_v49  }
  0x21 PF: > { %s12_s11 = sadd.s32 1, %s449_s11   ;;  %s515_s9 = smov %s445_s10 }
  0x22   : > { %p9_p5 = scmp.ge.s32.totalorder %s12_s11, 4   ;;  %s516_s10 = smov %s518_s12 }
  0x24   :  { %11 = sbr.rel (!%p9_p5) target bundleno = 2 (0x2), region = 58 }

// kernel: discriminator_forward.10
= control target key start
LH: loop header
LB: loop body
LE: loop exit
PB: predicated region body
PF: predicated region fallthrough
CT: control target
= control target key end

     0   :  { %s915_s12 = smov 0   ;;  %s917_s13 = smov 0   ;;  %s1014_s0 = inlined_call_operand.vmem [shape: bf16[2,9,8,128], index: 0, kind: input, shape index: {}]   ;;  %s1015_s1 = inlined_call_operand.vmem [shape: bf16[2,128,128], index: 1, kind: input, shape index: {}]   ;;  %s1016_s2 = inlined_call_operand.vmem [shape: bf16[2,64,128], index: 2, kind: output, shape index: {0}]   ;;  %s1017_s3 = inlined_call_operand.vmem [shape: f32[2,1,2,128], index: 3, kind: output, shape index: {1}]  }
   0x1   :  { %s919_s14 = smov 0  }
   0x2 LB: > { %s26_s15 = sadd.s32 1, %s889_s13  ;;  %p655_p0 = scmp.ge.s32.totalorder %s893_s14, 1  ;;  %s893_s14 = sphi %s919_s14, %s14_s14   ;;  %s889_s13 = sphi %s917_s13, %s1019_s13   ;;  %s885_s12 = sphi %s915_s12, %s1018_s12  }
   0x3   : > { %p28_p1 = scmp.ge.s32.totalorder %s26_s15, 2  ;;  %p156_p2 = scmp.lt.s32.totalorder %s893_s14, 3 }
   0x5   : > { %s1021_s15 = smov (%p28_p1, %s26_s15), 0  ;;  %p157_p3 = pnand %p655_p0, %p156_p2 }
   0x6   : > { %p191_p4 = scmp.lt.s32.totalorder (!%p157_p3), %s885_s12, 1 }
   0x7   : > { %160 = sbr.rel (%p157_p3) target bundleno = 223 (0xdf), region = 28 }
   0xc   : > { %v806_v0 = vld [vmem:[%s1015_s1 + $0x78] sm:$0xff]  ;;  %v805_v2 = vld [vmem:[%s1015_s1 + $0x70] sm:$0xff]  ;;  %v804_v4 = vld [vmem:[%s1015_s1 + $0x68] sm:$0xff]  ;;  %s1023_s12 = smov (!%p191_p4, %s885_s12), 1  ;;  %vm520_vm0 = vcmask 1040384  }
   0xd   : > { %v794_v1 = vld [vmem:[%s1015_s1 + $0x38] sm:$0xff]  ;;  %340 = vmatpush.bf16.msra.mxu0 %v806_v0  ;;  %830 = vmatpush.bf16.msra.mxu2 %v806_v0  ;;  %v793_v3 = vld [vmem:[%s1015_s1 + $0x30] sm:$0xff]  ;;  %v792_v5 = vld [vmem:[%s1015_s1 + $0x28] sm:$0xff]  ;;  %s846_s19 = smul.u32 36, %s1023_s12  ;;  %s782_s29 = sshll.u32 %s1023_s12, 5 }
   0xe   : > { %441 = vmatpush.bf16.msra.mxu1 %v794_v1  ;;  %838 = vmatpush.bf16.msra.mxu3 %v794_v1  ;;  %v803_v6 = vld [vmem:[%s1015_s1 + $0x60] sm:$0xff]  ;;  %v802_v8 = vld [vmem:[%s1015_s1 + $0x58] sm:$0xff]  ;;  %v801_v10 = vld [vmem:[%s1015_s1 + $0x50] sm:$0xff]  ;;  %s995_s5 = scalar_lea.vmem %s1016_s2, %s782_s29  ;;  %s659_s6 = sshll.u32 %s1023_s12, 1 }
   0xf   : > { %v791_v7 = vld [vmem:[%s1015_s1 + $0x20] sm:$0xff]  ;;  %v790_v9 = vld [vmem:[%s1015_s1 + $0x18] sm:$0xff]  ;;  %v789_v11 = vld [vmem:[%s1015_s1 + $0x10] sm:$0xff]  ;;  %s195_s26 = scalar_lea.vmem %s1014_s0, %s846_s19  ;;  %s212_s9 = scalar_lea.vmem %s1017_s3, %s659_s6 }
  0x10   : > { %v800_v12 = vld [vmem:[%s1015_s1 + $0x48] sm:$0xff]  ;;  %v799_v14 = vld [vmem:[%s1015_s1 + $0x40] sm:$0xff]  ;;  %v797_v17 = vld [vmem:[%s195_s26 + $0x14] sm:$0xff] }
  0x11   : > { %341 = vmatpush.bf16.msra.mxu0 %v805_v2  ;;  %831 = vmatpush.bf16.msra.mxu2 %v805_v2  ;;  %v788_v13 = vld [vmem:[%s1015_s1 + $0x8] sm:$0xff]  ;;  %v787_v15 = vld [vmem:[%s1015_s1] sm:$0xff]  ;;  %v785_v19 = vld [vmem:[%s195_s26 + $0x10] sm:$0xff] }
  0x12   : > { %442 = vmatpush.bf16.msra.mxu1 %v793_v3  ;;  %839 = vmatpush.bf16.msra.mxu3 %v793_v3  ;;  %v795_v16 = vld [vmem:[%s195_s26 + $0x4] sm:$0xff]  ;;  %v796_v20 = vld [vmem:[%s195_s26 + $0xc] sm:$0xff]  ;;  %v798_v21 = vld [vmem:[%s195_s26 + $0x1c] sm:$0xff] }
  0x13   : > { %v783_v18 = vld [vmem:[%s195_s26] sm:$0xff]  ;;  %v784_v22 = vld [vmem:[%s195_s26 + $0x8] sm:$0xff]  ;;  %v786_v23 = vld [vmem:[%s195_s26 + $0x18] sm:$0xff] }
  0x15   : > { %342 = vmatpush.bf16.msra.mxu0 %v804_v4  ;;  %832 = vmatpush.bf16.msra.mxu2 %v804_v4 }
  0x16   : > { %443 = vmatpush.bf16.msra.mxu1 %v792_v5  ;;  %840 = vmatpush.bf16.msra.mxu3 %v792_v5 }
  0x19   : > { %343 = vmatpush.bf16.msra.mxu0 %v803_v6  ;;  %833 = vmatpush.bf16.msra.mxu2 %v803_v6 }
  0x1a   : > { %444 = vmatpush.bf16.msra.mxu1 %v791_v7  ;;  %841 = vmatpush.bf16.msra.mxu3 %v791_v7 }
  0x1d   : > { %344 = vmatpush.bf16.msra.mxu0 %v802_v8  ;;  %834 = vmatpush.bf16.msra.mxu2 %v802_v8 }
  0x1e   : > { %445 = vmatpush.bf16.msra.mxu1 %v790_v9  ;;  %842 = vmatpush.bf16.msra.mxu3 %v790_v9 }
  0x21   : > { %345 = vmatpush.bf16.msra.mxu0 %v801_v10  ;;  %835 = vmatpush.bf16.msra.mxu2 %v801_v10 }
  0x22   : > { %446 = vmatpush.bf16.msra.mxu1 %v789_v11  ;;  %843 = vmatpush.bf16.msra.mxu3 %v789_v11 }
  0x25   : > { %346 = vmatpush.bf16.msra.mxu0 %v800_v12  ;;  %836 = vmatpush.bf16.msra.mxu2 %v800_v12 }
  0x26   : > { %447 = vmatpush.bf16.msra.mxu1 %v788_v13  ;;  %844 = vmatpush.bf16.msra.mxu3 %v788_v13 }
  0x29   : > { %347 = vmatpush.bf16.msra.mxu0 %v799_v14  ;;  %837 = vmatpush.bf16.msra.mxu2 %v799_v14 }
  0x2a   : > { %448 = vmatpush.bf16.msra.mxu1 %v787_v15  ;;  %845 = vmatpush.bf16.msra.mxu3 %v787_v15 }
  0x2c   : > { %348 = vmatmul.bf16.vlgmr.msra.gmra.mxu0 %v795_v16  ;;  %358 = vmatmul.bf16.vlgmr.msra.gmra.mxu2 %v797_v17 }
  0x2d   : > { %449 = vmatmul.bf16.vlgmr.msra.gmra.mxu1 %v783_v18  ;;  %459 = vmatmul.bf16.vlgmr.msra.gmra.mxu3 %v785_v19 }
  0x3c   : > { %353 = vmatmul.bf16.gmra.mxu0 %v796_v20  ;;  %363 = vmatmul.bf16.gmra.mxu2 %v798_v21 }
  0x3d   : > { %454 = vmatmul.bf16.gmra.mxu1 %v784_v22  ;;  %464 = vmatmul.bf16.gmra.mxu3 %v786_v23 }
  0xa9   : > { %v349_v24 = vpop.f32.mrf.mxu0 }
  0xaa   : > { %v450_v25 = vpop.f32.mrf.mxu1 }
  0xab   : > { %v451_v30 = vadd.f32 %v450_v25, %v349_v24 }
  0xad   : > { %v499_v44 = vmul.f32 %v451_v30, %v451_v30 }
  0xaf   : > { %v359_v26 = vpop.f32.mrf.mxu2 }
  0xb0   : > { %v460_v27 = vpop.f32.mrf.mxu3 }
  0xb1   : > { %v351_v28 = vpop.f32.mrf.mxu0  ;;  %v461_v35 = vadd.f32 %v460_v27, %v359_v26 }
  0xb2   : > { %v452_v29 = vpop.f32.mrf.mxu1 }
  0xb3   : > { %v453_v31 = vadd.f32 %v452_v29, %v351_v28  ;;  %v503_v56 = vmul.f32 %v461_v35, %v461_v35 }
  0xb5   : > { %v810_v32 = vpack.c.bf16 %v453_v31, %v451_v30  ;;  %v500_v41 = vmul.f32 %v453_v31, %v453_v31  ;;  %v486_v45 = vadd.f32 %v453_v31, %v451_v30 }
  0xb7   : > { %811 = vst [vmem:[%s995_s5] sm:$0xff] %v810_v32   ;;  %v361_v33 = vpop.f32.mrf.mxu2  ;;  %v507_v49 = vadd.f32 %v500_v41, %v499_v44 }
  0xb8   : > { %v462_v34 = vpop.f32.mrf.mxu3 }
  0xb9   : > { %v463_v36 = vadd.f32 %v462_v34, %v361_v33  ;;  %v354_v37 = vpop.f32.mrf.mxu0 }
  0xba   : > { %v455_v38 = vpop.f32.mrf.mxu1 }
  0xbb   : > { %v820_v39 = vpack.c.bf16 %v463_v36, %v461_v35  ;;  %v456_v40 = vadd.f32 %v455_v38, %v354_v37  ;;  %v504_v62 = vmul.f32 %v463_v36, %v463_v36 }
  0xbd   : > { %828 = vst [vmem:[%s995_s5 + $0x10] sm:$0xff] %v820_v39   ;;  %v501_v46 = vmul.f32 %v456_v40, %v456_v40  ;;  %v487_v50 = vadd.f32 %v486_v45, %v456_v40 }
  0xbf   : > { %v364_v42 = vpop.f32.mrf.mxu2  ;;  %v508_v52 = vadd.f32 %v507_v49, %v501_v46 }
  0xc0   : > { %v465_v43 = vpop.f32.mrf.mxu3 }
  0xc1   : > { %v356_v47 = vpop.f32.mrf.mxu0  ;;  %v466_v57 = vadd.f32 %v465_v43, %v364_v42 }
  0xc2   : > { %v457_v48 = vpop.f32.mrf.mxu1 }
  0xc3   : > { %v458_v51 = vadd.f32 %v457_v48, %v356_v47  ;;  %v505_v2 = vmul.f32 %v466_v57, %v466_v57 }
  0xc5   : > { %v815_v53 = vpack.c.bf16 %v458_v51, %v456_v40  ;;  %v488_v54 = vadd.f32 %v487_v50, %v458_v51  ;;  %v502_v55 = vmul.f32 %v458_v51, %v458_v51 }
  0xc7   : > { %827 = vst [vmem:[%s995_s5 + $0x8] sm:$0xff] %v815_v53   ;;  %v489_v58 = vadd.f32 %v488_v54, %v461_v35  ;;  %v509_v59 = vadd.f32 %v508_v52, %v502_v55  ;;  %v366_v60 = vpop.f32.mrf.mxu2 }
  0xc8   : > { %v467_v61 = vpop.f32.mrf.mxu3 }
  0xc9   : > { %v510_v63 = vadd.f32 %v509_v59, %v503_v56  ;;  %v468_v0 = vadd.f32 %v467_v61, %v366_v60  ;;  %v490_v1 = vadd.f32 %v489_v58, %v463_v36 }
  0xcb   : > { %v825_v3 = vpack.c.bf16 %v468_v0, %v466_v57  ;;  %v491_v4 = vadd.f32 %v490_v1, %v466_v57  ;;  %v511_v5 = vadd.f32 %v510_v63, %v504_v62  ;;  %v506_v7 = vmul.f32 %v468_v0, %v468_v0 }
  0xcd   : > { %829 = vst [vmem:[%s995_s5 + $0x18] sm:$0xff] %v825_v3   ;;  %v492_v6 = vadd.f32 %v491_v4, %v468_v0  ;;  %v512_v8 = vadd.f32 %v511_v5, %v505_v2 }
  0xcf   : > { %v493_v9 = vrot.slane %v492_v6, 4  ;;  %v513_v10 = vadd.f32 %v512_v8, %v506_v7 }
  0xd1   : > { %v494_v11 = vadd.f32 %v493_v9, %v492_v6  ;;  %v514_v12 = vrot.slane %v513_v10, 4 }
  0xd3   : > { %v495_v13 = vrot.slane %v494_v11, 2  ;;  %v515_v14 = vadd.f32 %v514_v12, %v513_v10 }
  0xd5   : > { %v496_v15 = vadd.f32 %v495_v13, %v494_v11  ;;  %v516_v16 = vrot.slane %v515_v14, 2 }
  0xd7   : > { %v497_v17 = vrot.slane %v496_v15, 1  ;;  %v517_v18 = vadd.f32 %v516_v16, %v515_v14 }
  0xd9   : > { %v518_v19 = vrot.slane %v517_v18, 1  ;;  %v498_v20 = vadd.f32 %v497_v17, %v496_v15 }
  0xdb   : > { %v519_v21 = vadd.f32 %v518_v19, %v517_v18 }
  0xdd   : > { %v521_v22 = vsel %vm520_vm0, %v498_v20, %v519_v21 }
  0xde   : > { %522 = vst [vmem:[%s212_s9] sm:$0x3] %v521_v22 }
  0xdf PF: > { %s14_s14 = sadd.s32 1, %s893_s14   ;;  %s1018_s12 = smov %s889_s13 }
  0xe0   : > { %p11_p5 = scmp.ge.s32.totalorder %s14_s14, 4   ;;  %s1019_s13 = smov %s1021_s15 }
  0xe2   :  { %13 = sbr.rel (!%p11_p5) target bundleno = 2 (0x2), region = 73 }

// kernel: discriminator_forward.12
= control target key start
LH: loop header
LB: loop body
LE: loop exit
PB: predicated region body
PF: predicated region fallthrough
CT: control target
= control target key end

     0   :  { %s1091_s12 = smov 0   ;;  %s1093_s13 = smov 0   ;;  %s1250_s0 = inlined_call_operand.vmem [shape: bf16[2,5,8,256], index: 0, kind: input, shape index: {}]   ;;  %s1251_s1 = inlined_call_operand.vmem [shape: bf16[2,256,128], index: 1, kind: input, shape index: {}]   ;;  %s1252_s2 = inlined_call_operand.vmem [shape: bf16[2,32,128], index: 2, kind: output, shape index: {0}]   ;;  %s1253_s3 = inlined_call_operand.vmem [shape: f32[2,1,2,128], index: 3, kind: output, shape index: {1}]  }
   0x1   :  { %s1095_s14 = smov 0  }
   0x2 LB: > { %s26_s15 = sadd.s32 1, %s1065_s13  ;;  %p767_p0 = scmp.ge.s32.totalorder %s1069_s14, 1  ;;  %s1069_s14 = sphi %s1095_s14, %s14_s14   ;;  %s1065_s13 = sphi %s1093_s13, %s1255_s13   ;;  %s1061_s12 = sphi %s1091_s12, %s1254_s12  }
   0x3   : > { %p28_p1 = scmp.ge.s32.totalorder %s26_s15, 2  ;;  %p156_p2 = scmp.lt.s32.totalorder %s1069_s14, 3 }
   0x5   : > { %s1257_s15 = smov (%p28_p1, %s26_s15), 0  ;;  %p157_p3 = pnand %p767_p0, %p156_p2 }
   0x6   : > { %p191_p4 = scmp.lt.s32.totalorder (!%p157_p3), %s1061_s12, 1 }
   0x7   : > { %160 = sbr.rel (%p157_p3) target bundleno = 224 (0xe0), region = 28 }
   0xc   : > { %v1002_v0 = vld [vmem:[%s1251_s1 + $0xb8] sm:$0xff]  ;;  %v1001_v4 = vld [vmem:[%s1251_s1 + $0xb0] sm:$0xff]  ;;  %v1000_v8 = vld [vmem:[%s1251_s1 + $0xa8] sm:$0xff]  ;;  %s1259_s12 = smov (!%p191_p4, %s1061_s12), 1  ;;  %vm632_vm0 = vcmask 1040384  }
   0xd   : > { %v1010_v1 = vld [vmem:[%s1251_s1 + $0xf8] sm:$0xff]  ;;  %410 = vmatpush.bf16.msra.mxu0 %v1002_v0  ;;  %v1009_v5 = vld [vmem:[%s1251_s1 + $0xf0] sm:$0xff]  ;;  %v1008_v9 = vld [vmem:[%s1251_s1 + $0xe8] sm:$0xff]  ;;  %s1022_s10 = smul.u32 40, %s1259_s12  ;;  %s970_s11 = sshll.u32 %s1259_s12, 4 }
   0xe   : > { %v982_v2 = vld [vmem:[%s1251_s1 + $0x38] sm:$0xff]  ;;  %429 = vmatpush.bf16.msra.mxu1 %v1010_v1  ;;  %v981_v6 = vld [vmem:[%s1251_s1 + $0x30] sm:$0xff]  ;;  %v980_v10 = vld [vmem:[%s1251_s1 + $0x28] sm:$0xff]  ;;  %s204_s18 = scalar_lea.vmem %s1252_s2, %s970_s11  ;;  %s771_s19 = sshll.u32 %s1259_s12, 1 }
   0xf   : > { %v990_v3 = vld [vmem:[%s1251_s1 + $0x78] sm:$0xff]  ;;  %564 = vmatpush.bf16.msra.mxu2 %v982_v2  ;;  %v989_v7 = vld [vmem:[%s1251_s1 + $0x70] sm:$0xff]  ;;  %v988_v11 = vld [vmem:[%s1251_s1 + $0x68] sm:$0xff]  ;;  %s1197_s25 = scalar_lea.vmem %s1250_s0, %s1022_s10  ;;  %s212_s22 = scalar_lea.vmem %s1253_s3, %s771_s19 }
  0x10   : > { %583 = vmatpush.bf16.msra.mxu3 %v990_v3  ;;  %v999_v12 = vld [vmem:[%s1251_s1 + $0xa0] sm:$0xff]  ;;  %v998_v16 = vld [vmem:[%s1251_s1 + $0x98] sm:$0xff]  ;;  %v997_v20 = vld [vmem:[%s1251_s1 + $0x90] sm:$0xff] }
  0x11   : > { %411 = vmatpush.bf16.msra.mxu0 %v1001_v4  ;;  %v1007_v13 = vld [vmem:[%s1251_s1 + $0xe0] sm:$0xff]  ;;  %v1006_v17 = vld [vmem:[%s1251_s1 + $0xd8] sm:$0xff]  ;;  %v1005_v21 = vld [vmem:[%s1251_s1 + $0xd0] sm:$0xff] }
  0x12   : > { %430 = vmatpush.bf16.msra.mxu1 %v1009_v5  ;;  %v979_v14 = vld [vmem:[%s1251_s1 + $0x20] sm:$0xff]  ;;  %v978_v18 = vld [vmem:[%s1251_s1 + $0x18] sm:$0xff]  ;;  %v977_v22 = vld [vmem:[%s1251_s1 + $0x10] sm:$0xff] }
  0x13   : > { %565 = vmatpush.bf16.msra.mxu2 %v981_v6  ;;  %v987_v15 = vld [vmem:[%s1251_s1 + $0x60] sm:$0xff]  ;;  %v986_v19 = vld [vmem:[%s1251_s1 + $0x58] sm:$0xff]  ;;  %v985_v23 = vld [vmem:[%s1251_s1 + $0x50] sm:$0xff] }
  0x14   : > { %584 = vmatpush.bf16.msra.mxu3 %v989_v7  ;;  %v996_v24 = vld [vmem:[%s1251_s1 + $0x88] sm:$0xff]  ;;  %v995_v28 = vld [vmem:[%s1251_s1 + $0x80] sm:$0xff]  ;;  %v992_v33 = vld [vmem:[%s1197_s25 + $0xc] sm:$0xf0] }
  0x15   : > { %412 = vmatpush.bf16.msra.mxu0 %v1000_v8  ;;  %v1004_v25 = vld [vmem:[%s1251_s1 + $0xc8] sm:$0xff]  ;;  %v1003_v29 = vld [vmem:[%s1251_s1 + $0xc0] sm:$0xff]  ;;  %v812_v35 = vld [vmem:[%s1197_s25 + $0x10] sm:$0xf0] }
  0x16   : > { %431 = vmatpush.bf16.msra.mxu1 %v1008_v9  ;;  %v976_v26 = vld [vmem:[%s1251_s1 + $0x8] sm:$0xff]  ;;  %v975_v30 = vld [vmem:[%s1251_s1] sm:$0xff]  ;;  %v818_v44 = vld [vmem:[%s1197_s25 + $0x18] sm:$0xf] }
  0x17   : > { %566 = vmatpush.bf16.msra.mxu2 %v980_v10  ;;  %v984_v27 = vld [vmem:[%s1251_s1 + $0x48] sm:$0xff]  ;;  %v983_v31 = vld [vmem:[%s1251_s1 + $0x40] sm:$0xff]  ;;  %v993_v46 = vld [vmem:[%s1197_s25 + $0x1c] sm:$0xf] }
  0x18   : > { %585 = vmatpush.bf16.msra.mxu3 %v988_v11  ;;  %v810_v32 = vld [vmem:[%s1197_s25 + $0x8] sm:$0xf]  ;;  %v991_v34 = vld [vmem:[%s1197_s25 + $0xc] sm:$0xf]  ;;  %v890_v36 = vld [vmem:[%s1197_s25] sm:$0xf] }
  0x19   : > { %413 = vmatpush.bf16.msra.mxu0 %v999_v12  ;;  %v972_v37 = vld [vmem:[%s1197_s25 + $0x4] sm:$0xf0]  ;;  %v971_v38 = vld [vmem:[%s1197_s25 + $0x4] sm:$0xf]  ;;  %v892_v39 = vld [vmem:[%s1197_s25 + $0x8] sm:$0xf0]  ;;  %v811_v40 = vor.u32 %v992_v33, %v810_v32  ;;  %v815_v41 = vor.u32 %v991_v34, %v812_v35 }
  0x1a   : > { %432 = vmatpush.bf16.msra.mxu1 %v1007_v13  ;;  %v891_v42 = vor.u32 %v972_v37, %v890_v36  ;;  %v895_v43 = vor.u32 %v971_v38, %v892_v39  ;;  %v994_v45 = vld [vmem:[%s1197_s25 + $0x1c] sm:$0xf0]  ;;  %v820_v47 = vld [vmem:[%s1197_s25 + $0x20] sm:$0xf0]  ;;  %v898_v48 = vld [vmem:[%s1197_s25 + $0x10] sm:$0xf] }
  0x1b   : > { %567 = vmatpush.bf16.msra.mxu2 %v979_v14  ;;  %v974_v49 = vld [vmem:[%s1197_s25 + $0x14] sm:$0xf0]  ;;  %v973_v50 = vld [vmem:[%s1197_s25 + $0x14] sm:$0xf]  ;;  %v900_v51 = vld [vmem:[%s1197_s25 + $0x18] sm:$0xf0]  ;;  %v819_v52 = vor.u32 %v994_v45, %v818_v44  ;;  %v823_v53 = vor.u32 %v993_v46, %v820_v47 }
  0x1c   : > { %586 = vmatpush.bf16.msra.mxu3 %v987_v15  ;;  %v899_v54 = vor.u32 %v974_v49, %v898_v48  ;;  %v903_v55 = vor.u32 %v973_v50, %v900_v51 }
  0x1d   : > { %414 = vmatpush.bf16.msra.mxu0 %v998_v16 }
  0x1e   : > { %433 = vmatpush.bf16.msra.mxu1 %v1006_v17 }
  0x1f   : > { %568 = vmatpush.bf16.msra.mxu2 %v978_v18 }
  0x20   : > { %587 = vmatpush.bf16.msra.mxu3 %v986_v19 }
  0x21   : > { %415 = vmatpush.bf16.msra.mxu0 %v997_v20 }
  0x22   : > { %434 = vmatpush.bf16.msra.mxu1 %v1005_v21 }
  0x23   : > { %569 = vmatpush.bf16.msra.mxu2 %v977_v22 }
  0x24   : > { %588 = vmatpush.bf16.msra.mxu3 %v985_v23 }
  0x25   : > { %416 = vmatpush.bf16.msra.mxu0 %v996_v24 }
  0x26   : > { %435 = vmatpush.bf16.msra.mxu1 %v1004_v25 }
  0x27   : > { %570 = vmatpush.bf16.msra.mxu2 %v976_v26 }
  0x28   : > { %589 = vmatpush.bf16.msra.mxu3 %v984_v27 }
  0x29   : > { %417 = vmatpush.bf16.msra.mxu0 %v995_v28 }
  0x2a   : > { %436 = vmatpush.bf16.msra.mxu1 %v1003_v29 }
  0x2b   : > { %571 = vmatpush.bf16.msra.mxu2 %v975_v30 }
  0x2c   : > { %590 = vmatpush.bf16.msra.mxu3 %v983_v31  ;;  %418 = vmatmul.bf16.vlgmr.msra.gmra.mxu0 %v811_v40 }
  0x2d   : > { %437 = vmatmul.bf16.vlgmr.msra.gmra.mxu1 %v815_v41 }
  0x2e   : > { %572 = vmatmul.bf16.vlgmr.msra.gmra.mxu2 %v891_v42 }
  0x2f   : > { %591 = vmatmul.bf16.vlgmr.msra.gmra.mxu3 %v895_v43 }
  0x3c   : > { %423 = vmatmul.bf16.gmra.mxu0 %v819_v52 }
  0x3d   : > { %442 = vmatmul.bf16.gmra.mxu1 %v823_v53 }
  0x3e   : > { %577 = vmatmul.bf16.gmra.mxu2 %v899_v54 }
  0x3f   : > { %596 = vmatmul.bf16.gmra.mxu3 %v903_v55 }
  0xa9   : > { %v419_v56 = vpop.f32.mrf.mxu0 }
  0xaa   : > { %v438_v57 = vpop.f32.mrf.mxu1 }
  0xab   : > { %v439_v62 = vadd.f32 %v438_v57, %v419_v56 }
  0xb1   : > { %v573_v58 = vpop.f32.mrf.mxu2  ;;  %v421_v60 = vpop.f32.mrf.mxu0 }
  0xb2   : > { %v592_v59 = vpop.f32.mrf.mxu3  ;;  %v440_v61 = vpop.f32.mrf.mxu1  ;;  %v574_v63 = vadd.f32 %v573_v58, %v439_v62 }
  0xb3   : > { %v441_v0 = vadd.f32 %v440_v61, %v421_v60 }
  0xb4   : > { %v593_v6 = vadd.f32 %v592_v59, %v574_v63 }
  0xb6   : > { %v619_v19 = vmul.f32 %v593_v6, %v593_v6 }
  0xb9   : > { %v575_v1 = vpop.f32.mrf.mxu2  ;;  %v424_v4 = vpop.f32.mrf.mxu0 }
  0xba   : > { %v594_v2 = vpop.f32.mrf.mxu3  ;;  %v576_v3 = vadd.f32 %v575_v1, %v441_v0  ;;  %v443_v5 = vpop.f32.mrf.mxu1 }
  0xbb   : > { %v444_v9 = vadd.f32 %v443_v5, %v424_v4 }
  0xbc   : > { %v595_v7 = vadd.f32 %v594_v2, %v576_v3 }
  0xbe   : > { %v1014_v8 = vpack.c.bf16 %v595_v7, %v593_v6  ;;  %v620_v16 = vmul.f32 %v595_v7, %v595_v7  ;;  %v610_v20 = vadd.f32 %v595_v7, %v593_v6 }
  0xc0   : > { %1015 = vst [vmem:[%s204_s18] sm:$0xff] %v1014_v8   ;;  %v623_v24 = vadd.f32 %v620_v16, %v619_v19 }
  0xc1   : > { %v578_v10 = vpop.f32.mrf.mxu2  ;;  %v426_v13 = vpop.f32.mrf.mxu0 }
  0xc2   : > { %v597_v11 = vpop.f32.mrf.mxu3  ;;  %v579_v12 = vadd.f32 %v578_v10, %v444_v9  ;;  %v445_v14 = vpop.f32.mrf.mxu1 }
  0xc3   : > { %v446_v17 = vadd.f32 %v445_v14, %v426_v13 }
  0xc4   : > { %v598_v15 = vadd.f32 %v597_v11, %v579_v12 }
  0xc6   : > { %v621_v21 = vmul.f32 %v598_v15, %v598_v15  ;;  %v611_v25 = vadd.f32 %v610_v20, %v598_v15 }
  0xc8   : > { %v624_v27 = vadd.f32 %v623_v24, %v621_v21 }
  0xc9   : > { %v580_v18 = vpop.f32.mrf.mxu2 }
  0xca   : > { %v581_v22 = vadd.f32 %v580_v18, %v446_v17  ;;  %v599_v23 = vpop.f32.mrf.mxu3 }
  0xcc   : > { %v600_v26 = vadd.f32 %v599_v23, %v581_v22 }
  0xce   : > { %v1019_v28 = vpack.c.bf16 %v600_v26, %v598_v15  ;;  %v612_v29 = vadd.f32 %v611_v25, %v600_v26  ;;  %v622_v30 = vmul.f32 %v600_v26, %v600_v26 }
  0xd0   : > { %1021 = vst [vmem:[%s204_s18 + $0x8] sm:$0xff] %v1019_v28   ;;  %v613_v31 = vrot.slane %v612_v29, 4  ;;  %v625_v32 = vadd.f32 %v624_v27, %v622_v30 }
  0xd2   : > { %v614_v33 = vadd.f32 %v613_v31, %v612_v29  ;;  %v626_v34 = vrot.slane %v625_v32, 4 }
  0xd4   : > { %v615_v35 = vrot.slane %v614_v33, 2  ;;  %v627_v36 = vadd.f32 %v626_v34, %v625_v32 }
  0xd6   : > { %v616_v37 = vadd.f32 %v615_v35, %v614_v33  ;;  %v628_v38 = vrot.slane %v627_v36, 2 }
  0xd8   : > { %v617_v39 = vrot.slane %v616_v37, 1  ;;  %v629_v40 = vadd.f32 %v628_v38, %v627_v36 }
  0xda   : > { %v630_v41 = vrot.slane %v629_v40, 1  ;;  %v618_v42 = vadd.f32 %v617_v39, %v616_v37 }
  0xdc   : > { %v631_v43 = vadd.f32 %v630_v41, %v629_v40 }
  0xde   : > { %v633_v44 = vsel %vm632_vm0, %v618_v42, %v631_v43 }
  0xdf   : > { %634 = vst [vmem:[%s212_s22] sm:$0x3] %v633_v44 }
  0xe0 PF: > { %s14_s14 = sadd.s32 1, %s1069_s14   ;;  %s1254_s12 = smov %s1065_s13 }
  0xe1   : > { %p11_p5 = scmp.ge.s32.totalorder %s14_s14, 4   ;;  %s1255_s13 = smov %s1257_s15 }
  0xe3   :  { %13 = sbr.rel (!%p11_p5) target bundleno = 2 (0x2), region = 73 }

// kernel: discriminator_forward.13
= control target key start
LH: loop header
LB: loop body
LE: loop exit
PB: predicated region body
PF: predicated region fallthrough
CT: control target
= control target key end

     0   :  { %s408_s9 = smov 0   ;;  %s410_s10 = smov 0   ;;  %s447_s0 = inlined_call_operand.vmem [shape: bf16[2,32,128], index: 0, kind: input, shape index: {}]   ;;  %s448_s1 = inlined_call_operand.vmem [shape: f32[2,128], index: 1, kind: input, shape index: {}]   ;;  %s449_s2 = inlined_call_operand.vmem [shape: bf16[2,32,128], index: 2, kind: output, shape index: {}]  }
   0x1   :  { %s412_s11 = smov 0  }
   0x2 LB: > { %s24_s12 = sadd.s32 1, %s387_s10  ;;  %p314_p0 = scmp.ge.s32.totalorder %s391_s11, 1  ;;  %s391_s11 = sphi %s412_s11, %s12_s11   ;;  %s387_s10 = sphi %s410_s10, %s451_s10   ;;  %s383_s9 = sphi %s408_s9, %s450_s9  }
   0x3   : > { %p26_p1 = scmp.ge.s32.totalorder %s24_s12, 2  ;;  %p133_p2 = scmp.lt.s32.totalorder %s391_s11, 3 }
   0x5   : > { %s453_s12 = smov (%p26_p1, %s24_s12), 0  ;;  %p134_p3 = pnand %p314_p0, %p133_p2 }
   0x6   : > { %p164_p4 = scmp.lt.s32.totalorder (!%p134_p3), %s383_s9, 1 }
   0x7   : > { %137 = sbr.rel (%p134_p3) target bundleno = 29 (0x1d), region = 28 }
   0xc   : > { %s455_s9 = smov (!%p164_p4, %s383_s9), 1  ;;  %v367_v0 = vld [vmem:[%s448_s1] ss:$0 sm:$0xff]  ;;  %v368_v7 = vld [vmem:[%s448_s1 + $0x1] ss:$0 sm:$0xff] }
   0xd   : > { %s321_s13 = sshll.u32 %s455_s9, 4 }
   0xe   : > { %s171_s16 = scalar_lea.vmem %s447_s0, %s321_s13  ;;  %s181_s23 = scalar_lea.vmem %s449_s2, %s321_s13 }
   0xf   : > { %v324_v1 = vld [vmem:[%s171_s16] sm:$0xff]   ;;  %v341_v2 = vld [vmem:[%s171_s16 + $0x8] sm:$0xff]  }
  0x10   : > { %v325_v3 = vunpack.c.l.bf16 %v324_v1  ;;  %v326_v4 = vunpack.c.h.bf16 %v324_v1  ;;  %v329_v5 = vunpack.c.l.bf16 %v341_v2  ;;  %v330_v6 = vunpack.c.h.bf16 %v341_v2 }
  0x12   : > { %v193_v8 = vsub.f32 %v325_v3, %v367_v0  ;;  %v194_v9 = vsub.f32 %v326_v4, %v367_v0  ;;  %v195_v10 = vsub.f32 %v329_v5, %v367_v0  ;;  %v196_v11 = vsub.f32 %v330_v6, %v367_v0 }
  0x14   : > { %v199_v12 = vmul.f32 %v368_v7, %v193_v8  ;;  %v200_v13 = vmul.f32 %v368_v7, %v194_v9  ;;  %v201_v14 = vmul.f32 %v368_v7, %v195_v10  ;;  %v202_v15 = vmul.f32 %v368_v7, %v196_v11 }
  0x16   : > { %vm203_vm0 = vcmp.ge.f32.partialorder %v199_v12, 0.0  ;;  %vm204_vm1 = vcmp.ge.f32.partialorder %v200_v13, 0.0  ;;  %v207_v16 = vmul.f32 0.2, %v199_v12  ;;  %v208_v17 = vmul.f32 0.2, %v200_v13 }
  0x17   : > { %vm205_vm2 = vcmp.ge.f32.partialorder %v201_v14, 0.0  ;;  %vm206_vm3 = vcmp.ge.f32.partialorder %v202_v15, 0.0  ;;  %v209_v18 = vmul.f32 0.2, %v201_v14  ;;  %v210_v19 = vmul.f32 0.2, %v202_v15 }
  0x18   : > { %v211_v20 = vsel %vm203_vm0, %v199_v12, %v207_v16  ;;  %v212_v21 = vsel %vm204_vm1, %v200_v13, %v208_v17 }
  0x19   : > { %v334_v22 = vpack.c.bf16 %v212_v21, %v211_v20  ;;  %v213_v23 = vsel %vm205_vm2, %v201_v14, %v209_v18  ;;  %v214_v24 = vsel %vm206_vm3, %v202_v15, %v210_v19 }
  0x1a   : > { %v339_v25 = vpack.c.bf16 %v214_v24, %v213_v23 }
  0x1b   : > { %335 = vst [vmem:[%s181_s23] sm:$0xff] %v334_v22  }
  0x1c   : > { %342 = vst [vmem:[%s181_s23 + $0x8] sm:$0xff] %v339_v25  }
  0x1d PF: > { %s12_s11 = sadd.s32 1, %s391_s11   ;;  %s450_s9 = smov %s387_s10 }
  0x1e   : > { %p9_p5 = scmp.ge.s32.totalorder %s12_s11, 4   ;;  %s451_s10 = smov %s453_s12 }
  0x20   :  { %11 = sbr.rel (!%p9_p5) target bundleno = 2 (0x2), region = 58 }

</bundles_post_ra>
